<compile_context>
chip_gen: v7x
topology: tpu7x:2x2x1
jax: 0.10.0
libtpu: 0.0.40
codegen_flags: <defaults>
</compile_context>

<pallas_src>
import functools

import jax
import jax.numpy as jnp
from jax import lax
from jax.experimental import pallas as pl
from jax.experimental.pallas import tpu as pltpu


def _silu(y):
    # y * sigmoid(y); the approx reciprocal stays on the otherwise-idle EUP.
    return y * pl.reciprocal(1.0 + jnp.exp(-y), approx=True)


# ----------------------------- fused kernel -----------------------------

def _ghost_kernel(mask_ref, x_ref,
                  w1_ref, b1_ref,
                  wc1_ref, bc1_ref,
                  wdw_ref, bdw_ref,
                  w2_ref, b2_ref,
                  o_ref,
                  pad_ref, wins_ref, cat_ref, *, W, HW, Bt, halo):
    """Bt images per grid step; layout (C, Bt*HW) with spatial*batch on lanes."""
    N = Bt * HW
    ch = w1_ref.shape[0]
    nk = 9 * ch

    x = x_ref[...]                                    # (c1, N), also residual

    # ---- point_conv1: 1x1 conv c1 -> ch (BN scale folded into weight) ----
    y = jnp.dot(w1_ref[...], x, precision=lax.Precision.HIGHEST,
                preferred_element_type=jnp.float32) + b1_ref[...]
    x_point = _silu(y)                                # (ch, N)

    # Zero only the halo columns (interior is overwritten every time) and the
    # sublane-padding rows of the window stack.  Re-done every step, so it is
    # safe under megacore "parallel" sharding (per-core scratch).
    pad_ref[:, :halo] = jnp.zeros((ch, halo), jnp.float32)
    pad_ref[:, halo + N:] = jnp.zeros((ch, halo), jnp.float32)
    if wins_ref.shape[0] > nk:
        wins_ref[nk:, :] = jnp.zeros((wins_ref.shape[0] - nk, N), jnp.float32)

    def windows3x3(val, into_wins):
        """9 (dy,dx)-shifted, boundary-masked windows of `val` (ch, N).

        `val` is stored into the lane-aligned interior of the halo buffer; tap
        (dy, dx) is a static slice at offset dy*W + dx.  Row/column
        out-of-range taps (incl. cross-image leakage between the Bt images
        concatenated on the lane axis) are killed by the per-tap masks; the
        halos keep the global-edge slices in-bounds and deterministic.
        """
        pad_ref[:, halo:halo + N] = val
        outs = []
        for k in range(9):
            dy, dx = k // 3 - 1, k % 3 - 1
            off = dy * W + dx
            win = pad_ref[:, halo + off: halo + off + N] * mask_ref[k:k + 1, :]
            if into_wins:
                wins_ref[k * ch:(k + 1) * ch, :] = win
            else:
                outs.append(win)
        return outs

    # ---- conv1: dense 3x3 conv ch -> ch as ONE MXU dot (K = 9*ch, padded) ----
    windows3x3(x_point, into_wins=True)
    x1 = _silu(jnp.dot(wc1_ref[...], wins_ref[...],
                       preferred_element_type=jnp.float32) + bc1_ref[...])

    # ---- dw_conv1: depthwise 3x3 on the VPU ----
    wins = windows3x3(x1, into_wins=False)
    accd = wins[0] * wdw_ref[:, 0:1]
    for k in range(1, 9):
        accd = accd + wins[k] * wdw_ref[:, k:k + 1]
    x_dw = _silu(accd + bdw_ref[...])                 # (ch, N)

    # ---- point_conv2 with concat + channel_shuffle folded into the weight:
    #      ONE dot on a full-sublane (2*ch, N) operand, fused residual add ----
    cat_ref[:ch, :] = x1
    cat_ref[ch:, :] = x_dw
    y2 = jnp.dot(w2_ref[...], cat_ref[...], precision=lax.Precision.HIGHEST,
                 preferred_element_type=jnp.float32) + b2_ref[...]
    o_ref[...] = _silu(y2) + x


# ----------------------------- wrapper -----------------------------

def _pick_bt(B, max_bt=8):
    """Images per grid step: batch as much as possible while keeping >= 2
    grid steps (megacore on v7x) when the batch allows it."""
    target = min(max_bt, max(1, B // 2))
    bt = target
    while B % bt:
        bt -= 1
    return bt


def ce_ghost_forward(x_nchw, p, *, max_bt=8):
    B, c1, H, W = x_nchw.shape
    ch = c1 // 2
    HW = H * W
    c2 = p['pc2_w'].shape[0]
    assert c2 == c1, "residual add requires c2 == c1"

    Bt = _pick_bt(B, max_bt)
    N = Bt * HW
    halo = ((W + 1 + 127) // 128) * 128          # >= W+1, lane-aligned interior
    K = p['c1_w'].shape[1]                       # 9*ch padded up to a mult of 8

    # Channel-major layout: lane axis / dot N-dim carries Bt*HW per grid step.
    xcm = jnp.transpose(x_nchw.reshape(B, c1, HW), (1, 0, 2)).reshape(c1, B * HW)

    # Per-tap boundary masks (row OOB + column wrap), tiled across the Bt
    # images of a block (also kills cross-image leakage of the shifted slices).
    r = jnp.arange(HW, dtype=jnp.int32) // W
    c = jnp.arange(HW, dtype=jnp.int32) % W
    mk = []
    for k in range(9):
        dy, dx = k // 3 - 1, k % 3 - 1
        mk.append((r + dy >= 0) & (r + dy < H) & (c + dx >= 0) & (c + dx < W))
    mask = jnp.tile(jnp.stack(mk).astype(jnp.float32), (1, Bt))       # (9, N)

    def const(shape):
        nd = len(shape)
        return pl.BlockSpec(shape, lambda i, _nd=nd: (0,) * _nd)

    kernel = functools.partial(_ghost_kernel, W=W, HW=HW, Bt=Bt, halo=halo)
    out = pl.pallas_call(
        kernel,
        out_shape=jax.ShapeDtypeStruct((c2, B * HW), jnp.float32),
        grid=(B // Bt,),
        in_specs=[
            const((9, N)),                                      # tap masks
            pl.BlockSpec((c1, N), lambda i: (0, i)),            # x (Bt images)
            const((ch, c1)), const((ch, 1)),                    # point_conv1
            const((ch, K)), const((ch, 1)),                     # conv1 (1 dot)
            const((ch, 9)), const((ch, 1)),                     # dw_conv1
            const((c2, 2 * ch)), const((c2, 1)),                # point_conv2
        ],
        out_specs=pl.BlockSpec((c2, N), lambda i: (0, i)),
        scratch_shapes=[
            pltpu.VMEM((ch, N + 2 * halo), jnp.float32),        # halo buffer
            pltpu.VMEM((K, N), jnp.float32),                    # stacked windows
            pltpu.VMEM((2 * ch, N), jnp.float32),               # [x1; x_dw]
        ],
        compiler_params=pltpu.CompilerParams(
            dimension_semantics=("parallel",)),   # megacore-shard over batch
    )(mask, xcm,
      p['pc1_w'], p['pc1_b'].reshape(ch, 1),
      p['c1_w'], p['c1_b'].reshape(ch, 1),
      p['dw_w'], p['dw_b'].reshape(ch, 1),
      p['pc2_w'], p['pc2_b'].reshape(c2, 1))
    return jnp.transpose(out.reshape(c2, B, HW), (1, 0, 2)).reshape(B, c2, H, W)


# ------------------------- params (deterministic) -------------------------

def init_params(key, c1, c2):
    ks = jax.random.split(key, 8)
    eps = 1e-5

    def bn(k, c):
        k1, k2, k3, k4 = jax.random.split(k, 4)
        gamma = jax.random.uniform(k1, (c,), minval=0.5, maxval=1.5)
        beta = jax.random.normal(k2, (c,)) * 0.1
        mean = jax.random.normal(k3, (c,)) * 0.1
        var = jax.random.uniform(k4, (c,), minval=0.5, maxval=1.5)
        s = gamma / jnp.sqrt(var + eps)
        b = beta - mean * s
        return s.astype(jnp.float32), b.astype(jnp.float32)

    ch = c1 // 2
    p = {}
    # point_conv1: OIHW (ch, c1, 1, 1); BN scale folded into the weight rows.
    w = jax.random.normal(ks[0], (ch, c1, 1, 1), dtype=jnp.float32) * 0.2
    s, b = bn(ks[1], ch)
    p['pc1_w_oihw'], p['pc1_s'], p['pc1_b'] = w, s, b
    p['pc1_w'] = w[:, :, 0, 0] * s[:, None]                          # (ch, c1)
    # conv1: OIHW (ch, ch, 3, 3) -> (ch, 9*ch [+pad]) for the single K-dot,
    # row order k*ch + i with k = ky*3 + kx; BN scale folded in.
    w = jax.random.normal(ks[2], (ch, ch, 3, 3), dtype=jnp.float32) * 0.2
    s, b = bn(ks[3], ch)
    p['c1_w_oihw'], p['c1_s'], p['c1_b'] = w, s, b
    nk = 9 * ch
    wt = jnp.transpose(w, (0, 2, 3, 1)).reshape(ch, nk) * s[:, None]
    p['c1_w'] = jnp.pad(wt, ((0, 0), (0, (-nk) % 8)))                # (ch, Kpad)
    # dw_conv1: OIHW (ch, 1, 3, 3), groups=ch -> (ch, 9); scale folded.
    w = jax.random.normal(ks[4], (ch, 1, 3, 3), dtype=jnp.float32) * 0.2
    s, b = bn(ks[5], ch)
    p['dw_w_oihw'], p['dw_s'], p['dw_b'] = w, s, b
    p['dw_w'] = w[:, 0].reshape(ch, 9) * s[:, None]
    # point_conv2: OIHW (c2, c1, 1, 1); channel_shuffle(groups=2) folded into
    # the weight columns (shuffled[2j]=x1[j], shuffled[2j+1]=x_dw[j]) and the
    # two halves pre-concatenated to match the in-kernel [x1; x_dw] stack.
    w = jax.random.normal(ks[6], (c2, c1, 1, 1), dtype=jnp.float32) * 0.2
    s, b = bn(ks[7], c2)
    p['pc2_w_oihw'], p['pc2_s'], p['pc2_b'] = w, s, b
    w2 = w[:, :, 0, 0]
    p['pc2_w'] = jnp.concatenate([w2[:, 0::2], w2[:, 1::2]], axis=1) * s[:, None]
    return p


# ------------- pure-JAX reference (NCHW, mirrors the PyTorch module) -------

def _conv_bn_silu_ref(x, w, s, b, groups=1, pad=0):
    y = lax.conv_general_dilated(
        x, w, window_strides=(1, 1), padding=[(pad, pad), (pad, pad)],
        dimension_numbers=('NCHW', 'OIHW', 'NCHW'),
        feature_group_count=groups)
    y = y * s[None, :, None, None] + b[None, :, None, None]
    return y * jax.nn.sigmoid(y)


def ce_ghost_ref(x, p):
    B, c1, H, W = x.shape
    ch = c1 // 2
    x_point = _conv_bn_silu_ref(x, p['pc1_w_oihw'], p['pc1_s'], p['pc1_b'])
    x1 = _conv_bn_silu_ref(x_point, p['c1_w_oihw'], p['c1_s'], p['c1_b'], pad=1)
    x_dw = _conv_bn_silu_ref(x1, p['dw_w_oihw'], p['dw_s'], p['dw_b'],
                             groups=ch, pad=1)
    x_cat = jnp.concatenate([x1, x_dw], axis=1)
    x_cat = x_cat.reshape(B, 2, ch, H, W).transpose(0, 2, 1, 3, 4).reshape(B, c1, H, W)
    return _conv_bn_silu_ref(x_cat, p['pc2_w_oihw'], p['pc2_s'], p['pc2_b']) + x


# ------------------------------- main -------------------------------

if __name__ == "__main__":
    key = jax.random.PRNGKey(0)
    kx, kp = jax.random.split(key)
    B, c1, c2, H, W = 8, 8, 8, 16, 16   # c2 == c1 so the residual add is valid
    x = jax.random.normal(kx, (B, c1, H, W), dtype=jnp.float32)
    params = init_params(kp, c1, c2)

    fwd = jax.jit(ce_ghost_forward)
    out = jax.block_until_ready(fwd(x, params))
    assert out.shape == (B, c2, H, W)

    ref = jax.block_until_ready(ce_ghost_ref(x, params))
    err = float(jnp.max(jnp.abs(out - ref)))
    # 1x1 convs run at HIGHEST precision; the K=36 conv dot runs a single
    # default-precision bf16 MXU pass, hence the loose tolerance.
    assert err < 2e-2, f"max abs err {err}"

    print("KERNEL_OK")
</pallas_src>

<mosaic_0001>
module attributes {stable_mosaic.version = 11 : i64} {
  func.func @_ghost_kernel(%arg0: i32, %arg1: memref<9x1024xf32, #tpu.memory_space<vmem>>, %arg2: memref<8x1024xf32, #tpu.memory_space<vmem>>, %arg3: memref<4x8xf32, #tpu.memory_space<vmem>>, %arg4: memref<4x1xf32, #tpu.memory_space<vmem>>, %arg5: memref<4x40xf32, #tpu.memory_space<vmem>>, %arg6: memref<4x1xf32, #tpu.memory_space<vmem>>, %arg7: memref<4x9xf32, #tpu.memory_space<vmem>>, %arg8: memref<4x1xf32, #tpu.memory_space<vmem>>, %arg9: memref<8x8xf32, #tpu.memory_space<vmem>>, %arg10: memref<8x1xf32, #tpu.memory_space<vmem>>, %arg11: memref<8x1024xf32, #tpu.memory_space<vmem>>, %arg12: memref<4x1280xf32, #tpu.memory_space<vmem>>, %arg13: memref<40x1024xf32, #tpu.memory_space<vmem>>, %arg14: memref<8x1024xf32, #tpu.memory_space<vmem>>) attributes {dimension_semantics = [#tpu.dimension_semantics<parallel>], iteration_bounds = array<i64: 2>, scalar_prefetch = 0 : i64, scratch_operands = 3 : i64, tpu.core_type = #tpu.core_type<tc>, window_params = [{pipeline_mode = #tpu.pipeline_mode<synchronous>, transform_indices = @transform_0, window_bounds = array<i64: 9, 1024>}, {transform_indices = @transform_1, window_bounds = array<i64: 8, 1024>}, {pipeline_mode = #tpu.pipeline_mode<synchronous>, transform_indices = @transform_2, window_bounds = array<i64: 4, 8>}, {pipeline_mode = #tpu.pipeline_mode<synchronous>, transform_indices = @transform_3, window_bounds = array<i64: 4, 1>}, {pipeline_mode = #tpu.pipeline_mode<synchronous>, transform_indices = @transform_4, window_bounds = array<i64: 4, 40>}, {pipeline_mode = #tpu.pipeline_mode<synchronous>, transform_indices = @transform_5, window_bounds = array<i64: 4, 1>}, {pipeline_mode = #tpu.pipeline_mode<synchronous>, transform_indices = @transform_6, window_bounds = array<i64: 4, 9>}, {pipeline_mode = #tpu.pipeline_mode<synchronous>, transform_indices = @transform_7, window_bounds = array<i64: 4, 1>}, {pipeline_mode = #tpu.pipeline_mode<synchronous>, transform_indices = @transform_8, window_bounds = array<i64: 8, 8>}, {pipeline_mode = #tpu.pipeline_mode<synchronous>, transform_indices = @transform_9, window_bounds = array<i64: 8, 1>}, {transform_indices = @transform_10, window_bounds = array<i64: 8, 1024>}]} {
    %c0 = arith.constant 0 : index
    %c0_0 = arith.constant 0 : index
    %0 = vector.load %arg2[%c0, %c0_0] : memref<8x1024xf32, #tpu.memory_space<vmem>>, vector<8x1024xf32>
    %c0_1 = arith.constant 0 : index
    %c0_2 = arith.constant 0 : index
    %1 = vector.load %arg3[%c0_1, %c0_2] : memref<4x8xf32, #tpu.memory_space<vmem>>, vector<4x8xf32>
    %cst = arith.constant dense<0.000000e+00> : vector<4x1024xf32>
    %2 = tpu.matmul %1, %0, %cst {dimension_numbers = #tpu.dot_dimension_numbers<[1], [0], [0], [1], [0, 0, 1, 1], [], []>, precision = #tpu.contract_precision<fp32>} : vector<4x8xf32>, vector<8x1024xf32>, vector<4x1024xf32> -> vector<4x1024xf32>
    %c0_3 = arith.constant 0 : index
    %c0_4 = arith.constant 0 : index
    %3 = vector.load %arg4[%c0_3, %c0_4] : memref<4x1xf32, #tpu.memory_space<vmem>>, vector<4x1xf32>
    %4 = vector.broadcast %3 : vector<4x1xf32> to vector<4x1024xf32>
    %5 = arith.addf %2, %4 : vector<4x1024xf32>
    %cst_5 = arith.constant 0.000000e+00 : f32
    %6 = vector.broadcast %cst_5 : f32 to vector<4x1024xf32>
    %7 = arith.subf %6, %5 : vector<4x1024xf32>
    %8 = math.exp %7 : vector<4x1024xf32>
    %cst_6 = arith.constant 1.000000e+00 : f32
    %9 = vector.broadcast %cst_6 : f32 to vector<4x1024xf32>
    %10 = arith.addf %9, %8 : vector<4x1024xf32>
    %11 = tpu.reciprocal %10 {approx = true} : vector<4x1024xf32> -> vector<4x1024xf32>
    %12 = arith.mulf %5, %11 : vector<4x1024xf32>
    %cst_7 = arith.constant 0.000000e+00 : f32
    %13 = vector.broadcast %cst_7 : f32 to vector<4x128xf32>
    %c0_8 = arith.constant 0 : index
    %c0_9 = arith.constant 0 : index
    %14 = vector.load %arg12[%c0_8, %c0_9] : memref<4x1280xf32, #tpu.memory_space<vmem>>, vector<4x128xf32>
    tpu.vector_store %arg12[%c0_8, %c0_9], %13 {strides = array<i32>} : memref<4x1280xf32, #tpu.memory_space<vmem>>, vector<4x128xf32>,
    %cst_10 = arith.constant 0.000000e+00 : f32
    %15 = vector.broadcast %cst_10 : f32 to vector<4x128xf32>
    %c0_11 = arith.constant 0 : index
    %c1152 = arith.constant 1152 : index
    %16 = vector.load %arg12[%c0_11, %c1152] : memref<4x1280xf32, #tpu.memory_space<vmem>>, vector<4x128xf32>
    tpu.vector_store %arg12[%c0_11, %c1152], %15 {strides = array<i32>} : memref<4x1280xf32, #tpu.memory_space<vmem>>, vector<4x128xf32>,
    %cst_12 = arith.constant 0.000000e+00 : f32
    %17 = vector.broadcast %cst_12 : f32 to vector<4x1024xf32>
    %c36 = arith.constant 36 : index
    %c0_13 = arith.constant 0 : index
    %18 = vector.load %arg13[%c36, %c0_13] : memref<40x1024xf32, #tpu.memory_space<vmem>>, vector<4x1024xf32>
    tpu.vector_store %arg13[%c36, %c0_13], %17 {strides = array<i32>} : memref<40x1024xf32, #tpu.memory_space<vmem>>, vector<4x1024xf32>,
    %c0_14 = arith.constant 0 : index
    %c128 = arith.constant 128 : index
    %19 = vector.load %arg12[%c0_14, %c128] : memref<4x1280xf32, #tpu.memory_space<vmem>>, vector<4x1024xf32>
    tpu.vector_store %arg12[%c0_14, %c128], %12 {strides = array<i32>} : memref<4x1280xf32, #tpu.memory_space<vmem>>, vector<4x1024xf32>,
    %c0_15 = arith.constant 0 : index
    %c111 = arith.constant 111 : index
    %20 = vector.load %arg12[%c0_15, %c111] : memref<4x1280xf32, #tpu.memory_space<vmem>>, vector<4x1024xf32>
    %c0_16 = arith.constant 0 : index
    %c0_17 = arith.constant 0 : index
    %21 = vector.load %arg1[%c0_16, %c0_17] : memref<9x1024xf32, #tpu.memory_space<vmem>>, vector<1x1024xf32>
    %22 = vector.broadcast %21 : vector<1x1024xf32> to vector<4x1024xf32>
    %23 = arith.mulf %20, %22 : vector<4x1024xf32>
    %c0_18 = arith.constant 0 : index
    %c0_19 = arith.constant 0 : index
    %24 = vector.load %arg13[%c0_18, %c0_19] : memref<40x1024xf32, #tpu.memory_space<vmem>>, vector<4x1024xf32>
    tpu.vector_store %arg13[%c0_18, %c0_19], %23 {strides = array<i32>} : memref<40x1024xf32, #tpu.memory_space<vmem>>, vector<4x1024xf32>,
    %c0_20 = arith.constant 0 : index
    %c112 = arith.constant 112 : index
    %25 = vector.load %arg12[%c0_20, %c112] : memref<4x1280xf32, #tpu.memory_space<vmem>>, vector<4x1024xf32>
    %c1 = arith.constant 1 : index
    %c0_21 = arith.constant 0 : index
    %26 = vector.load %arg1[%c1, %c0_21] : memref<9x1024xf32, #tpu.memory_space<vmem>>, vector<1x1024xf32>
    %27 = vector.broadcast %26 : vector<1x1024xf32> to vector<4x1024xf32>
    %28 = arith.mulf %25, %27 : vector<4x1024xf32>
    %c4 = arith.constant 4 : index
    %c0_22 = arith.constant 0 : index
    %29 = vector.load %arg13[%c4, %c0_22] : memref<40x1024xf32, #tpu.memory_space<vmem>>, vector<4x1024xf32>
    tpu.vector_store %arg13[%c4, %c0_22], %28 {strides = array<i32>} : memref<40x1024xf32, #tpu.memory_space<vmem>>, vector<4x1024xf32>,
    %c0_23 = arith.constant 0 : index
    %c113 = arith.constant 113 : index
    %30 = vector.load %arg12[%c0_23, %c113] : memref<4x1280xf32, #tpu.memory_space<vmem>>, vector<4x1024xf32>
    %c2 = arith.constant 2 : index
    %c0_24 = arith.constant 0 : index
    %31 = vector.load %arg1[%c2, %c0_24] : memref<9x1024xf32, #tpu.memory_space<vmem>>, vector<1x1024xf32>
    %32 = vector.broadcast %31 : vector<1x1024xf32> to vector<4x1024xf32>
    %33 = arith.mulf %30, %32 : vector<4x1024xf32>
    %c8 = arith.constant 8 : index
    %c0_25 = arith.constant 0 : index
    %34 = vector.load %arg13[%c8, %c0_25] : memref<40x1024xf32, #tpu.memory_space<vmem>>, vector<4x1024xf32>
    tpu.vector_store %arg13[%c8, %c0_25], %33 {strides = array<i32>} : memref<40x1024xf32, #tpu.memory_space<vmem>>, vector<4x1024xf32>,
    %c0_26 = arith.constant 0 : index
    %c127 = arith.constant 127 : index
    %35 = vector.load %arg12[%c0_26, %c127] : memref<4x1280xf32, #tpu.memory_space<vmem>>, vector<4x1024xf32>
    %c3 = arith.constant 3 : index
    %c0_27 = arith.constant 0 : index
    %36 = vector.load %arg1[%c3, %c0_27] : memref<9x1024xf32, #tpu.memory_space<vmem>>, vector<1x1024xf32>
    %37 = vector.broadcast %36 : vector<1x1024xf32> to vector<4x1024xf32>
    %38 = arith.mulf %35, %37 : vector<4x1024xf32>
    %c12 = arith.constant 12 : index
    %c0_28 = arith.constant 0 : index
    %39 = vector.load %arg13[%c12, %c0_28] : memref<40x1024xf32, #tpu.memory_space<vmem>>, vector<4x1024xf32>
    tpu.vector_store %arg13[%c12, %c0_28], %38 {strides = array<i32>} : memref<40x1024xf32, #tpu.memory_space<vmem>>, vector<4x1024xf32>,
    %c0_29 = arith.constant 0 : index
    %c128_30 = arith.constant 128 : index
    %40 = vector.load %arg12[%c0_29, %c128_30] : memref<4x1280xf32, #tpu.memory_space<vmem>>, vector<4x1024xf32>
    %c4_31 = arith.constant 4 : index
    %c0_32 = arith.constant 0 : index
    %41 = vector.load %arg1[%c4_31, %c0_32] : memref<9x1024xf32, #tpu.memory_space<vmem>>, vector<1x1024xf32>
    %42 = vector.broadcast %41 : vector<1x1024xf32> to vector<4x1024xf32>
    %43 = arith.mulf %40, %42 : vector<4x1024xf32>
    %c16 = arith.constant 16 : index
    %c0_33 = arith.constant 0 : index
    %44 = vector.load %arg13[%c16, %c0_33] : memref<40x1024xf32, #tpu.memory_space<vmem>>, vector<4x1024xf32>
    tpu.vector_store %arg13[%c16, %c0_33], %43 {strides = array<i32>} : memref<40x1024xf32, #tpu.memory_space<vmem>>, vector<4x1024xf32>,
    %c0_34 = arith.constant 0 : index
    %c129 = arith.constant 129 : index
    %45 = vector.load %arg12[%c0_34, %c129] : memref<4x1280xf32, #tpu.memory_space<vmem>>, vector<4x1024xf32>
    %c5 = arith.constant 5 : index
    %c0_35 = arith.constant 0 : index
    %46 = vector.load %arg1[%c5, %c0_35] : memref<9x1024xf32, #tpu.memory_space<vmem>>, vector<1x1024xf32>
    %47 = vector.broadcast %46 : vector<1x1024xf32> to vector<4x1024xf32>
    %48 = arith.mulf %45, %47 : vector<4x1024xf32>
    %c20 = arith.constant 20 : index
    %c0_36 = arith.constant 0 : index
    %49 = vector.load %arg13[%c20, %c0_36] : memref<40x1024xf32, #tpu.memory_space<vmem>>, vector<4x1024xf32>
    tpu.vector_store %arg13[%c20, %c0_36], %48 {strides = array<i32>} : memref<40x1024xf32, #tpu.memory_space<vmem>>, vector<4x1024xf32>,
    %c0_37 = arith.constant 0 : index
    %c143 = arith.constant 143 : index
    %50 = vector.load %arg12[%c0_37, %c143] : memref<4x1280xf32, #tpu.memory_space<vmem>>, vector<4x1024xf32>
    %c6 = arith.constant 6 : index
    %c0_38 = arith.constant 0 : index
    %51 = vector.load %arg1[%c6, %c0_38] : memref<9x1024xf32, #tpu.memory_space<vmem>>, vector<1x1024xf32>
    %52 = vector.broadcast %51 : vector<1x1024xf32> to vector<4x1024xf32>
    %53 = arith.mulf %50, %52 : vector<4x1024xf32>
    %c24 = arith.constant 24 : index
    %c0_39 = arith.constant 0 : index
    %54 = vector.load %arg13[%c24, %c0_39] : memref<40x1024xf32, #tpu.memory_space<vmem>>, vector<4x1024xf32>
    tpu.vector_store %arg13[%c24, %c0_39], %53 {strides = array<i32>} : memref<40x1024xf32, #tpu.memory_space<vmem>>, vector<4x1024xf32>,
    %c0_40 = arith.constant 0 : index
    %c144 = arith.constant 144 : index
    %55 = vector.load %arg12[%c0_40, %c144] : memref<4x1280xf32, #tpu.memory_space<vmem>>, vector<4x1024xf32>
    %c7 = arith.constant 7 : index
    %c0_41 = arith.constant 0 : index
    %56 = vector.load %arg1[%c7, %c0_41] : memref<9x1024xf32, #tpu.memory_space<vmem>>, vector<1x1024xf32>
    %57 = vector.broadcast %56 : vector<1x1024xf32> to vector<4x1024xf32>
    %58 = arith.mulf %55, %57 : vector<4x1024xf32>
    %c28 = arith.constant 28 : index
    %c0_42 = arith.constant 0 : index
    %59 = vector.load %arg13[%c28, %c0_42] : memref<40x1024xf32, #tpu.memory_space<vmem>>, vector<4x1024xf32>
    tpu.vector_store %arg13[%c28, %c0_42], %58 {strides = array<i32>} : memref<40x1024xf32, #tpu.memory_space<vmem>>, vector<4x1024xf32>,
    %c0_43 = arith.constant 0 : index
    %c145 = arith.constant 145 : index
    %60 = vector.load %arg12[%c0_43, %c145] : memref<4x1280xf32, #tpu.memory_space<vmem>>, vector<4x1024xf32>
    %c8_44 = arith.constant 8 : index
    %c0_45 = arith.constant 0 : index
    %61 = vector.load %arg1[%c8_44, %c0_45] : memref<9x1024xf32, #tpu.memory_space<vmem>>, vector<1x1024xf32>
    %62 = vector.broadcast %61 : vector<1x1024xf32> to vector<4x1024xf32>
    %63 = arith.mulf %60, %62 : vector<4x1024xf32>
    %c32 = arith.constant 32 : index
    %c0_46 = arith.constant 0 : index
    %64 = vector.load %arg13[%c32, %c0_46] : memref<40x1024xf32, #tpu.memory_space<vmem>>, vector<4x1024xf32>
    tpu.vector_store %arg13[%c32, %c0_46], %63 {strides = array<i32>} : memref<40x1024xf32, #tpu.memory_space<vmem>>, vector<4x1024xf32>,
    %c0_47 = arith.constant 0 : index
    %c0_48 = arith.constant 0 : index
    %65 = vector.load %arg5[%c0_47, %c0_48] : memref<4x40xf32, #tpu.memory_space<vmem>>, vector<4x40xf32>
    %c0_49 = arith.constant 0 : index
    %c0_50 = arith.constant 0 : index
    %66 = vector.load %arg13[%c0_49, %c0_50] : memref<40x1024xf32, #tpu.memory_space<vmem>>, vector<40x1024xf32>
    %cst_51 = arith.constant dense<0.000000e+00> : vector<4x1024xf32>
    %67 = tpu.matmul %65, %66, %cst_51 {dimension_numbers = #tpu.dot_dimension_numbers<[1], [0], [0], [1], [0, 0, 1, 1], [], []>} : vector<4x40xf32>, vector<40x1024xf32>, vector<4x1024xf32> -> vector<4x1024xf32>
    %c0_52 = arith.constant 0 : index
    %c0_53 = arith.constant 0 : index
    %68 = vector.load %arg6[%c0_52, %c0_53] : memref<4x1xf32, #tpu.memory_space<vmem>>, vector<4x1xf32>
    %69 = vector.broadcast %68 : vector<4x1xf32> to vector<4x1024xf32>
    %70 = arith.addf %67, %69 : vector<4x1024xf32>
    %cst_54 = arith.constant 0.000000e+00 : f32
    %71 = vector.broadcast %cst_54 : f32 to vector<4x1024xf32>
    %72 = arith.subf %71, %70 : vector<4x1024xf32>
    %73 = math.exp %72 : vector<4x1024xf32>
    %cst_55 = arith.constant 1.000000e+00 : f32
    %74 = vector.broadcast %cst_55 : f32 to vector<4x1024xf32>
    %75 = arith.addf %74, %73 : vector<4x1024xf32>
    %76 = tpu.reciprocal %75 {approx = true} : vector<4x1024xf32> -> vector<4x1024xf32>
    %77 = arith.mulf %70, %76 : vector<4x1024xf32>
    %c0_56 = arith.constant 0 : index
    %c128_57 = arith.constant 128 : index
    %78 = vector.load %arg12[%c0_56, %c128_57] : memref<4x1280xf32, #tpu.memory_space<vmem>>, vector<4x1024xf32>
    tpu.vector_store %arg12[%c0_56, %c128_57], %77 {strides = array<i32>} : memref<4x1280xf32, #tpu.memory_space<vmem>>, vector<4x1024xf32>,
    %c0_58 = arith.constant 0 : index
    %c111_59 = arith.constant 111 : index
    %79 = vector.load %arg12[%c0_58, %c111_59] : memref<4x1280xf32, #tpu.memory_space<vmem>>, vector<4x1024xf32>
    %c0_60 = arith.constant 0 : index
    %c0_61 = arith.constant 0 : index
    %80 = vector.load %arg1[%c0_60, %c0_61] : memref<9x1024xf32, #tpu.memory_space<vmem>>, vector<1x1024xf32>
    %81 = vector.broadcast %80 : vector<1x1024xf32> to vector<4x1024xf32>
    %82 = arith.mulf %79, %81 : vector<4x1024xf32>
    %c0_62 = arith.constant 0 : index
    %c112_63 = arith.constant 112 : index
    %83 = vector.load %arg12[%c0_62, %c112_63] : memref<4x1280xf32, #tpu.memory_space<vmem>>, vector<4x1024xf32>
    %c1_64 = arith.constant 1 : index
    %c0_65 = arith.constant 0 : index
    %84 = vector.load %arg1[%c1_64, %c0_65] : memref<9x1024xf32, #tpu.memory_space<vmem>>, vector<1x1024xf32>
    %85 = vector.broadcast %84 : vector<1x1024xf32> to vector<4x1024xf32>
    %86 = arith.mulf %83, %85 : vector<4x1024xf32>
    %c0_66 = arith.constant 0 : index
    %c113_67 = arith.constant 113 : index
    %87 = vector.load %arg12[%c0_66, %c113_67] : memref<4x1280xf32, #tpu.memory_space<vmem>>, vector<4x1024xf32>
    %c2_68 = arith.constant 2 : index
    %c0_69 = arith.constant 0 : index
    %88 = vector.load %arg1[%c2_68, %c0_69] : memref<9x1024xf32, #tpu.memory_space<vmem>>, vector<1x1024xf32>
    %89 = vector.broadcast %88 : vector<1x1024xf32> to vector<4x1024xf32>
    %90 = arith.mulf %87, %89 : vector<4x1024xf32>
    %c0_70 = arith.constant 0 : index
    %c127_71 = arith.constant 127 : index
    %91 = vector.load %arg12[%c0_70, %c127_71] : memref<4x1280xf32, #tpu.memory_space<vmem>>, vector<4x1024xf32>
    %c3_72 = arith.constant 3 : index
    %c0_73 = arith.constant 0 : index
    %92 = vector.load %arg1[%c3_72, %c0_73] : memref<9x1024xf32, #tpu.memory_space<vmem>>, vector<1x1024xf32>
    %93 = vector.broadcast %92 : vector<1x1024xf32> to vector<4x1024xf32>
    %94 = arith.mulf %91, %93 : vector<4x1024xf32>
    %c0_74 = arith.constant 0 : index
    %c128_75 = arith.constant 128 : index
    %95 = vector.load %arg12[%c0_74, %c128_75] : memref<4x1280xf32, #tpu.memory_space<vmem>>, vector<4x1024xf32>
    %c4_76 = arith.constant 4 : index
    %c0_77 = arith.constant 0 : index
    %96 = vector.load %arg1[%c4_76, %c0_77] : memref<9x1024xf32, #tpu.memory_space<vmem>>, vector<1x1024xf32>
    %97 = vector.broadcast %96 : vector<1x1024xf32> to vector<4x1024xf32>
    %98 = arith.mulf %95, %97 : vector<4x1024xf32>
    %c0_78 = arith.constant 0 : index
    %c129_79 = arith.constant 129 : index
    %99 = vector.load %arg12[%c0_78, %c129_79] : memref<4x1280xf32, #tpu.memory_space<vmem>>, vector<4x1024xf32>
    %c5_80 = arith.constant 5 : index
    %c0_81 = arith.constant 0 : index
    %100 = vector.load %arg1[%c5_80, %c0_81] : memref<9x1024xf32, #tpu.memory_space<vmem>>, vector<1x1024xf32>
    %101 = vector.broadcast %100 : vector<1x1024xf32> to vector<4x1024xf32>
    %102 = arith.mulf %99, %101 : vector<4x1024xf32>
    %c0_82 = arith.constant 0 : index
    %c143_83 = arith.constant 143 : index
    %103 = vector.load %arg12[%c0_82, %c143_83] : memref<4x1280xf32, #tpu.memory_space<vmem>>, vector<4x1024xf32>
    %c6_84 = arith.constant 6 : index
    %c0_85 = arith.constant 0 : index
    %104 = vector.load %arg1[%c6_84, %c0_85] : memref<9x1024xf32, #tpu.memory_space<vmem>>, vector<1x1024xf32>
    %105 = vector.broadcast %104 : vector<1x1024xf32> to vector<4x1024xf32>
    %106 = arith.mulf %103, %105 : vector<4x1024xf32>
    %c0_86 = arith.constant 0 : index
    %c144_87 = arith.constant 144 : index
    %107 = vector.load %arg12[%c0_86, %c144_87] : memref<4x1280xf32, #tpu.memory_space<vmem>>, vector<4x1024xf32>
    %c7_88 = arith.constant 7 : index
    %c0_89 = arith.constant 0 : index
    %108 = vector.load %arg1[%c7_88, %c0_89] : memref<9x1024xf32, #tpu.memory_space<vmem>>, vector<1x1024xf32>
    %109 = vector.broadcast %108 : vector<1x1024xf32> to vector<4x1024xf32>
    %110 = arith.mulf %107, %109 : vector<4x1024xf32>
    %c0_90 = arith.constant 0 : index
    %c145_91 = arith.constant 145 : index
    %111 = vector.load %arg12[%c0_90, %c145_91] : memref<4x1280xf32, #tpu.memory_space<vmem>>, vector<4x1024xf32>
    %c8_92 = arith.constant 8 : index
    %c0_93 = arith.constant 0 : index
    %112 = vector.load %arg1[%c8_92, %c0_93] : memref<9x1024xf32, #tpu.memory_space<vmem>>, vector<1x1024xf32>
    %113 = vector.broadcast %112 : vector<1x1024xf32> to vector<4x1024xf32>
    %114 = arith.mulf %111, %113 : vector<4x1024xf32>
    %c0_94 = arith.constant 0 : index
    %c0_95 = arith.constant 0 : index
    %115 = vector.load %arg7[%c0_94, %c0_95] : memref<4x9xf32, #tpu.memory_space<vmem>>, vector<4x1xf32>
    %116 = vector.broadcast %115 : vector<4x1xf32> to vector<4x1024xf32>
    %117 = arith.mulf %82, %116 : vector<4x1024xf32>
    %c0_96 = arith.constant 0 : index
    %c1_97 = arith.constant 1 : index
    %118 = vector.load %arg7[%c0_96, %c1_97] : memref<4x9xf32, #tpu.memory_space<vmem>>, vector<4x1xf32>
    %119 = vector.broadcast %118 : vector<4x1xf32> to vector<4x1024xf32>
    %120 = arith.mulf %86, %119 : vector<4x1024xf32>
    %121 = arith.addf %117, %120 : vector<4x1024xf32>
    %c0_98 = arith.constant 0 : index
    %c2_99 = arith.constant 2 : index
    %122 = vector.load %arg7[%c0_98, %c2_99] : memref<4x9xf32, #tpu.memory_space<vmem>>, vector<4x1xf32>
    %123 = vector.broadcast %122 : vector<4x1xf32> to vector<4x1024xf32>
    %124 = arith.mulf %90, %123 : vector<4x1024xf32>
    %125 = arith.addf %121, %124 : vector<4x1024xf32>
    %c0_100 = arith.constant 0 : index
    %c3_101 = arith.constant 3 : index
    %126 = vector.load %arg7[%c0_100, %c3_101] : memref<4x9xf32, #tpu.memory_space<vmem>>, vector<4x1xf32>
    %127 = vector.broadcast %126 : vector<4x1xf32> to vector<4x1024xf32>
    %128 = arith.mulf %94, %127 : vector<4x1024xf32>
    %129 = arith.addf %125, %128 : vector<4x1024xf32>
    %c0_102 = arith.constant 0 : index
    %c4_103 = arith.constant 4 : index
    %130 = vector.load %arg7[%c0_102, %c4_103] : memref<4x9xf32, #tpu.memory_space<vmem>>, vector<4x1xf32>
    %131 = vector.broadcast %130 : vector<4x1xf32> to vector<4x1024xf32>
    %132 = arith.mulf %98, %131 : vector<4x1024xf32>
    %133 = arith.addf %129, %132 : vector<4x1024xf32>
    %c0_104 = arith.constant 0 : index
    %c5_105 = arith.constant 5 : index
    %134 = vector.load %arg7[%c0_104, %c5_105] : memref<4x9xf32, #tpu.memory_space<vmem>>, vector<4x1xf32>
    %135 = vector.broadcast %134 : vector<4x1xf32> to vector<4x1024xf32>
    %136 = arith.mulf %102, %135 : vector<4x1024xf32>
    %137 = arith.addf %133, %136 : vector<4x1024xf32>
    %c0_106 = arith.constant 0 : index
    %c6_107 = arith.constant 6 : index
    %138 = vector.load %arg7[%c0_106, %c6_107] : memref<4x9xf32, #tpu.memory_space<vmem>>, vector<4x1xf32>
    %139 = vector.broadcast %138 : vector<4x1xf32> to vector<4x1024xf32>
    %140 = arith.mulf %106, %139 : vector<4x1024xf32>
    %141 = arith.addf %137, %140 : vector<4x1024xf32>
    %c0_108 = arith.constant 0 : index
    %c7_109 = arith.constant 7 : index
    %142 = vector.load %arg7[%c0_108, %c7_109] : memref<4x9xf32, #tpu.memory_space<vmem>>, vector<4x1xf32>
    %143 = vector.broadcast %142 : vector<4x1xf32> to vector<4x1024xf32>
    %144 = arith.mulf %110, %143 : vector<4x1024xf32>
    %145 = arith.addf %141, %144 : vector<4x1024xf32>
    %c0_110 = arith.constant 0 : index
    %c8_111 = arith.constant 8 : index
    %146 = vector.load %arg7[%c0_110, %c8_111] : memref<4x9xf32, #tpu.memory_space<vmem>>, vector<4x1xf32>
    %147 = vector.broadcast %146 : vector<4x1xf32> to vector<4x1024xf32>
    %148 = arith.mulf %114, %147 : vector<4x1024xf32>
    %149 = arith.addf %145, %148 : vector<4x1024xf32>
    %c0_112 = arith.constant 0 : index
    %c0_113 = arith.constant 0 : index
    %150 = vector.load %arg8[%c0_112, %c0_113] : memref<4x1xf32, #tpu.memory_space<vmem>>, vector<4x1xf32>
    %151 = vector.broadcast %150 : vector<4x1xf32> to vector<4x1024xf32>
    %152 = arith.addf %149, %151 : vector<4x1024xf32>
    %cst_114 = arith.constant 0.000000e+00 : f32
    %153 = vector.broadcast %cst_114 : f32 to vector<4x1024xf32>
    %154 = arith.subf %153, %152 : vector<4x1024xf32>
    %155 = math.exp %154 : vector<4x1024xf32>
    %cst_115 = arith.constant 1.000000e+00 : f32
    %156 = vector.broadcast %cst_115 : f32 to vector<4x1024xf32>
    %157 = arith.addf %156, %155 : vector<4x1024xf32>
    %158 = tpu.reciprocal %157 {approx = true} : vector<4x1024xf32> -> vector<4x1024xf32>
    %159 = arith.mulf %152, %158 : vector<4x1024xf32>
    %c0_116 = arith.constant 0 : index
    %c0_117 = arith.constant 0 : index
    %160 = vector.load %arg14[%c0_116, %c0_117] : memref<8x1024xf32, #tpu.memory_space<vmem>>, vector<4x1024xf32>
    tpu.vector_store %arg14[%c0_116, %c0_117], %77 {strides = array<i32>} : memref<8x1024xf32, #tpu.memory_space<vmem>>, vector<4x1024xf32>,
    %c4_118 = arith.constant 4 : index
    %c0_119 = arith.constant 0 : index
    %161 = vector.load %arg14[%c4_118, %c0_119] : memref<8x1024xf32, #tpu.memory_space<vmem>>, vector<4x1024xf32>
    tpu.vector_store %arg14[%c4_118, %c0_119], %159 {strides = array<i32>} : memref<8x1024xf32, #tpu.memory_space<vmem>>, vector<4x1024xf32>,
    %c0_120 = arith.constant 0 : index
    %c0_121 = arith.constant 0 : index
    %162 = vector.load %arg9[%c0_120, %c0_121] : memref<8x8xf32, #tpu.memory_space<vmem>>, vector<8x8xf32>
    %c0_122 = arith.constant 0 : index
    %c0_123 = arith.constant 0 : index
    %163 = vector.load %arg14[%c0_122, %c0_123] : memref<8x1024xf32, #tpu.memory_space<vmem>>, vector<8x1024xf32>
    %cst_124 = arith.constant dense<0.000000e+00> : vector<8x1024xf32>
    %164 = tpu.matmul %162, %163, %cst_124 {dimension_numbers = #tpu.dot_dimension_numbers<[1], [0], [0], [1], [0, 0, 1, 1], [], []>, precision = #tpu.contract_precision<fp32>} : vector<8x8xf32>, vector<8x1024xf32>, vector<8x1024xf32> -> vector<8x1024xf32>
    %c0_125 = arith.constant 0 : index
    %c0_126 = arith.constant 0 : index
    %165 = vector.load %arg10[%c0_125, %c0_126] : memref<8x1xf32, #tpu.memory_space<vmem>>, vector<8x1xf32>
    %166 = vector.broadcast %165 : vector<8x1xf32> to vector<8x1024xf32>
    %167 = arith.addf %164, %166 : vector<8x1024xf32>
    %cst_127 = arith.constant 0.000000e+00 : f32
    %168 = vector.broadcast %cst_127 : f32 to vector<8x1024xf32>
    %169 = arith.subf %168, %167 : vector<8x1024xf32>
    %170 = math.exp %169 : vector<8x1024xf32>
    %cst_128 = arith.constant 1.000000e+00 : f32
    %171 = vector.broadcast %cst_128 : f32 to vector<8x1024xf32>
    %172 = arith.addf %171, %170 : vector<8x1024xf32>
    %173 = tpu.reciprocal %172 {approx = true} : vector<8x1024xf32> -> vector<8x1024xf32>
    %174 = arith.mulf %167, %173 : vector<8x1024xf32>
    %175 = arith.addf %174, %0 : vector<8x1024xf32>
    %c0_129 = arith.constant 0 : index
    %c0_130 = arith.constant 0 : index
    %176 = vector.load %arg11[%c0_129, %c0_130] : memref<8x1024xf32, #tpu.memory_space<vmem>>, vector<8x1024xf32>
    tpu.vector_store %arg11[%c0_129, %c0_130], %175 {strides = array<i32>} : memref<8x1024xf32, #tpu.memory_space<vmem>>, vector<8x1024xf32>,
    return
  }
  func.func @transform_0(%arg0: i32) -> (i32, i32) {
    %c0_i32 = arith.constant 0 : i32
    %c0_i32_0 = arith.constant 0 : i32
    %c0_i32_1 = arith.constant 0 : i32
    return %c0_i32, %c0_i32_0 : i32, i32
  }
  func.func @transform_1(%arg0: i32) -> (i32, i32) {
    %c0_i32 = arith.constant 0 : i32
    %c0_i32_0 = arith.constant 0 : i32
    return %c0_i32, %arg0 : i32, i32
  }
  func.func @transform_2(%arg0: i32) -> (i32, i32) {
    %c0_i32 = arith.constant 0 : i32
    %c0_i32_0 = arith.constant 0 : i32
    %c0_i32_1 = arith.constant 0 : i32
    return %c0_i32, %c0_i32_0 : i32, i32
  }
  func.func @transform_3(%arg0: i32) -> (i32, i32) {
    %c0_i32 = arith.constant 0 : i32
    %c0_i32_0 = arith.constant 0 : i32
    %c0_i32_1 = arith.constant 0 : i32
    return %c0_i32, %c0_i32_0 : i32, i32
  }
  func.func @transform_4(%arg0: i32) -> (i32, i32) {
    %c0_i32 = arith.constant 0 : i32
    %c0_i32_0 = arith.constant 0 : i32
    %c0_i32_1 = arith.constant 0 : i32
    return %c0_i32, %c0_i32_0 : i32, i32
  }
  func.func @transform_5(%arg0: i32) -> (i32, i32) {
    %c0_i32 = arith.constant 0 : i32
    %c0_i32_0 = arith.constant 0 : i32
    %c0_i32_1 = arith.constant 0 : i32
    return %c0_i32, %c0_i32_0 : i32, i32
  }
  func.func @transform_6(%arg0: i32) -> (i32, i32) {
    %c0_i32 = arith.constant 0 : i32
    %c0_i32_0 = arith.constant 0 : i32
    %c0_i32_1 = arith.constant 0 : i32
    return %c0_i32, %c0_i32_0 : i32, i32
  }
  func.func @transform_7(%arg0: i32) -> (i32, i32) {
    %c0_i32 = arith.constant 0 : i32
    %c0_i32_0 = arith.constant 0 : i32
    %c0_i32_1 = arith.constant 0 : i32
    return %c0_i32, %c0_i32_0 : i32, i32
  }
  func.func @transform_8(%arg0: i32) -> (i32, i32) {
    %c0_i32 = arith.constant 0 : i32
    %c0_i32_0 = arith.constant 0 : i32
    %c0_i32_1 = arith.constant 0 : i32
    return %c0_i32, %c0_i32_0 : i32, i32
  }
  func.func @transform_9(%arg0: i32) -> (i32, i32) {
    %c0_i32 = arith.constant 0 : i32
    %c0_i32_0 = arith.constant 0 : i32
    %c0_i32_1 = arith.constant 0 : i32
    return %c0_i32, %c0_i32_0 : i32, i32
  }
  func.func @transform_10(%arg0: i32) -> (i32, i32) {
    %c0_i32 = arith.constant 0 : i32
    %c0_i32_0 = arith.constant 0 : i32
    return %c0_i32, %arg0 : i32, i32
  }
}

</mosaic_0001>

<bundles_post_ra>
// kernel: ce_ghost_forward.1
= control target key start
LH: loop header
LB: loop body
LE: loop exit
PB: predicated region body
PF: predicated region fallthrough
CT: control target
= control target key end

     0   :  { %s7411_s13 = smov 0   ;;  %s9653_s0 = inlined_call_operand.vmem [shape: f32[9,1024], index: 0, kind: input, shape index: {}]   ;;  %s9654_s1 = inlined_call_operand.vmem [shape: f32[8,2048], index: 1, kind: input, shape index: {}]   ;;  %s9655_s2 = inlined_call_operand.vmem [shape: f32[4,8], index: 2, kind: input, shape index: {}]   ;;  %s9656_s3 = inlined_call_operand.vmem [shape: f32[4,1], index: 3, kind: input, shape index: {}]   ;;  %s9657_s4 = inlined_call_operand.vmem [shape: f32[4,40], index: 4, kind: input, shape index: {}]   ;;  %s9658_s5 = inlined_call_operand.vmem [shape: f32[4,1], index: 5, kind: input, shape index: {}]   ;;  %s9659_s6 = inlined_call_operand.vmem [shape: f32[4,9], index: 6, kind: input, shape index: {}]   ;;  %s9660_s7 = inlined_call_operand.vmem [shape: f32[4,1], index: 7, kind: input, shape index: {}]   ;;  %s9661_s8 = inlined_call_operand.vmem [shape: f32[8,8], index: 8, kind: input, shape index: {}]   ;;  %s9662_s9 = inlined_call_operand.vmem [shape: f32[8,1], index: 9, kind: input, shape index: {}]   ;;  %s9663_s10 = inlined_call_operand.vmem [shape: f32[8,2048], index: 10, kind: output, shape index: {}]  }
   0x1 LB: > { %s6981_s14 = sadd.s32 4294967295, %s7330_s13   ;;  %p6985_p0 = scmp.ge.s32.totalorder %s7330_s13, 1  ;;  %s7330_s13 = sphi %s7411_s13, %s20_s13  }
   0x2   : > { %p313_p1 = scmp.lt.s32.totalorder %s7330_s13, 3 }
   0x4   : > { %p314_p2 = pnand %p6985_p0, %p313_p1 }
   0x6   : > { %317 = sbr.rel (%p314_p2) target bundleno = 1494 (0x5d6), region = 60 }
   0xd   : > { %s6986_s15 = sshll.u32 %s6981_s14, 3  ;;  %v371_v0 = vld [vmem:[%s9655_s2] sm:$0xf]  ;;  %vm378_vm0 = vcmask 64512   ;;  %v2329_v1 = vlaneseq  ;;  %v9664_v2 = vmov 0.0   ;;  %v9666_v6 = vmov 0  }
   0xe   : > { %p352_p3 = scmp.lt.s32.totalorder %s6986_s15, 15  ;;  %448 = vmatprep.mubr.f32.mxu0 %v9664_v2  ;;  %2290 = vst [vmem:[#allocation2] sm:$0xf] %v9664_v2  ;;  %2291 = vst [vmem:[#allocation2 + $0x24] sm:$0xf] %v9664_v2  ;;  %913 = vmatprep.mubr.f32.mxu1 %v9664_v2  ;;  %v380_v3 = vsel %vm378_vm0, %v371_v0, 0 }
   0xf   : > { %2292 = vst [vmem:[#allocation3 + $0x100] sm:$0xf0] %v9664_v2  ;;  %2293 = vst [vmem:[#allocation3 + $0x108] sm:$0xf0] %v9664_v2  ;;  %v372_v4 = vld [vmem:[%s9656_s3] sm:$0xf]  ;;  %7188 = vset.pattern.permute.xlu0 %v9666_v6  ;;  %7189 = vset.pattern.permute.xlu1 %v9666_v6 }
  0x10   : > { %2294 = vst [vmem:[#allocation3 + $0x110] sm:$0xf0] %v9664_v2  ;;  %2295 = vst [vmem:[#allocation3 + $0x118] sm:$0xf0] %v9664_v2  ;;  %v7438_v5 = vand.u32 4294901760, %v380_v3  ;;  %v7444_v8 = vshrl.u32 %v2329_v1, 7  ;;  %375 = vperm.xlu0 %7188, %v372_v4  }
  0x11   : > { %2296 = vst [vmem:[#allocation3 + $0x120] sm:$0xf0] %v9664_v2  ;;  %2297 = vst [vmem:[#allocation3 + $0x128] sm:$0xf0] %v9664_v2  ;;  %s9724_s15 = smov (!%p352_p3, %s6986_s15), 15  ;;  %s7334_s12 = smov 111  }
  0x12   : > { %2298 = vst [vmem:[#allocation3 + $0x130] sm:$0xf0] %v9664_v2  ;;  %2299 = vst [vmem:[#allocation3 + $0x138] sm:$0xf0] %v9664_v2  ;;  %v7454_v10 = vsub.f32 %v380_v3, %v7438_v5  ;;  %v7459_v12 = vsub.s32 2, %v7444_v8  ;;  %v7462_v13 = vsub.s32 3, %v7444_v8 }
  0x13   : > { %v2325_v7 = vld [vmem:[%s9653_s0] ss:$8 sm:$0xf]  ;;  %9691 = vst [vmem:[#allocation5_spill] sm:$0xff] %v7444_v8  ;;  %s6987_s24 = sshll.u32 %s9724_s15, 3  ;;  %v7526_v38 = vsub.s32 0, %v7444_v8 }
  0x14   : > { %v2326_v9 = vld [vmem:[%s9653_s0] ss:$8 sm:$0xf0]  ;;  %9692 = vst [vmem:[#allocation6_spill] sm:$0xff] %v7462_v13  ;;  %s7470_s27 = scalar_lea.vmem %s9654_s1, %s6987_s24  ;;  %v7473_v14 = vand.u32 4294901760, %v7454_v10  ;;  %v7529_v39 = vsub.s32 1, %v7444_v8 }
  0x15   : > { %v7456_v11 = vor.u32 %v2326_v9, %v2325_v7  ;;  %v364_v17 = vld [vmem:[%s7470_s27 + $0x8] sm:$0xff]  ;;  %v366_v18 = vld [vmem:[%s7470_s27 + $0x18] sm:$0xff]  ;;  %v363_v19 = vld [vmem:[%s7470_s27] sm:$0xff]  ;;  %9693 = vst [vmem:[#allocation7_spill] sm:$0xff] %v7526_v38  ;;  %v7551_v53 = vsub.s32 4, %v7444_v8  ;;  %v7556_v54 = vsub.s32 5, %v7444_v8 }
  0x16   : > { %v7482_v20 = vand.u32 4294901760, %v364_v17  ;;  %v7484_v21 = vand.u32 4294901760, %v366_v18  ;;  %v7486_v22 = vand.u32 4294901760, %v363_v19  ;;  %v365_v23 = vld [vmem:[%s7470_s27 + $0x10] sm:$0xff]  ;;  %v452_v24 = vsub.f32 %v7454_v10, %v7473_v14  ;;  %9694 = vst [vmem:[#allocation8_spill] sm:$0xff] %v7529_v39  ;;  %s7335_s19 = smov 112  }
  0x17   : > { %v2340_v15 = vrot.slane %v7456_v11, %v7459_v12  ;;  %v2344_v16 = vrot.slane %v7456_v11, %v7462_v13  ;;  %v7491_v25 = vand.u32 4294901760, %v365_v23  ;;  %v6990_v32 = vld [vmem:[%s9653_s0 + $0x1] ss:$8 sm:$0xf]  ;;  %v2332_v49 = vrot.slane %v7456_v11, %v7526_v38  ;;  %9695 = vst [vmem:[#allocation9_spill] sm:$0xff] %v7551_v53  ;;  %9696 = vst [vmem:[#allocation10_spill] sm:$0xff] %v7556_v54 }
  0x18   : > { %383 = vmatprep.subr.mxu0 %v7482_v20  ;;  %848 = vmatprep.subr.mxu1 %v7484_v21  ;;  %v7496_v27 = vsub.f32 %v363_v19, %v7486_v22  ;;  %v7498_v28 = vand.u32 4294901760, %v452_v24  ;;  %v7501_v29 = vsub.f32 %v364_v17, %v7482_v20  ;;  %v7504_v30 = vsub.f32 %v366_v18, %v7484_v21  ;;  %v6991_v33 = vld [vmem:[%s9653_s0 + $0x1] ss:$8 sm:$0xf0]  ;;  %s7336_s25 = smov 113   ;;  %s7337_s26 = smov 127  }
  0x19   : > { %v2362_v26 = vcombine.low %v2340_v15, %v2344_v16  ;;  %385 = vmatpush1.msra.mxu0 %v7486_v22  ;;  %850 = vmatpush1.msra.mxu1 %v7491_v25  ;;  %v7509_v31 = vsub.f32 %v365_v23, %v7491_v25  ;;  %v7537_v43 = vor.u32 %v6991_v33, %v6990_v32  ;;  %v6992_v59 = vld [vmem:[%s9653_s0 + $0x2] ss:$8 sm:$0xf]  ;;  %v6994_v15 = vld [vmem:[%s9653_s0 + $0x3] ss:$8 sm:$0xf] }
  0x1a   : > { %454 = vmatmul.mubr.f32.vlgmr.msra.gmra.mrb[0].mxu0 %v7498_v28  ;;  %919 = vmatmul.mubr.f32.vlgmr.msra.gmra.mrb[0].mxu1 %v7498_v28  ;;  %v462_v34 = vand.u32 4294901760, %v7501_v29  ;;  %v927_v35 = vand.u32 4294901760, %v7504_v30  ;;  %v468_v36 = vand.u32 4294901760, %v7496_v27  ;;  %v2336_v50 = vrot.slane %v7456_v11, %v7529_v39  ;;  %v6993_v60 = vld [vmem:[%s9653_s0 + $0x2] ss:$8 sm:$0xf0] }
  0x1b   : > { %534 = vmatprep.mubr.f32.mxu0 %v9664_v2  ;;  %v933_v37 = vand.u32 4294901760, %v7509_v31  ;;  %999 = vmatprep.mubr.f32.mxu1 %v9664_v2  ;;  %v2461_v51 = vrot.slane %v7537_v43, %v7526_v38  ;;  %v2465_v52 = vrot.slane %v7537_v43, %v7529_v39  ;;  %v2477_v57 = vrot.slane %v7537_v43, %v7551_v53  ;;  %v368_v3 = vld [vmem:[%s7470_s27 + $0x28] sm:$0xff]  ;;  %v370_v4 = vld [vmem:[%s7470_s27 + $0x38] sm:$0xff]  ;;  %v367_v19 = vld [vmem:[%s7470_s27 + $0x20] sm:$0xff]  ;;  %s7338_s14 = smov 1   ;;  %s7339_s29 = smov 15  }
  0x1c   : > { %v463_v40 = vsub.f32 %v7501_v29, %v462_v34  ;;  %v928_v41 = vsub.f32 %v7504_v30, %v927_v35  ;;  %v469_v42 = vsub.f32 %v7496_v27, %v468_v36  ;;  %2367 = vrot.lane.b32.xlu1 %v2362_v26, %s7334_s12  ;;  %v2361_v56 = vcombine.low %v2332_v49, %v2336_v50  ;;  %v6995_v16 = vld [vmem:[%s9653_s0 + $0x3] ss:$8 sm:$0xf0]  ;;  %s7340_s30 = smov 16   ;;  %s7341_s20 = smov 17  }
  0x1d   : > { %v934_v44 = vsub.f32 %v7509_v31, %v933_v37  ;;  %v2490_v55 = vcombine.low %v2461_v51, %v2465_v52  ;;  %v2481_v58 = vrot.slane %v7537_v43, %v7556_v54  ;;  %v2469_v61 = vrot.slane %v7537_v43, %v7459_v12  ;;  %v369_v26 = vld [vmem:[%s7470_s27 + $0x30] sm:$0xff]  ;;  %s7351_s28 = smov 96   ;;  %s7352_s11 = smov 126  }
  0x1e   : > { %v464_v45 = vand.u32 4294901760, %v463_v40  ;;  %v929_v46 = vand.u32 4294901760, %v928_v41  ;;  %v470_v47 = vand.u32 4294901760, %v469_v42  ;;  %v2473_v62 = vrot.slane %v7537_v43, %v7462_v13  ;;  %2365 = vrot.lane.b32.xlu0 %v2361_v56, %s7334_s12  ;;  %v6998_v56 = vld [vmem:[%s9653_s0 + $0x5] ss:$8 sm:$0xf] }
  0x1f   : > { %v935_v48 = vand.u32 4294901760, %v934_v44  ;;  %v7582_v63 = vor.u32 %v6993_v60, %v6992_v59  ;;  %v2492_v0 = vcombine.low %v2477_v57, %v2481_v58  ;;  %v7609_v23 = vand.u32 4294901760, %v368_v3  ;;  %v6999_v60 = vld [vmem:[%s9653_s0 + $0x5] ss:$8 sm:$0xf0]  ;;  %s7353_s16 = smov 110  }
  0x20   : > { %465 = vmatprep.subr.mxu0 %v464_v45  ;;  %930 = vmatprep.subr.mxu1 %v929_v46  ;;  %v2491_v1 = vcombine.low %v2469_v61, %v2473_v62  ;;  %v7611_v24 = vand.u32 4294901760, %v370_v4  ;;  %v7621_v33 = vand.u32 4294901760, %v367_v19  ;;  %v2348_v52 = vrot.slane %v7456_v11, %v7551_v53  ;;  %s7354_s17 = smov 95  }
  0x21   : > { %471 = vmatpush1.msra.mxu0 %v470_v47  ;;  %936 = vmatpush1.msra.mxu1 %v935_v48  ;;  %v2598_v7 = vrot.slane %v7582_v63, %v7459_v12  ;;  %v2602_v9 = vrot.slane %v7582_v63, %v7462_v13  ;;  %v2590_v17 = vrot.slane %v7582_v63, %v7526_v38  ;;  %vm2379_vm1 = vcmask 1043456  }
  0x22   : > { %536 = vmatmul.mubr.f32.vlgmr.msra.gmra.mrb[0].mxu0 %v7438_v5  ;;  %1001 = vmatmul.mubr.f32.vlgmr.msra.gmra.mrb[0].mxu1 %v7438_v5  ;;  %v2594_v18 = vrot.slane %v7582_v63, %v7529_v39  ;;  %vm2506_vm2 = vcmask 916480   ;;  %vm2377_vm3 = vcmask 908288   ;;  %vm2635_vm4 = vcmask 924672  }
  0x23   : > { %544 = vmatprep.subr.mxu0 %v7501_v29  ;;  %1009 = vmatprep.subr.mxu1 %v7504_v30  ;;  %v7614_v29 = vor.u32 %v6995_v16, %v6994_v15  ;;  %v2620_v30 = vcombine.low %v2598_v7, %v2602_v9  ;;  %v2610_v7 = vrot.slane %v7582_v63, %v7556_v54  ;;  %vm2763_vm5 = vcmask 1039360  }
  0x24   : > { %547 = vmatpush1.msra.mxu0 %v7496_v27  ;;  %610 = vmatprep.mubr.f32.mxu0 %v9664_v2  ;;  %v2619_v32 = vcombine.low %v2590_v17, %v2594_v18  ;;  %v7634_v27 = vsub.f32 %v370_v4, %v7611_v24  ;;  %v7000_v18 = vld [vmem:[%s9653_s0 + $0x6] ss:$8 sm:$0xf]  ;;  %vm2680_vm6 = vcmask 121856   ;;  %vm2423_vm7 = vcmask 138240  }
  0x25   : > { %1012 = vmatpush1.msra.mxu1 %v7509_v31  ;;  %1075 = vmatprep.mubr.f32.mxu1 %v9664_v2  ;;  %v2730_v31 = vrot.slane %v7614_v29, %v7462_v13  ;;  %v2734_v57 = vrot.slane %v7614_v29, %v7551_v53  ;;  %v2738_v58 = vrot.slane %v7614_v29, %v7556_v54  ;;  %vm2809_vm8 = vcmask 7168  }
  0x26   : > { %620 = vmatprep.subr.mxu0 %v7482_v20  ;;  %1085 = vmatprep.subr.mxu1 %v7484_v21  ;;  %v1857_v42 = vand.u32 4294901760, %v7634_v27  ;;  %vm2552_vm9 = vcmask 130048   ;;  %vm3460_vm10 = vcmask 326656   ;;  %vm4539_vm11 = vcmask 1031168  }
  0x27   : > { %2494 = vrot.lane.b32.xlu1 %v2490_v55, %s7335_s19  ;;  %2496 = vrot.lane.b32.xlu0 %v2491_v1, %s7335_s19  ;;  %v2352_v55 = vrot.slane %v7456_v11, %v7556_v54  ;;  %v2749_v1 = vcombine.low %v2734_v57, %v2738_v58  ;;  %v7004_v57 = vld [vmem:[%s9653_s0 + $0x40] ss:$8 sm:$0xf]  ;;  %vm4694_vm12 = vcmask 900096   ;;  %vm4748_vm13 = vcmask 785408  }
  0x28   : > { %vm4802_vm14 = vcmask 777216   ;;  %vm4856_vm15 = vcmask 769024  }
  0x29   : > { %v2363_v62 = vcombine.low %v2348_v52, %v2352_v55 }
  0x2a   : > { %613 = vmatmul.mubr.f32.vlgmr.msra.gmra.mrb[0].mxu0 %v7454_v10  ;;  %1078 = vmatmul.mubr.f32.vlgmr.msra.gmra.mrb[0].mxu1 %v7454_v10 }
  0x2b   : > { %622 = vmatpush1.msra.mxu0 %v7486_v22  ;;  %685 = vmatprep.mubr.f32.mxu0 %v9664_v2 }
  0x2c   : > { %1087 = vmatpush1.msra.mxu1 %v7491_v25  ;;  %1150 = vmatprep.mubr.f32.mxu1 %v9664_v2 }
  0x2d   : > { %698 = vmatprep.subr.mxu0 %v462_v34  ;;  %1163 = vmatprep.subr.mxu1 %v927_v35  ;;  %v7626_v34 = vand.u32 4294901760, %v369_v26  ;;  %v7631_v35 = vsub.f32 %v368_v3, %v7609_v23  ;;  %v2606_v3 = vrot.slane %v7582_v63, %v7551_v53 }
  0x2e   : > { %2498 = vrot.lane.b32.xlu1 %v2492_v0, %s7335_s19  ;;  %2623 = vrot.lane.b32.xlu0 %v2619_v32, %s7336_s25  ;;  %v7700_v0 = vor.u32 %v6999_v60, %v6998_v56 }
  0x2f   : > { %v7650_v40 = vsub.f32 %v369_v26, %v7626_v34  ;;  %v1392_v41 = vand.u32 4294901760, %v7631_v35  ;;  %v2621_v15 = vcombine.low %v2606_v3, %v2610_v7 }
  0x30   : > { %v2924_v4 = vrot.slane %v7700_v0, %v7529_v39  ;;  %v2936_v16 = vrot.slane %v7700_v0, %v7551_v53  ;;  %v2940_v17 = vrot.slane %v7700_v0, %v7556_v54  ;;  %v2928_v26 = vrot.slane %v7700_v0, %v7459_v12 }
  0x31   : > { %v1863_v47 = vand.u32 4294901760, %v7650_v40  ;;  %v1393_v48 = vsub.f32 %v7631_v35, %v1392_v41 }
  0x32   : > { %689 = vmatmul.mubr.f32.vlgmr.msra.gmra.mrb[0].mxu0 %v7473_v14  ;;  %1154 = vmatmul.mubr.f32.vlgmr.msra.gmra.mrb[0].mxu1 %v7473_v14 }
  0x33   : > { %702 = vmatpush1.msra.mxu0 %v468_v36  ;;  %765 = vmatprep.mubr.f32.mxu0 %v9664_v2  ;;  %v2726_v36 = vrot.slane %v7614_v29, %v7459_v12  ;;  %v1864_v49 = vsub.f32 %v7650_v40, %v1863_v47  ;;  %v1394_v50 = vand.u32 4294901760, %v1393_v48 }
  0x34   : > { %1167 = vmatpush1.msra.mxu1 %v933_v37  ;;  %1230 = vmatprep.mubr.f32.mxu1 %v9664_v2  ;;  %v7647_v37 = vsub.f32 %v367_v19, %v7621_v33  ;;  %v7001_v19 = vld [vmem:[%s9653_s0 + $0x6] ss:$8 sm:$0xf0] }
  0x35   : > { %774 = vmatprep.subr.mxu0 %v7482_v20  ;;  %1239 = vmatprep.subr.mxu1 %v7484_v21  ;;  %v2718_v20 = vrot.slane %v7614_v29, %v7526_v38  ;;  %v2722_v21 = vrot.slane %v7614_v29, %v7529_v39  ;;  %v2748_v44 = vcombine.low %v2726_v36, %v2730_v31  ;;  %v1865_v61 = vand.u32 4294901760, %v1864_v49 }
  0x36   : > { %2625 = vrot.lane.b32.xlu1 %v2620_v30, %s7336_s25  ;;  %v1398_v46 = vand.u32 4294901760, %v7647_v37  ;;  %v2932_v30 = vrot.slane %v7700_v0, %v7462_v13  ;;  %v7740_v32 = vor.u32 %v7001_v19, %v7000_v18  ;;  %v2951_v36 = vcombine.low %v2936_v16, %v2940_v17 }
  0x37   : > { %v2747_v45 = vcombine.low %v2718_v20, %v2722_v21  ;;  %v7003_v21 = vld [vmem:[%s9653_s0 + $0x7] ss:$8 sm:$0xf0] }
  0x38   : > { %v2950_v31 = vcombine.low %v2928_v26, %v2932_v30  ;;  %v3055_v20 = vrot.slane %v7740_v32, %v7459_v12 }
  0x39   : > { %2751 = vrot.lane.b32.xlu0 %v2747_v45, %s7337_s26 }
  0x3a   : > { %767 = vmatmul.mubr.f32.vlgmr.msra.gmra.mrb[0].mxu0 %v7438_v5  ;;  %1232 = vmatmul.mubr.f32.vlgmr.msra.gmra.mrb[0].mxu1 %v7438_v5 }
  0x3b   : > { %776 = vmatpush1.msra.mxu0 %v7486_v22  ;;  %839 = vmatprep.mubr.f32.mxu0 %v9664_v2  ;;  %v1858_v22 = vsub.f32 %v7634_v27, %v1857_v42 }
  0x3c   : > { %1241 = vmatpush1.msra.mxu1 %v7491_v25  ;;  %1304 = vmatprep.mubr.f32.mxu1 %v9664_v2  ;;  %v1399_v25 = vsub.f32 %v7647_v37, %v1398_v46 }
  0x3d   : > { %1313 = vmatprep.subr.mxu0 %v7609_v23  ;;  %1778 = vmatprep.subr.mxu1 %v7611_v24  ;;  %v1859_v51 = vand.u32 4294901760, %v1858_v22 }
  0x3e   : > { %2753 = vrot.lane.b32.xlu1 %v2748_v44, %s7337_s26  ;;  %v1400_v59 = vand.u32 4294901760, %v1399_v25  ;;  %2755 = vrot.lane.b32.xlu0 %v2749_v1, %s7337_s26 }
  0x42   : > { %841 = vmatmul.mubr.f32.vlgmr.msra.gmra.mrb[0].mxu0 %v7438_v5  ;;  %1306 = vmatmul.mubr.f32.vlgmr.msra.gmra.mrb[0].mxu1 %v7438_v5 }
  0x43   : > { %1315 = vmatpush1.msra.mxu0 %v7621_v33  ;;  %1378 = vmatprep.mubr.f32.mxu0 %v9664_v2 }
  0x44   : > { %1780 = vmatpush1.msra.mxu1 %v7626_v34  ;;  %1843 = vmatprep.mubr.f32.mxu1 %v9664_v2 }
  0x45   : > { %1395 = vmatprep.subr.mxu0 %v1394_v50  ;;  %1860 = vmatprep.subr.mxu1 %v1859_v51 }
  0x46   : > { %1384 = vmatmul.mubr.f32.vlgmr.msra.gmra.mrb[2].mxu0 %v7498_v28  ;;  %1849 = vmatmul.mubr.f32.vlgmr.msra.gmra.mrb[2].mxu1 %v7498_v28  ;;  %v2920_v28 = vrot.slane %v7700_v0, %v7526_v38 }
  0x47   : > { %1401 = vmatpush1.msra.mxu0 %v1400_v59  ;;  %1464 = vmatprep.mubr.f32.mxu0 %v9664_v2 }
  0x48   : > { %1866 = vmatpush1.msra.mxu1 %v1865_v61  ;;  %1929 = vmatprep.mubr.f32.mxu1 %v9664_v2  ;;  %v2949_v9 = vcombine.low %v2920_v28, %v2924_v4 }
  0x49   : > { %1474 = vmatprep.subr.mxu0 %v7631_v35  ;;  %1939 = vmatprep.subr.mxu1 %v7634_v27  ;;  %v3059_v35 = vrot.slane %v7740_v32, %v7462_v13  ;;  %v3047_v27 = vrot.slane %v7740_v32, %v7526_v38 }
  0x4a   : > { %2369 = vrot.lane.b32.xlu1 %v2363_v62, %s7334_s12  ;;  %2627 = vrot.lane.b32.xlu0 %v2621_v15, %s7336_s25 }
  0x4b   : > { %v3077_v44 = vcombine.low %v3055_v20, %v3059_v35 }
  0x4e   : > { %1466 = vmatmul.mubr.f32.vlgmr.msra.gmra.mrb[2].mxu0 %v7438_v5  ;;  %1931 = vmatmul.mubr.f32.vlgmr.msra.gmra.mrb[2].mxu1 %v7438_v5 }
  0x4f   : > { %1477 = vmatpush1.msra.mxu0 %v7647_v37  ;;  %1540 = vmatprep.mubr.f32.mxu0 %v9664_v2 }
  0x50   : > { %1942 = vmatpush1.msra.mxu1 %v7650_v40  ;;  %2005 = vmatprep.mubr.f32.mxu1 %v9664_v2  ;;  %v3063_v40 = vrot.slane %v7740_v32, %v7551_v53 }
  0x51   : > { %1550 = vmatprep.subr.mxu0 %v7609_v23  ;;  %2015 = vmatprep.subr.mxu1 %v7611_v24 }
  0x52   : > { %2953 = vrot.lane.b32.xlu1 %v2949_v9, %s7338_s14  ;;  %2955 = vrot.lane.b32.xlu0 %v2950_v31, %s7338_s14 }
  0x56   : > { %1543 = vmatmul.mubr.f32.vlgmr.msra.gmra.mrb[2].mxu0 %v7454_v10  ;;  %2008 = vmatmul.mubr.f32.vlgmr.msra.gmra.mrb[2].mxu1 %v7454_v10  ;;  %v7002_v10 = vld [vmem:[%s9653_s0 + $0x7] ss:$8 sm:$0xf] }
  0x57   : > { %1552 = vmatpush1.msra.mxu0 %v7621_v33  ;;  %1615 = vmatprep.mubr.f32.mxu0 %v9664_v2 }
  0x58   : > { %2017 = vmatpush1.msra.mxu1 %v7626_v34  ;;  %2080 = vmatprep.mubr.f32.mxu1 %v9664_v2 }
  0x59   : > { %1628 = vmatprep.subr.mxu0 %v1392_v41  ;;  %2093 = vmatprep.subr.mxu1 %v1857_v42  ;;  %v3051_v41 = vrot.slane %v7740_v32, %v7529_v39  ;;  %v7768_v42 = vor.u32 %v7003_v21, %v7002_v10 }
  0x5a   : > { %2957 = vrot.lane.b32.xlu1 %v2951_v36, %s7338_s14 }
  0x5b   : > { %v3076_v45 = vcombine.low %v3047_v27, %v3051_v41  ;;  %v3181_v48 = vrot.slane %v7768_v42, %v7459_v12  ;;  %v3173_v37 = vrot.slane %v7768_v42, %v7526_v38  ;;  %v3189_v49 = vrot.slane %v7768_v42, %v7551_v53 }
  0x5c   : > { %v3193_v50 = vrot.slane %v7768_v42, %v7556_v54 }
  0x5d   : > { %3080 = vrot.lane.b32.xlu0 %v3076_v45, %s7339_s29 }
  0x5e   : > { %1619 = vmatmul.mubr.f32.vlgmr.msra.gmra.mrb[2].mxu0 %v7473_v14  ;;  %2084 = vmatmul.mubr.f32.vlgmr.msra.gmra.mrb[2].mxu1 %v7473_v14  ;;  %v3185_v14 = vrot.slane %v7768_v42, %v7462_v13  ;;  %v3204_v56 = vcombine.low %v3189_v49, %v3193_v50 }
  0x5f   : > { %1632 = vmatpush1.msra.mxu0 %v1398_v46  ;;  %1695 = vmatprep.mubr.f32.mxu0 %v9664_v2  ;;  %v3177_v46 = vrot.slane %v7768_v42, %v7529_v39 }
  0x60   : > { %2097 = vmatpush1.msra.mxu1 %v1863_v47  ;;  %2160 = vmatprep.mubr.f32.mxu1 %v9664_v2  ;;  %v7798_v47 = vsub.s32 7, %v7444_v8  ;;  %v3203_v22 = vcombine.low %v3181_v48, %v3185_v14 }
  0x61   : > { %1704 = vmatprep.subr.mxu0 %v7609_v23  ;;  %2169 = vmatprep.subr.mxu1 %v7611_v24  ;;  %v3067_v23 = vrot.slane %v7740_v32, %v7556_v54  ;;  %v7795_v24 = vsub.s32 6, %v7444_v8  ;;  %v3202_v25 = vcombine.low %v3173_v37, %v3177_v46 }
  0x62   : > { %3082 = vrot.lane.b32.xlu1 %v3077_v44, %s7339_s29  ;;  %v2489_v55 = vrot.slane %v7537_v43, %v7798_v47  ;;  %v2746_v59 = vrot.slane %v7614_v29, %v7798_v47  ;;  %v2948_v9 = vrot.slane %v7700_v0, %v7798_v47  ;;  %v3201_v26 = vrot.slane %v7768_v42, %v7798_v47 }
  0x63   : > { %v3078_v51 = vcombine.low %v3063_v40, %v3067_v23  ;;  %v2485_v52 = vrot.slane %v7537_v43, %v7795_v24  ;;  %3206 = vrot.lane.b32.xlu0 %v3202_v25, %s7340_s30  ;;  %v7005_v43 = vld [vmem:[%s9653_s0 + $0x40] ss:$8 sm:$0xf0]  ;;  %v2742_v58 = vrot.slane %v7614_v29, %v7795_v24  ;;  %v2614_v60 = vrot.slane %v7582_v63, %v7795_v24 }
  0x64   : > { %v3295_v61 = vor.u32 %v7005_v43, %v7004_v57  ;;  %v3197_v19 = vrot.slane %v7768_v42, %v7795_v24  ;;  %v3071_v30 = vrot.slane %v7740_v32, %v7795_v24  ;;  %v3075_v31 = vrot.slane %v7740_v32, %v7798_v47 }
  0x65   : > { %v2493_v62 = vcombine.low %v2485_v52, %v2489_v55  ;;  %v2750_v29 = vcombine.low %v2742_v58, %v2746_v59 }
  0x66   : > { %1697 = vmatmul.mubr.f32.vlgmr.msra.gmra.mrb[2].mxu0 %v7438_v5  ;;  %2162 = vmatmul.mubr.f32.vlgmr.msra.gmra.mrb[2].mxu1 %v7438_v5  ;;  %v3308_v28 = vrot.slane %v3295_v61, %v7459_v12  ;;  %v3300_v4 = vrot.slane %v3295_v61, %v7526_v38  ;;  %v3304_v7 = vrot.slane %v3295_v61, %v7529_v39 }
  0x67   : > { %1706 = vmatpush1.msra.mxu0 %v7621_v33  ;;  %1769 = vmatprep.mubr.f32.mxu0 %v9664_v2  ;;  %v2356_v33 = vrot.slane %v7456_v11, %v7795_v24  ;;  %v3316_v15 = vrot.slane %v3295_v61, %v7551_v53  ;;  %v3320_v18 = vrot.slane %v3295_v61, %v7556_v54 }
  0x68   : > { %2171 = vmatpush1.msra.mxu1 %v7626_v34  ;;  %2234 = vmatprep.mubr.f32.mxu1 %v9664_v2  ;;  %v2360_v34 = vrot.slane %v7456_v11, %v7798_v47  ;;  %v2618_v11 = vrot.slane %v7582_v63, %v7798_v47  ;;  %v3312_v63 = vrot.slane %v3295_v61, %v7462_v13 }
  0x69   : > { %3208 = vrot.lane.b32.xlu1 %v3203_v22, %s7340_s30  ;;  %3210 = vrot.lane.b32.xlu0 %v3204_v56, %s7340_s30  ;;  %v3329_v17 = vcombine.low %v3300_v4, %v3304_v7  ;;  %v3331_v36 = vcombine.low %v3316_v15, %v3320_v18  ;;  %v3205_v20 = vcombine.low %v3197_v19, %v3201_v26  ;;  %v3038_v4 = vld [vmem:[#allocation2 + $0x24] sm:$0xf] }
  0x6a   : > { %v2364_v1 = vcombine.low %v2356_v33, %v2360_v34  ;;  %v2622_v3 = vcombine.low %v2614_v60, %v2618_v11  ;;  %v3330_v16 = vcombine.low %v3308_v28, %v3312_v63  ;;  %v3079_v10 = vcombine.low %v3071_v30, %v3075_v31 }
  0x6b   : > { %v3324_v21 = vrot.slane %v3295_v61, %v7795_v24  ;;  %v3328_v35 = vrot.slane %v3295_v61, %v7798_v47 }
  0x6d   : > { %3084 = vrot.lane.b32.xlu1 %v3078_v51, %s7339_s29  ;;  %2371 = vrot.lane.b32.xlu0 %v2364_v1, %s7334_s12  ;;  %v3332_v27 = vcombine.low %v3324_v21, %v3328_v35 }
  0x6e   : > { %1771 = vmatmul.mubr.f32.vlgmr.msra.gmra.mrb[2].mxu0 %v7438_v5  ;;  %2236 = vmatmul.mubr.f32.vlgmr.msra.gmra.mrb[2].mxu1 %v7438_v5  ;;  %v2944_v5 = vrot.slane %v7700_v0, %v7795_v24 }
  0x6f   : > { %3528 = vmatprep.mubr.f32.mxu0 %v9664_v2  ;;  %3599 = vmatprep.mubr.f32.mxu1 %v9664_v2 }
  0x70   : > { %v2952_v0 = vcombine.low %v2944_v5, %v2948_v9  ;;  %v3164_v9 = vld [vmem:[#allocation2 + $0x24] sm:$0xf] }
  0x71   : > { %2500 = vrot.lane.b32.xlu1 %v2493_v62, %s7335_s19  ;;  %2629 = vrot.lane.b32.xlu0 %v2622_v3, %s7336_s25 }
  0x75   : > { %2757 = vrot.lane.b32.xlu1 %v2750_v29, %s7337_s26  ;;  %3333 = vrot.lane.b32.xlu0 %v3329_v17, %s7341_s20  ;;  %v2911_v29 = vld [vmem:[#allocation2 + $0x24] sm:$0xf] }
  0x79   : > { %3335 = vrot.lane.b32.xlu1 %v3330_v16, %s7341_s20  ;;  %3337 = vrot.lane.b32.xlu0 %v3331_v36, %s7341_s20 }
  0x7d   : > { %2959 = vrot.lane.b32.xlu1 %v2952_v0, %s7338_s14  ;;  %3086 = vrot.lane.b32.xlu0 %v3079_v10, %s7339_s29 }
  0x81   : > { %3212 = vrot.lane.b32.xlu1 %v3205_v20, %s7340_s30  ;;  %3339 = vrot.lane.b32.xlu0 %v3332_v27, %s7341_s20 }
  0x8e   : > { %v7871_v41 = vpop.permute.xlu1 %2367 }
  0x8f   : > { %v7873_v32 = vpop.permute.xlu0 %375 }
  0x93   : > { %v7877_v44 = vpop.permute.xlu0 %2365 }
  0x94   : > { %v9676_v8 = vrot.slane %v7877_v44, 4 }
  0x99   : > { %v7875_v42 = vpop.permute.xlu1 %2494  ;;  %v7881_v48 = vpop.permute.xlu0 %2496 }
  0xa0   : > { %v7879_v45 = vpop.permute.xlu1 %2498  ;;  %v7885_v37 = vpop.permute.xlu0 %2623 }
  0xa8   : > { %v7883_v14 = vpop.permute.xlu1 %2625 }
  0xab   : > { %v7889_v40 = vpop.permute.xlu0 %2751 }
  0xb0   : > { %v7887_v46 = vpop.permute.xlu1 %2753  ;;  %v7893_v22 = vpop.permute.xlu0 %2755 }
  0xbc   : > { %v7891_v23 = vpop.permute.xlu1 %2369  ;;  %v7897_v49 = vpop.permute.xlu0 %2627 }
  0xc4   : > { %v7895_v25 = vpop.permute.xlu1 %2953  ;;  %v7901_v51 = vpop.permute.xlu0 %2955 }
  0xcc   : > { %v7899_v50 = vpop.permute.xlu1 %2957 }
  0xcf   : > { %v7905_v55 = vpop.permute.xlu0 %3080 }
  0xd4   : > { %v7903_v52 = vpop.permute.xlu1 %3082 }
  0xd5   : > { %v7909_v33 = vpop.permute.xlu0 %3206 }
  0xdb   : > { %v7907_v56 = vpop.permute.xlu1 %3208  ;;  %v7913_v57 = vpop.permute.xlu0 %3210 }
  0xdf   : > { %v7911_v34 = vpop.permute.xlu1 %3084  ;;  %v7917_v58 = vpop.permute.xlu0 %2371 }
  0xe3   : > { %v7915_v43 = vpop.permute.xlu1 %2500  ;;  %v7921_v60 = vpop.permute.xlu0 %2629 }
  0xe7   : > { %v7919_v59 = vpop.permute.xlu1 %2757  ;;  %v7925_v61 = vpop.permute.xlu0 %3333 }
  0xeb   : > { %v7923_v11 = vpop.permute.xlu1 %3335  ;;  %v7929_v1 = vpop.permute.xlu0 %3337 }
  0xef   : > { %v7927_v62 = vpop.permute.xlu1 %2959  ;;  %v7934_v63 = vpop.permute.xlu0 %3086 }
  0xf0   : > { %v9670_v3 = vrot.slane %v7927_v62, 4  ;;  %v9668_v7 = vrot.slane %v7934_v63, 4 }
  0xf2   : > { %v2981_v5 = vmul.f32 %v9670_v3, %v2911_v29  ;;  %v3108_v16 = vmul.f32 %v9668_v7, %v3038_v4  ;;  %v9674_v3 = vrot.slane %v7871_v41, 4 }
  0xf3   : > { %v7932_v28 = vpop.permute.xlu1 %3212 }
  0xf4   : > { %v9669_v15 = vrot.slane %v7932_v28, 4  ;;  %3134 = vrot.lane.b32.xlu0 %v3108_v16, %s7336_s25  ;;  %v2991_v17 = vcombine.low %v2981_v5, %v2981_v5 }
  0xf6   : > { %v3234_v18 = vmul.f32 %v9669_v15, %v3164_v9 }
  0xf8   : > { %3008 = vrot.lane.b32.xlu0 %v2991_v17, %s7337_s26  ;;  %v3244_v19 = vcombine.low %v3234_v18, %v3234_v18 }
  0xfc   : > { %3261 = vrot.lane.b32.xlu0 %v3244_v19, %s7335_s19 }
 0x115   : > { %v842_v26 = vpop.f32.mrb[0].mxu0  ;;  %v1307_v30 = vpop.f32.mrb[0].mxu1 }
 0x116   : > { %v7060_v0 = vadd.f32 %v842_v26, %v7873_v32  ;;  %v7062_v36 = vadd.f32 %v1307_v30, %v7873_v32  ;;  %v844_v31 = vpop.f32.mrb[1].mxu0  ;;  %v1309_v20 = vpop.f32.mrb[1].mxu1 }
 0x117   : > { %v7061_v10 = vadd.f32 %v844_v31, %v7873_v32  ;;  %v7063_v21 = vadd.f32 %v1309_v20, %v7873_v32 }
 0x118   : > { %v2242_v35 = vsub.f32 0.0, %v7060_v0  ;;  %v2244_v27 = vsub.f32 0.0, %v7062_v36 }
 0x119   : > { %v2243_v29 = vsub.f32 0.0, %v7061_v10  ;;  %v2245_v4 = vsub.f32 0.0, %v7063_v21 }
 0x11a   : > { %v2250_v5 = vmul.f32 1.442695, %v2242_v35  ;;  %v2254_v9 = vmul.f32 1.442695, %v2244_v27 }
 0x11b   : > { %v2252_v16 = vmul.f32 1.442695, %v2243_v29  ;;  %v2256_v17 = vmul.f32 1.442695, %v2245_v4 }
 0x11c   : > { %7200 = vpow2.f32 %v2250_v5  ;;  %v6996_v35 = vld [vmem:[%s9653_s0 + $0x4] ss:$8 sm:$0xf] }
 0x11d   : > { %7202 = vpow2.f32 %v2254_v9  ;;  %v6997_v27 = vld [vmem:[%s9653_s0 + $0x4] ss:$8 sm:$0xf0] }
 0x11e   : > { %7204 = vpow2.f32 %v2252_v16  ;;  %v7957_v29 = vor.u32 %v6997_v27, %v6996_v35 }
 0x11f   : > { %7206 = vpow2.f32 %v2256_v17 }
 0x120   : > { %v2846_v4 = vrot.slane %v7957_v29, %v7526_v38  ;;  %v2850_v5 = vrot.slane %v7957_v29, %v7529_v39  ;;  %v2854_v9 = vrot.slane %v7957_v29, %v7459_v12  ;;  %v2858_v16 = vrot.slane %v7957_v29, %v7462_v13 }
 0x122   : > { %v2876_v35 = vcombine.low %v2854_v9, %v2858_v16  ;;  %v2380_v9 = vsel %vm2379_vm1, %v9676_v8, %v9674_v3 }
 0x126   : > { %v7201_v18 = vpop.eup %7200 }
 0x127   : > { %v7203_v19 = vpop.eup %7202  ;;  %v2266_v26 = vadd.f32 1.0, %v7201_v18 }
 0x128   : > { %v7205_v30 = vpop.eup %7204  ;;  %v2268_v2 = vadd.f32 1.0, %v7203_v19 }
 0x129   : > { %v7207_v31 = vpop.eup %7206  ;;  %7208 = vrcp.f32 %v2266_v26  ;;  %v2267_v20 = vadd.f32 1.0, %v7205_v30 }
 0x12a   : > { %7210 = vrcp.f32 %v2268_v2  ;;  %v2269_v6 = vadd.f32 1.0, %v7207_v31  ;;  %v2875_v31 = vcombine.low %v2846_v4, %v2850_v5 }
 0x12b   : > { %7212 = vrcp.f32 %v2267_v20 }
 0x12c   : > { %7214 = vrcp.f32 %v2269_v6 }
 0x133   : > { %v7209_v2 = vpop.eup %7208 }
 0x134   : > { %v7211_v17 = vpop.eup %7210  ;;  %v2282_v18 = vmul.f32 %v7209_v2, %v7060_v0  ;;  %v9675_v2 = vrot.slane %v7885_v37, 4 }
 0x135   : > { %v7213_v19 = vpop.eup %7212  ;;  %v2284_v26 = vmul.f32 %v7211_v17, %v7062_v36  ;;  %v2502_v36 = vrot.slane %v7875_v42, 4 }
 0x136   : > { %v7215_v6 = vpop.eup %7214  ;;  %v2283_v30 = vmul.f32 %v7213_v19, %v7061_v10  ;;  %v9673_v10 = vrot.slane %v7883_v14, 4 }
 0x137   : > { %v2285_v20 = vmul.f32 %v7215_v6, %v7063_v21  ;;  %v9672_v21 = vrot.slane %v7881_v48, 4  ;;  %v2507_v16 = vsel %vm2506_vm2, %v2502_v36, %v7875_v42 }
 0x138   : > { %v7967_v27 = vcombine.low %v2282_v18, %v2283_v30 }
 0x139   : > { %v7969_v7 = vcombine.low %v2284_v26, %v2285_v20  ;;  %v2637_v26 = vsel %vm2379_vm1, %v9675_v2, %v9673_v10 }
 0x13a   : > { %2316 = vst [vmem:[#allocation2 + $0x4] sm:$0xff] %v7967_v27  ;;  %v2883_v15 = vmul.f32 %v2875_v31, %v7967_v27 }
 0x13b   : > { %2317 = vst [vmem:[#allocation2 + $0xc] sm:$0xff] %v7969_v7  ;;  %v2884_v0 = vmul.f32 %v2876_v35, %v7969_v7 }
 0x13c   : > { %2899 = vst [vmem:[#allocation3 + $0x80] sm:$0xf] %v2883_v15  ;;  %v2891_v4 = vcombine.high %v2883_v15, %v2883_v15  ;;  %v2508_v15 = vsel %vm2379_vm1, %v2502_v36, %v9672_v21 }
 0x13d   : > { %2901 = vst [vmem:[#allocation3 + $0x90] sm:$0xf] %v2884_v0  ;;  %v2892_v5 = vcombine.high %v2884_v0, %v2884_v0  ;;  %v2381_v0 = vsel %vm2377_vm3, %v2380_v9, %v7871_v41  ;;  %v2638_v9 = vsel %vm2635_vm4, %v2637_v26, %v7883_v14  ;;  %v9697_v26 = vrot.slane %v7903_v52, 4 }
 0x13e   : > { %2900 = vst [vmem:[#allocation3 + $0x88] sm:$0xf] %v2891_v4 }
 0x13f   : > { %2902 = vst [vmem:[#allocation3 + $0x98] sm:$0xf] %v2892_v5 }
 0x141   : > { %v1772_v17 = vpop.f32.mrb[2].mxu0  ;;  %v2237_v18 = vpop.f32.mrb[2].mxu1  ;;  %v7991_v19 = vld [vmem:[#allocation2] sm:$0xff] }
 0x142   : > { %v7999_v6 = vadd.f32 %v1772_v17, %v7873_v32  ;;  %v8002_v42 = vadd.f32 %v2237_v18, %v7873_v32  ;;  %v1774_v30 = vpop.f32.mrb[3].mxu0  ;;  %v2239_v31 = vpop.f32.mrb[3].mxu1  ;;  %v8005_v20 = vmul.f32 %v2507_v16, %v7991_v19  ;;  %v2321_v35 = vld [vmem:[#allocation2 + $0x8] sm:$0xff]  ;;  %v2509_v18 = vsel %vm2506_vm2, %v2508_v15, %v7881_v48 }
 0x143   : > { %v8011_v4 = vadd.f32 %v1774_v30, %v7873_v32  ;;  %v8014_v5 = vadd.f32 %v2239_v31, %v7873_v32  ;;  %v8016_v17 = vmul.f32 %v2381_v0, %v2321_v35  ;;  %v2759_v30 = vrot.slane %v7889_v40, 4 }
 0x144   : > { %v2246_v16 = vsub.f32 0.0, %v7999_v6  ;;  %v2248_v21 = vsub.f32 0.0, %v8002_v42  ;;  %2536 = vrot.lane.b32.xlu1 %v8005_v20, %s7340_s30  ;;  %v3088_v32 = vrot.slane %v7905_v55, 4  ;;  %v9683_v15 = vrot.slane %v7887_v46, 4 }
 0x145   : > { %v2247_v31 = vsub.f32 0.0, %v8011_v4  ;;  %v2249_v0 = vsub.f32 0.0, %v8014_v5  ;;  %2409 = vrot.lane.b32.xlu0 %v8016_v17, %s7341_s20  ;;  %v2520_v2 = vmul.f32 %v2509_v18, %v2321_v35  ;;  %v8033_v39 = vmul.f32 %v2638_v9, %v2321_v35 }
 0x146   : > { %v2258_v10 = vmul.f32 1.442695, %v2246_v16  ;;  %v2262_v3 = vmul.f32 1.442695, %v2248_v21  ;;  %v3093_v38 = vsel %vm2379_vm1, %v3088_v32, %v9697_v26  ;;  %v2764_v13 = vsel %vm2763_vm5, %v2759_v30, %v7889_v40 }
 0x147   : > { %v2260_v8 = vmul.f32 1.442695, %v2247_v31  ;;  %v2264_v36 = vmul.f32 1.442695, %v2249_v0  ;;  %v8044_v21 = vmul.f32 %v2764_v13, %v7991_v19  ;;  %v3094_v18 = vsel %vm2680_vm6, %v3093_v38, %v7903_v52 }
 0x148   : > { %7216 = vpow2.f32 %v2258_v10  ;;  %2540 = vrot.lane.b32.xlu1 %v2520_v2, %s7340_s30  ;;  %v2765_v10 = vsel %vm2379_vm1, %v2759_v30, %v9683_v15  ;;  %v8052_v16 = vmul.f32 %v3094_v18, %v7969_v7  ;;  %v3092_v13 = vsel %vm2680_vm6, %v3088_v32, %v7905_v55 }
 0x149   : > { %7218 = vpow2.f32 %v2262_v3  ;;  %2666 = vrot.lane.b32.xlu0 %v8033_v39, %s7339_s29  ;;  %v9684_v38 = vrot.slane %v7925_v61, 4  ;;  %v8064_v3 = vmul.f32 %v3092_v13, %v7967_v27  ;;  %v2961_v13 = vrot.slane %v7895_v25, 4 }
 0x14a   : > { %7220 = vpow2.f32 %v2260_v8  ;;  %v2766_v8 = vsel %vm2763_vm5, %v2765_v10, %v7887_v46  ;;  %v9699_v10 = vrot.slane %v7885_v37, 4 }
 0x14b   : > { %7222 = vpow2.f32 %v2264_v36  ;;  %v2777_v40 = vmul.f32 %v2766_v8, %v2321_v35  ;;  %v9698_v36 = vrot.slane %v7877_v44, 4  ;;  %v3345_v55 = vsel %vm2423_vm7, %v9684_v38, %v7925_v61 }
 0x14c   : > { %2793 = vrot.lane.b32.xlu1 %v8044_v21, %s7338_s14  ;;  %v8081_v0 = vmul.f32 %v3345_v55, %v7967_v27  ;;  %v2636_v8 = vsel %vm2635_vm4, %v9699_v10, %v7885_v37  ;;  %v2965_v37 = vsel %vm2809_vm8, %v2961_v13, %v7895_v25 }
 0x14d   : > { %3122 = vrot.lane.b32.xlu0 %v8052_v16, %s7336_s25  ;;  %v2378_v9 = vsel %vm2377_vm3, %v9698_v36, %v7877_v44  ;;  %v8094_v55 = vmul.f32 %v2636_v8, %v7991_v19  ;;  %v2862_v8 = vrot.slane %v7957_v29, %v7551_v53 }
 0x14e   : > { %v8078_v35 = vmul.f32 %v7991_v19, %v2378_v9  ;;  %v2962_v9 = vrot.slane %v7901_v51, 4  ;;  %v2963_v19 = vrot.slane %v7899_v50, 4 }
 0x150   : > { %2797 = vrot.lane.b32.xlu1 %v2777_v40, %s7338_s14 }
 0x151   : > { %3118 = vrot.lane.b32.xlu0 %v8064_v3, %s7336_s25 }
 0x152   : > { %v7217_v30 = vpop.eup %7216 }
 0x153   : > { %v7219_v32 = vpop.eup %7218  ;;  %v2270_v31 = vadd.f32 1.0, %v7217_v30 }
 0x154   : > { %v7221_v26 = vpop.eup %7220  ;;  %v2272_v18 = vadd.f32 1.0, %v7219_v32  ;;  %2405 = vrot.lane.b32.xlu1 %v8078_v35, %s7341_s20  ;;  %v2530_v32 = vcombine.low %v2520_v2, %v2520_v2  ;;  %v9689_v2 = vrot.slane %v7907_v56, 4 }
 0x155   : > { %v7223_v44 = vpop.eup %7222  ;;  %7224 = vrcp.f32 %v2270_v31  ;;  %v2271_v36 = vadd.f32 1.0, %v7221_v26  ;;  %3371 = vrot.lane.b32.xlu0 %v8081_v0, %s7334_s12  ;;  %v2966_v31 = vsel %vm2379_vm1, %v2961_v13, %v2962_v9  ;;  %v8103_v26 = vmul.f32 %v2965_v37, %v7967_v27 }
 0x156   : > { %7226 = vrcp.f32 %v2272_v18  ;;  %v2273_v30 = vadd.f32 1.0, %v7223_v44  ;;  %v2787_v18 = vcombine.low %v2777_v40, %v2777_v40  ;;  %v3214_v44 = vrot.slane %v7909_v33, 4 }
 0x157   : > { %7228 = vrcp.f32 %v2271_v36  ;;  %v2967_v25 = vsel %vm2809_vm8, %v2966_v31, %v7901_v51  ;;  %v2866_v13 = vrot.slane %v7957_v29, %v7556_v54  ;;  %v2874_v51 = vrot.slane %v7957_v29, %v7798_v47 }
 0x158   : > { %7230 = vrcp.f32 %v2273_v30  ;;  %2662 = vrot.lane.b32.xlu1 %v8094_v55, %s7339_s29  ;;  %v2978_v40 = vmul.f32 %v2967_v25, %v7969_v7  ;;  %v2968_v30 = vsel %vm2379_vm1, %v2962_v9, %v2963_v19  ;;  %v2529_v37 = vcombine.low %v8005_v20, %v8005_v20 }
 0x159   : > { %2538 = vrot.lane.b32.xlu0 %v2530_v32, %s7340_s30  ;;  %v2870_v32 = vrot.slane %v7957_v29, %v7795_v24  ;;  %v3218_v15 = vsel %vm2552_vm9, %v3214_v44, %v7909_v33  ;;  %v3219_v9 = vsel %vm2379_vm1, %v3214_v44, %v9689_v2  ;;  %v3090_v29 = vrot.slane %v7911_v34, 4 }
 0x15a   : > { %v2877_v20 = vcombine.low %v2862_v8, %v2866_v13  ;;  %v9700_v33 = vrot.slane %v7923_v11, 4  ;;  %v9702_v54 = vrot.slane %v7927_v62, 4  ;;  %v9703_v44 = vrot.slane %v7932_v28, 4 }
 0x15b   : > { %v9704_v2 = vrot.slane %v7913_v57, 4  ;;  %v8152_v13 = vmul.f32 %v3218_v15, %v7967_v27  ;;  %v3220_v27 = vsel %vm2552_vm9, %v3219_v9, %v7907_v56 }
 0x15c   : > { %2994 = vrot.lane.b32.xlu1 %v8103_v26, %s7337_s26  ;;  %v2970_v53 = vsel %vm2379_vm1, %v2963_v19, %v9702_v54  ;;  %v2878_v54 = vcombine.low %v2870_v32, %v2874_v51  ;;  %v2786_v19 = vcombine.low %v8044_v21, %v8044_v21 }
 0x15d   : > { %2795 = vrot.lane.b32.xlu0 %v2787_v18, %s7338_s14  ;;  %v9701_v18 = vrot.slane %v7925_v61, 4  ;;  %v9705_v61 = vrot.slane %v7934_v63, 4  ;;  %v2971_v15 = vsel %vm2809_vm8, %v2970_v53, %v7927_v62 }
 0x15f   : > { %v7225_v36 = vpop.eup %7224 }
 0x160   : > { %v7227_v31 = vpop.eup %7226  ;;  %v2286_v25 = vmul.f32 %v7225_v36, %v7999_v6  ;;  %2998 = vrot.lane.b32.xlu1 %v2978_v40, %s7337_s26  ;;  %v3346_v6 = vsel %vm2379_vm1, %v9701_v18, %v9700_v33  ;;  %v2375_v33 = vrot.slane %v7891_v23, 4 }
 0x161   : > { %v7229_v38 = vpop.eup %7228  ;;  %v2288_v10 = vmul.f32 %v7227_v31, %v8002_v42  ;;  %2534 = vrot.lane.b32.xlu0 %v2529_v37, %s7340_s30  ;;  %v3223_v42 = vsel %vm2379_vm1, %v9704_v2, %v9703_v44  ;;  %v3097_v37 = vsel %vm2379_vm1, %v3090_v29, %v9705_v61  ;;  %v3347_v21 = vsel %vm2423_vm7, %v3346_v6, %v7923_v11 }
 0x162   : > { %v7231_v36 = vpop.eup %7230  ;;  %v2287_v8 = vmul.f32 %v7229_v38, %v8011_v4  ;;  %v2969_v4 = vsel %vm2809_vm8, %v2968_v30, %v7899_v50  ;;  %v3098_v2 = vsel %vm2680_vm6, %v3097_v37, %v7934_v63  ;;  %v3231_v30 = vmul.f32 %v3220_v27, %v7969_v7 }
 0x163   : > { %v2289_v31 = vmul.f32 %v7231_v36, %v8014_v5  ;;  %v3224_v5 = vsel %vm2552_vm9, %v3223_v42, %v7932_v28  ;;  %v2988_v28 = vcombine.low %v2978_v40, %v2978_v40  ;;  %v3358_v51 = vmul.f32 %v3347_v21, %v7969_v7 }
 0x164   : > { %v8162_v18 = vcombine.low %v2286_v25, %v2287_v8  ;;  %3247 = vrot.lane.b32.xlu1 %v8152_v13, %s7335_s19  ;;  %v3241_v40 = vcombine.low %v3231_v30, %v3231_v30  ;;  %v3367_v6 = vcombine.high %v8081_v0, %v8081_v0  ;;  %v2402_v7 = vcombine.high %v8016_v17, %v8016_v17 }
 0x165   : > { %v8174_v38 = vcombine.low %v2288_v10, %v2289_v31  ;;  %2791 = vrot.lane.b32.xlu0 %v2786_v19, %s7338_s14  ;;  %v9706_v36 = vrot.slane %v7871_v41, 4  ;;  %v2633_v42 = vrot.slane %v7897_v49, 4  ;;  %v3368_v8 = vcombine.high %v3358_v51, %v3358_v51 }
 0x166   : > { %2318 = vst [vmem:[#allocation2 + $0x14] sm:$0xff] %v8162_v18  ;;  %v2885_v50 = vmul.f32 %v2877_v20, %v8162_v18  ;;  %v8185_v53 = vmul.f32 %v2969_v4, %v8162_v18  ;;  %v2401_v20 = vcombine.high %v8078_v35, %v8078_v35  ;;  %v2658_v61 = vcombine.high %v8094_v55, %v8094_v55 }
 0x167   : > { %2319 = vst [vmem:[#allocation2 + $0x1c] sm:$0xff] %v8174_v38  ;;  %v2886_v62 = vmul.f32 %v2878_v54, %v8174_v38  ;;  %v8190_v10 = vmul.f32 %v3098_v2, %v8174_v38  ;;  %v8193_v32 = vmul.f32 %v2971_v15, %v8174_v38  ;;  %v8197_v63 = vmul.f32 %v3224_v5, %v8174_v38 }
 0x168   : > { %2903 = vst [vmem:[#allocation3 + $0xa0] sm:$0xf] %v2885_v50  ;;  %3251 = vrot.lane.b32.xlu1 %v3231_v30, %s7335_s19  ;;  %v2893_v25 = vcombine.high %v2885_v50, %v2885_v50  ;;  %v2382_v44 = vsel %vm2379_vm1, %v9706_v36, %v2375_v33  ;;  %v9707_v17 = vrot.slane %v7883_v14, 4  ;;  %v2504_v54 = vrot.slane %v7879_v45, 4 }
 0x169   : > { %2905 = vst [vmem:[#allocation3 + $0xb0] sm:$0xf] %v2886_v62  ;;  %2996 = vrot.lane.b32.xlu0 %v2988_v28, %s7337_s26  ;;  %v2894_v9 = vcombine.high %v2886_v62, %v2886_v62  ;;  %v2383_v0 = vsel %vm2377_vm3, %v2382_v44, %v7891_v23  ;;  %v2659_v23 = vcombine.high %v8033_v39, %v8033_v39  ;;  %v9708_v14 = vrot.slane %v7903_v52, 4 }
 0x16a   : > { %2904 = vst [vmem:[#allocation3 + $0xa8] sm:$0xf] %v2893_v25  ;;  %v2639_v41 = vsel %vm2379_vm1, %v9707_v17, %v2633_v42  ;;  %v3114_v39 = vcombine.high %v8064_v3, %v8064_v3  ;;  %v2505_v27 = vrot.slane %v7915_v43, 4  ;;  %v9709_v52 = vrot.slane %v7881_v48, 4 }
 0x16b   : > { %2906 = vst [vmem:[#allocation3 + $0xb8] sm:$0xf] %v2894_v9  ;;  %v2640_v31 = vsel %vm2635_vm4, %v2639_v41, %v7897_v49  ;;  %v3095_v55 = vsel %vm2379_vm1, %v9708_v14, %v3090_v29  ;;  %v3115_v3 = vcombine.high %v8052_v16, %v8052_v16  ;;  %v2761_v15 = vrot.slane %v7893_v22, 4 }
 0x16c   : > { %3375 = vrot.lane.b32.xlu1 %v3358_v51, %s7334_s12  ;;  %v3096_v49 = vsel %vm2680_vm6, %v3095_v55, %v7911_v34  ;;  %v2510_v29 = vsel %vm2379_vm1, %v9709_v52, %v2504_v54  ;;  %v2512_v5 = vsel %vm2379_vm1, %v2504_v54, %v2505_v27  ;;  %v2987_v16 = vcombine.low %v8103_v26, %v8103_v26 }
 0x16d   : > { %3249 = vrot.lane.b32.xlu0 %v3241_v40, %s7335_s19  ;;  %v2322_v35 = vld [vmem:[#allocation2 + $0x10] sm:$0xff]  ;;  %v8251_v4 = vmul.f32 %v3096_v49, %v8162_v18  ;;  %v2511_v34 = vsel %vm2506_vm2, %v2510_v29, %v7879_v45  ;;  %v2513_v2 = vsel %vm2506_vm2, %v2512_v5, %v7915_v43  ;;  %v2376_v45 = vrot.slane %v7917_v58, 4  ;;  %v3340_v49 = vpop.permute.xlu0 %3339 }
 0x16e   : > { %v8225_v37 = vmul.f32 %v2383_v0, %v2322_v35  ;;  %v8240_v19 = vmul.f32 %v2640_v31, %v2322_v35  ;;  %v2521_v48 = vmul.f32 %v2511_v34, %v2322_v35  ;;  %v2451_v21 = vld [vmem:[#allocation2 + $0x18] sm:$0xff]  ;;  %v9710_v50 = vrot.slane %v7887_v46, 4  ;;  %v2581_v0 = vld [vmem:[#allocation2 + $0x20] sm:$0xf] }
 0x16f   : > { %v2762_v62 = vrot.slane %v7919_v59, 4  ;;  %v2522_v28 = vmul.f32 %v2513_v2, %v2451_v21  ;;  %v2384_v25 = vsel %vm2379_vm1, %v2375_v33, %v2376_v45  ;;  %v3240_v9 = vcombine.low %v8152_v13, %v8152_v13  ;;  %v2324_v13 = vld [vmem:[#allocation2 + $0x20] sm:$0xf] }
 0x170   : > { %2407 = vrot.lane.b32.xlu1 %v2401_v20, %s7341_s20  ;;  %v2767_v30 = vsel %vm2379_vm1, %v9710_v50, %v2761_v15  ;;  %v2385_v40 = vsel %vm2377_vm3, %v2384_v25, %v7917_v58  ;;  %v2634_v20 = vrot.slane %v7921_v60, 4  ;;  %v2395_v36 = vmul.f32 %v2376_v45, %v2324_v13  ;;  %v2452_v29 = vld [vmem:[#allocation2 + $0x20] sm:$0xf] }
 0x171   : > { %3373 = vrot.lane.b32.xlu0 %v3367_v6, %s7334_s12  ;;  %v2768_v51 = vsel %vm2763_vm5, %v2767_v30, %v7893_v22  ;;  %v2769_v46 = vsel %vm2379_vm1, %v2761_v15, %v2762_v62  ;;  %v2394_v33 = vmul.f32 %v2451_v21, %v2385_v40  ;;  %v3343_v44 = vrot.slane %v7929_v1, 4  ;;  %v2709_v45 = vld [vmem:[#allocation2 + $0x20] sm:$0xf] }
 0x172   : > { %v2778_v26 = vmul.f32 %v2768_v51, %v2322_v35  ;;  %v2770_v22 = vsel %vm2763_vm5, %v2769_v46, %v7919_v59  ;;  %v2531_v35 = vcombine.low %v2521_v48, %v2521_v48  ;;  %v2652_v17 = vmul.f32 %v2634_v20, %v2581_v0  ;;  %v7012_v0 = vld [vmem:[%s9653_s0 + $0x2] ss:$8 sm:$0xf] }
 0x173   : > { %v8295_v6 = vmul.f32 %v2770_v22, %v2451_v21  ;;  %v9712_v41 = vrot.slane %v7913_v57, 4  ;;  %v2989_v55 = vcombine.low %v8185_v53, %v8185_v53  ;;  %v2532_v34 = vcombine.low %v2522_v28, %v2522_v28 }
 0x174   : > { %2411 = vrot.lane.b32.xlu1 %v2402_v7, %s7341_s20  ;;  %v2641_v7 = vsel %vm2379_vm1, %v2633_v42, %v2634_v20  ;;  %v9711_v42 = vrot.slane %v7923_v11, 4  ;;  %v3116_v46 = vcombine.high %v8251_v4, %v8251_v4 }
 0x175   : > { %3377 = vrot.lane.b32.xlu0 %v3368_v8, %s7334_s12  ;;  %v2642_v58 = vsel %vm2635_vm4, %v2641_v7, %v7921_v60  ;;  %v9713_v60 = vrot.slane %v7907_v56, 4 }
 0x176   : > { %v2651_v8 = vmul.f32 %v2642_v58, %v2451_v21  ;;  %v2990_v21 = vcombine.low %v8193_v32, %v8193_v32 }
 0x177   : > { %v3221_v31 = vsel %vm2379_vm1, %v9713_v60, %v9712_v41  ;;  %v9714_v60 = vld [vmem:[#allocation6_spill] sm:$0xff] }
 0x178   : > { %2664 = vrot.lane.b32.xlu1 %v2658_v61, %s7339_s29  ;;  %v3348_v61 = vsel %vm2379_vm1, %v9711_v42, %v3343_v44  ;;  %v3222_v11 = vsel %vm2552_vm9, %v3221_v31, %v7913_v57  ;;  %v8335_v57 = vpop.permute.xlu0 %3134  ;;  %v2661_v15 = vcombine.high %v2651_v8, %v2651_v8  ;;  %v7013_v42 = vld [vmem:[%s9653_s0 + $0x2] ss:$8 sm:$0xf0] }
 0x179   : > { %2413 = vrot.lane.b32.xlu0 %v8225_v37, %s7341_s20  ;;  %v3349_v54 = vsel %vm2423_vm7, %v3348_v61, %v7929_v1  ;;  %v3232_v56 = vmul.f32 %v3222_v11, %v8162_v18  ;;  %v7342_v61 = vmov 1  }
 0x17a   : > { %v8324_v14 = vmul.f32 %v3349_v54, %v8162_v18  ;;  %v2404_v18 = vcombine.high %v2394_v33, %v2394_v33  ;;  %7190 = vset.pattern.permute.xlu0 %v7342_v61 }
 0x17b   : > { %v3242_v1 = vcombine.low %v3232_v56, %v3232_v56 }
 0x17c   : > { %2668 = vrot.lane.b32.xlu1 %v2659_v23, %s7339_s29  ;;  %v2788_v23 = vcombine.low %v2778_v26, %v2778_v26  ;;  %v8342_v52 = vpop.permute.xlu0 %3008 }
 0x17d   : > { %2670 = vrot.lane.b32.xlu0 %v8240_v19, %s7339_s29 }
 0x180   : > { %3120 = vrot.lane.b32.xlu1 %v3114_v39, %s7336_s25  ;;  %v2403_v39 = vcombine.high %v8225_v37, %v8225_v37  ;;  %v8351_v37 = vpop.permute.xlu0 %3261 }
 0x181   : > { %3126 = vrot.lane.b32.xlu0 %v8251_v4, %s7336_s25  ;;  %v7010_v4 = vld [vmem:[%s9653_s0 + $0x1] ss:$8 sm:$0xf] }
 0x184   : > { %3124 = vrot.lane.b32.xlu1 %v3115_v3, %s7336_s25  ;;  %v2523_v3 = vmul.f32 %v2505_v27, %v2452_v29  ;;  %v2789_v27 = vcombine.low %v8295_v6, %v8295_v6 }
 0x185   : > { %2544 = vrot.lane.b32.xlu0 %v2521_v48, %s7340_s30  ;;  %v3344_v48 = vrot.slane %v3340_v49, 4 }
 0x187   : > { %v3350_v50 = vsel %vm2379_vm1, %v3343_v44, %v3344_v48  ;;  %v8421_v44 = vld [vmem:[%s9659_s6] sm:$0xf] }
 0x188   : > { %2992 = vrot.lane.b32.xlu1 %v2987_v16, %s7337_s26  ;;  %v2780_v16 = vmul.f32 %v2762_v62, %v2709_v45  ;;  %v3291_v62 = vld [vmem:[#allocation2 + $0x24] sm:$0xf]  ;;  %v7343_v45 = vmov 4  }
 0x189   : > { %2548 = vrot.lane.b32.xlu0 %v2522_v28, %s7340_s30  ;;  %v3351_v28 = vsel %vm2423_vm7, %v3350_v50, %v3340_v49  ;;  %v9717_v50 = vld [vmem:[#allocation9_spill] sm:$0xff] }
 0x18a   : > { %v2790_v25 = vcombine.low %v2780_v16, %v2780_v16  ;;  %v3360_v59 = vmul.f32 %v3351_v28, %v8174_v38  ;;  %v3117_v38 = vcombine.high %v8190_v10, %v8190_v10 }
 0x18c   : > { %3245 = vrot.lane.b32.xlu1 %v3240_v9, %s7335_s19 }
 0x18d   : > { %2801 = vrot.lane.b32.xlu0 %v2778_v26, %s7338_s14  ;;  %v3361_v26 = vmul.f32 %v3344_v48, %v3291_v62 }
 0x190   : > { %2417 = vrot.lane.b32.xlu1 %v2394_v33, %s7341_s20  ;;  %v7011_v33 = vld [vmem:[%s9653_s0 + $0x1] ss:$8 sm:$0xf0] }
 0x191   : > { %2805 = vrot.lane.b32.xlu0 %v8295_v6, %s7338_s14  ;;  %v3369_v6 = vcombine.high %v8324_v14, %v8324_v14  ;;  %v8416_v58 = vor.u32 %v7011_v33, %v7010_v4  ;;  %v7014_v4 = vld [vmem:[%s9653_s0 + $0x3] ss:$8 sm:$0xf] }
 0x193   : > { %v3909_v31 = vrot.slane %v8416_v58, %v9714_v60  ;;  %v3925_v54 = vrot.slane %v8416_v58, %v7798_v47 }
 0x194   : > { %2421 = vrot.lane.b32.xlu1 %v2395_v36, %s7341_s20 }
 0x195   : > { %3130 = vrot.lane.b32.xlu0 %v8190_v10, %s7336_s25 }
 0x198   : > { %2674 = vrot.lane.b32.xlu1 %v2651_v8, %s7339_s29 }
 0x199   : > { %2542 = vrot.lane.b32.xlu0 %v2531_v35, %s7340_s30  ;;  %v3370_v35 = vcombine.high %v3360_v59, %v3360_v59 }
 0x19c   : > { %2678 = vrot.lane.b32.xlu1 %v2652_v17, %s7339_s29  ;;  %v3905_v17 = vrot.slane %v8416_v58, %v7459_v12 }
 0x19d   : > { %2799 = vrot.lane.b32.xlu0 %v2788_v23, %s7338_s14  ;;  %v3921_v23 = vrot.slane %v8416_v58, %v7795_v24 }
 0x19e   : > { %v3927_v49 = vcombine.low %v3905_v17, %v3909_v31 }
 0x1a0   : > { %3379 = vrot.lane.b32.xlu1 %v8324_v14, %s7334_s12 }
 0x1a1   : > { %3000 = vrot.lane.b32.xlu0 %v2989_v55, %s7337_s26  ;;  %v3454_v55 = vld [vmem:[%s9658_s5] sm:$0xf] }
 0x1a4   : > { %3002 = vrot.lane.b32.xlu1 %v8185_v53, %s7337_s26  ;;  %v2660_v53 = vcombine.high %v8240_v19, %v8240_v19  ;;  %v2533_v19 = vcombine.low %v2523_v3, %v2523_v3 }
 0x1a5   : > { %3253 = vrot.lane.b32.xlu0 %v3242_v1, %s7335_s19 }
 0x1a8   : > { %3006 = vrot.lane.b32.xlu1 %v8193_v32, %s7337_s26  ;;  %v3243_v32 = vcombine.low %v8197_v63, %v8197_v63 }
 0x1a9   : > { %2415 = vrot.lane.b32.xlu0 %v2403_v39, %s7341_s20 }
 0x1ac   : > { %3255 = vrot.lane.b32.xlu1 %v3232_v56, %s7335_s19  ;;  %v8448_v56 = vor.u32 %v7013_v42, %v7012_v0  ;;  %v7345_v0 = vmov 3  }
 0x1ad   : > { %2419 = vrot.lane.b32.xlu0 %v2404_v18, %s7341_s20  ;;  %v3929_v18 = vcombine.low %v3921_v23, %v3925_v54 }
 0x1ae   : > { %v3974_v23 = vrot.slane %v8448_v56, %v7459_v12  ;;  %v3978_v54 = vrot.slane %v8448_v56, %v9714_v60 }
 0x1b0   : > { %3259 = vrot.lane.b32.xlu1 %v8197_v63, %s7335_s19 }
 0x1b1   : > { %2672 = vrot.lane.b32.xlu0 %v2660_v53, %s7339_s29  ;;  %v9715_v53 = vld [vmem:[#allocation7_spill] sm:$0xff] }
 0x1b2   : > { %v3966_v29 = vrot.slane %v8448_v56, %v9715_v53 }
 0x1b4   : > { %2546 = vrot.lane.b32.xlu1 %v2532_v34, %s7340_s30  ;;  %v9716_v34 = vld [vmem:[#allocation8_spill] sm:$0xff] }
 0x1b5   : > { %2676 = vrot.lane.b32.xlu0 %v2661_v15, %s7339_s29  ;;  %v3970_v3 = vrot.slane %v8448_v56, %v9716_v34  ;;  %v3901_v48 = vrot.slane %v8416_v58, %v9716_v34 }
 0x1b6   : > { %v8357_v5 = vpop.permute.xlu1 %2536 }
 0x1b7   : > { %v8361_v2 = vpop.permute.xlu0 %2409  ;;  %v3995_v16 = vcombine.low %v3966_v29, %v3970_v3 }
 0x1b8   : > { %2550 = vrot.lane.b32.xlu1 %v2533_v19, %s7340_s30  ;;  %v3897_v19 = vrot.slane %v8416_v58, %v9715_v53 }
 0x1b9   : > { %3004 = vrot.lane.b32.xlu0 %v2990_v21, %s7337_s26 }
 0x1ba   : > { %v8365_v43 = vpop.permute.xlu1 %2540  ;;  %v3926_v62 = vcombine.low %v3897_v19, %v3901_v48  ;;  %v3996_v19 = vcombine.low %v3974_v23, %v3978_v54  ;;  %v3994_v48 = vrot.slane %v8448_v56, %v7798_v47 }
 0x1bb   : > { %v8374_v30 = vpop.permute.xlu0 %2666 }
 0x1bc   : > { %2803 = vrot.lane.b32.xlu1 %v2789_v27, %s7338_s14 }
 0x1bd   : > { %3257 = vrot.lane.b32.xlu0 %v3243_v32, %s7335_s19  ;;  %v3982_v32 = vrot.slane %v8448_v56, %v9717_v50 }
 0x1be   : > { %v8379_v51 = vpop.permute.xlu1 %2793 }
 0x1bf   : > { %v8381_v9 = vpop.permute.xlu0 %3122 }
 0x1c0   : > { %2807 = vrot.lane.b32.xlu1 %v2790_v25, %s7338_s14 }
 0x1c1   : > { %3383 = vrot.lane.b32.xlu0 %v3360_v59, %s7334_s12  ;;  %v7344_v59 = vmov 2  }
 0x1c2   : > { %v8386_v63 = vpop.permute.xlu1 %2797 }
 0x1c3   : > { %v8390_v40 = vpop.permute.xlu0 %3118 }
 0x1c4   : > { %3128 = vrot.lane.b32.xlu1 %v3116_v46, %s7336_s25  ;;  %v3913_v46 = vrot.slane %v8416_v58, %v9717_v50 }
 0x1c5   : > { %3387 = vrot.lane.b32.xlu0 %v3361_v26, %s7334_s12 }
 0x1c6   : > { %v8396_v22 = vpop.permute.xlu1 %2405 }
 0x1c7   : > { %v8398_v20 = vpop.permute.xlu0 %3371 }
 0x1c8   : > { %3132 = vrot.lane.b32.xlu1 %v3117_v38, %s7336_s25 }
 0x1c9   : > { %4449 = vperm.xlu0 %7190, %v8421_v44  }
 0x1ca   : > { %v8409_v13 = vpop.permute.xlu1 %2662 }
 0x1cb   : > { %v2539_v10 = vpop.permute.xlu0 %2538 }
 0x1cc   : > { %v2554_v7 = vsel %vm2552_vm9, %v8357_v5, %v2539_v10  ;;  %v2555_v36 = vsel %vm2552_vm9, %v2539_v10, %v8365_v43  ;;  %3381 = vrot.lane.b32.xlu1 %v3369_v6, %s7334_s12 }
 0x1cd   : > { %2570 = vst [vmem:[#allocation3 + $0x8] sm:$0xf0] %v2554_v7  ;;  %2571 = vst [vmem:[#allocation3 + $0x10] sm:$0xf0] %v2555_v36  ;;  %3932 = vrot.lane.b32.xlu0 %v3927_v49, %s7335_s19 }
 0x1ce   : > { %v8423_v8 = vpop.permute.xlu1 %2994  ;;  %7193 = vset.pattern.permute.xlu0 %v7343_v45 }
 0x1cf   : > { %v2796_v41 = vpop.permute.xlu0 %2795 }
 0x1d0   : > { %v2811_v11 = vsel %vm2809_vm8, %v8379_v51, %v2796_v41  ;;  %v2812_v14 = vsel %vm2809_vm8, %v2796_v41, %v8386_v63  ;;  %3385 = vrot.lane.b32.xlu1 %v3370_v35, %s7334_s12 }
 0x1d1   : > { %2827 = vst [vmem:[#allocation3 + $0x48] sm:$0xf0] %v2811_v11  ;;  %2828 = vst [vmem:[#allocation3 + $0x50] sm:$0xf0] %v2812_v14  ;;  %3936 = vrot.lane.b32.xlu0 %v3929_v18, %s7335_s19 }
 0x1d2   : > { %v8450_v1 = vpop.permute.xlu1 %2998  ;;  %v7018_v14 = vld [vmem:[%s9653_s0 + $0x5] ss:$8 sm:$0xf] }
 0x1d3   : > { %v2535_v39 = vpop.permute.xlu0 %2534 }
 0x1d4   : > { %v2553_v15 = vsel %vm2552_vm9, %v2535_v39, %v8357_v5  ;;  %3457 = vperm.xlu1 %7189, %v3454_v55   ;;  %v9718_v5 = vld [vmem:[#allocation10_spill] sm:$0xff] }
 0x1d5   : > { %2569 = vst [vmem:[#allocation3] sm:$0xf0] %v2553_v15  ;;  %v3986_v28 = vrot.slane %v8448_v56, %v9718_v5  ;;  %v3917_v26 = vrot.slane %v8416_v58, %v9718_v5  ;;  %3999 = vrot.lane.b32.xlu0 %v3995_v16, %s7336_s25  ;;  %v7019_v55 = vld [vmem:[%s9653_s0 + $0x5] ss:$8 sm:$0xf0] }
 0x1d6   : > { %v8463_v21 = vpop.permute.xlu1 %3247  ;;  %v8526_v45 = vor.u32 %v7019_v55, %v7018_v14 }
 0x1d7   : > { %v2792_v27 = vpop.permute.xlu0 %2791  ;;  %v3997_v6 = vcombine.low %v3982_v32, %v3986_v28  ;;  %v3928_v36 = vcombine.low %v3913_v46, %v3917_v26  ;;  %v7020_v46 = vld [vmem:[%s9653_s0 + $0x6] ss:$8 sm:$0xf] }
 0x1d8   : > { %v2810_v25 = vsel %vm2809_vm8, %v2792_v27, %v8379_v51  ;;  %7191 = vset.pattern.permute.xlu1 %v7344_v59  ;;  %v7015_v51 = vld [vmem:[%s9653_s0 + $0x3] ss:$8 sm:$0xf0]  ;;  %v4169_v32 = vrot.slane %v8526_v45, %v7459_v12  ;;  %v4173_v28 = vrot.slane %v8526_v45, %v9714_v60  ;;  %v7021_v26 = vld [vmem:[%s9653_s0 + $0x6] ss:$8 sm:$0xf0] }
 0x1d9   : > { %2826 = vst [vmem:[#allocation3 + $0x40] sm:$0xf0] %v2810_v25  ;;  %4503 = vperm.xlu1 %7191, %v8421_v44   ;;  %v8491_v58 = vor.u32 %v7015_v51, %v7014_v4  ;;  %4003 = vrot.lane.b32.xlu0 %v3997_v6, %s7336_s25  ;;  %v7347_v51 = vmov 6  }
 0x1da   : > { %v8477_v38 = vpop.permute.xlu1 %3251 }
 0x1db   : > { %v2997_v33 = vpop.permute.xlu0 %2996  ;;  %v4051_v61 = vrot.slane %v8491_v58, %v9717_v50  ;;  %v4055_v17 = vrot.slane %v8491_v58, %v9718_v5 }
 0x1dc   : > { %v3011_v10 = vsel %vm2763_vm5, %v8423_v8, %v2997_v33  ;;  %v3012_v7 = vsel %vm2763_vm5, %v2997_v33, %v8450_v1 }
 0x1dd   : > { %3027 = vst [vmem:[#allocation3 + $0x88] sm:$0xf0] %v3011_v10  ;;  %3028 = vst [vmem:[#allocation3 + $0x90] sm:$0xf0] %v3012_v7  ;;  %3930 = vrot.lane.b32.xlu1 %v3926_v62, %s7335_s19  ;;  %4612 = vperm.xlu0 %7193, %v8421_v44   ;;  %v4066_v29 = vcombine.low %v4051_v61, %v4055_v17  ;;  %v4039_v62 = vrot.slane %v8491_v58, %v9716_v34 }
 0x1de   : > { %v3376_v35 = vpop.permute.xlu1 %3375  ;;  %7192 = vset.pattern.permute.xlu1 %v7345_v0  ;;  %v4191_v7 = vcombine.low %v4169_v32, %v4173_v28  ;;  %v7022_v0 = vld [vmem:[%s9653_s0 + $0x7] ss:$8 sm:$0xf]  ;;  %v4043_v61 = vrot.slane %v8491_v58, %v7459_v12  ;;  %v4047_v17 = vrot.slane %v8491_v58, %v9714_v60 }
 0x1df   : > { %v3250_v42 = vpop.permute.xlu0 %3249 }
 0x1e0   : > { %v3264_v41 = vsel %vm2506_vm2, %v8463_v21, %v3250_v42  ;;  %v3265_v31 = vsel %vm2506_vm2, %v3250_v42, %v8477_v38 }
 0x1e1   : > { %3280 = vst [vmem:[#allocation3 + $0xc8] sm:$0xf0] %v3264_v41  ;;  %3281 = vst [vmem:[#allocation3 + $0xd0] sm:$0xf0] %v3265_v31  ;;  %3934 = vrot.lane.b32.xlu1 %v3928_v36, %s7335_s19  ;;  %4072 = vrot.lane.b32.xlu0 %v4066_v29, %s7337_s26 }
 0x1e2   : > { %v2408_v11 = vpop.permute.xlu1 %2407  ;;  %v7024_v29 = vld [vmem:[%s9653_s0 + $0x40] ss:$8 sm:$0xf] }
 0x1e3   : > { %v3374_v49 = vpop.permute.xlu0 %3373  ;;  %v2424_v39 = vsel %vm2423_vm7, %v8396_v22, %v2408_v11  ;;  %v2425_v18 = vsel %vm2423_vm7, %v2408_v11, %v8361_v2  ;;  %v3990_v22 = vrot.slane %v8448_v56, %v7795_v24  ;;  %v7346_v56 = vmov 5  }
 0x1e4   : > { %v3389_v3 = vsel %vm2377_vm3, %v8398_v20, %v3374_v49  ;;  %v3390_v15 = vsel %vm2377_vm3, %v3374_v49, %v3376_v35  ;;  %2440 = vst [vmem:[#allocation3] sm:$0xf] %v2424_v39  ;;  %2441 = vst [vmem:[#allocation3 + $0x8] sm:$0xf] %v2425_v18  ;;  %7194 = vset.pattern.permute.xlu0 %v7346_v56  ;;  %v7348_v49 = vmov 7   ;;  %v4065_v39 = vcombine.low %v4043_v61, %v4047_v17  ;;  %v3431_v17 = vld [vmem:[#allocation3 + $0x88] sm:$0xff] }
 0x1e5   : > { %3405 = vst [vmem:[#allocation3 + $0x100] sm:$0xf] %v3389_v3  ;;  %3406 = vst [vmem:[#allocation3 + $0x108] sm:$0xf] %v3390_v15  ;;  %4558 = vperm.xlu1 %7192, %v8421_v44   ;;  %v3998_v59 = vcombine.low %v3990_v22, %v3994_v48  ;;  %4660 = vperm.xlu0 %7194, %v8421_v44   ;;  %v4059_v18 = vrot.slane %v8491_v58, %v7795_v24 }
 0x1e6   : > { %v2412_v27 = vpop.permute.xlu1 %2411  ;;  %v7025_v22 = vld [vmem:[%s9653_s0 + $0x40] ss:$8 sm:$0xf0] }
 0x1e7   : > { %v8528_v16 = vpop.permute.xlu0 %3377  ;;  %v2426_v20 = vsel %vm2423_vm7, %v8361_v2, %v2412_v27  ;;  %v4035_v2 = vrot.slane %v8491_v58, %v9715_v53 }
 0x1e8   : > { %v3391_v25 = vsel %vm2377_vm3, %v3376_v35, %v8528_v16  ;;  %2442 = vst [vmem:[#allocation3 + $0x10] sm:$0xf] %v2426_v20  ;;  %v8559_v35 = vor.u32 %v7021_v26, %v7020_v46 }
 0x1e9   : > { %3407 = vst [vmem:[#allocation3 + $0x110] sm:$0xf] %v3391_v25  ;;  %4001 = vrot.lane.b32.xlu1 %v3996_v19, %s7336_s25  ;;  %v4064_v42 = vcombine.low %v4035_v2, %v4039_v62  ;;  %4196 = vrot.lane.b32.xlu0 %v4191_v7, %s7338_s14 }
 0x1ea   : > { %v2665_v4 = vpop.permute.xlu1 %2664  ;;  %7195 = vset.pattern.permute.xlu1 %v7347_v51  ;;  %v4246_v31 = vrot.slane %v8559_v35, %v9717_v50  ;;  %v4250_v23 = vrot.slane %v8559_v35, %v9718_v5  ;;  %7196 = vset.pattern.permute.xlu0 %v7348_v49 }
 0x1eb   : > { %v8550_v33 = vpop.permute.xlu0 %2413  ;;  %v2681_v6 = vsel %vm2680_vm6, %v8409_v13, %v2665_v4  ;;  %v2682_v10 = vsel %vm2680_vm6, %v2665_v4, %v8374_v30  ;;  %v7023_v13 = vld [vmem:[%s9653_s0 + $0x7] ss:$8 sm:$0xf0]  ;;  %v8612_v4 = vor.u32 %v7025_v22, %v7024_v29 }
 0x1ec   : > { %v2427_v36 = vsel %vm2423_vm7, %v2412_v27, %v8550_v33  ;;  %2697 = vst [vmem:[#allocation3 + $0x40] sm:$0xf] %v2681_v6  ;;  %2698 = vst [vmem:[#allocation3 + $0x48] sm:$0xf] %v2682_v10  ;;  %v8581_v14 = vor.u32 %v7023_v13, %v7022_v0  ;;  %v3415_v15 = vld [vmem:[#allocation3 + $0x8] sm:$0xff]  ;;  %v4261_v19 = vcombine.low %v4246_v31, %v4250_v23  ;;  %v3414_v32 = vld [vmem:[#allocation3] sm:$0xff] }
 0x1ed   : > { %2443 = vst [vmem:[#allocation3 + $0x18] sm:$0xf] %v2427_v36  ;;  %4005 = vrot.lane.b32.xlu1 %v3998_v59, %s7336_s25  ;;  %4768 = vperm.xlu0 %7196, %v8421_v44   ;;  %v9719_v36 = vmov 0   ;;  %v4161_v0 = vrot.slane %v8526_v45, %v9715_v53  ;;  %v4165_v13 = vrot.slane %v8526_v45, %v9716_v34 }
 0x1ee   : > { %v2669_v41 = vpop.permute.xlu1 %2668  ;;  %v4299_v25 = vrot.slane %v8581_v14, %v9715_v53  ;;  %v4303_v56 = vrot.slane %v8581_v14, %v9716_v34  ;;  %v4315_v46 = vrot.slane %v8581_v14, %v9717_v50  ;;  %v4319_v26 = vrot.slane %v8581_v14, %v9718_v5 }
 0x1ef   : > { %v8576_v54 = vpop.permute.xlu0 %2670  ;;  %v2683_v11 = vsel %vm2680_vm6, %v8374_v30, %v2669_v41  ;;  %v4063_v30 = vrot.slane %v8491_v58, %v7798_v47  ;;  %v4376_v23 = vrot.slane %v8612_v4, %v7459_v12  ;;  %v4190_v49 = vcombine.low %v4161_v0, %v4165_v13 }
 0x1f0   : > { %v2684_v55 = vsel %vm2680_vm6, %v2669_v41, %v8576_v54  ;;  %2699 = vst [vmem:[#allocation3 + $0x50] sm:$0xf] %v2683_v11  ;;  %v4328_v7 = vcombine.low %v4299_v25, %v4303_v56  ;;  %v4330_v31 = vcombine.low %v4315_v46, %v4319_v26  ;;  %v4380_v11 = vrot.slane %v8612_v4, %v9714_v60  ;;  %v3822_v46 = vld [vmem:[%s9653_s0] ss:$8 sm:$0xf0] }
 0x1f1   : > { %2700 = vst [vmem:[#allocation3 + $0x58] sm:$0xf] %v2684_v55  ;;  %4068 = vrot.lane.b32.xlu1 %v4064_v42, %s7337_s26  ;;  %4267 = vrot.lane.b32.xlu0 %v4261_v19, %s7339_s29  ;;  %v4189_v19 = vrot.slane %v8526_v45, %v7798_v47  ;;  %v4327_v25 = vrot.slane %v8581_v14, %v7798_v47 }
 0x1f2   : > { %v3121_v3 = vpop.permute.xlu1 %3120  ;;  %7198 = vset.pattern.permute.xlu0 %v9719_v36 }
 0x1f3   : > { %v8596_v48 = vpop.permute.xlu0 %3126  ;;  %v3136_v27 = vsel %vm2635_vm4, %v8390_v40, %v3121_v3  ;;  %v3137_v20 = vsel %vm2635_vm4, %v3121_v3, %v8381_v9  ;;  %v3423_v58 = vld [vmem:[#allocation3 + $0x48] sm:$0xff]  ;;  %v3422_v28 = vld [vmem:[#allocation3 + $0x40] sm:$0xff]  ;;  %v4067_v40 = vcombine.low %v4059_v18, %v4063_v30  ;;  %v4398_v3 = vcombine.low %v4376_v23, %v4380_v11 }
 0x1f4   : > { %3152 = vst [vmem:[#allocation3 + $0xc0] sm:$0xf] %v3136_v27  ;;  %3153 = vst [vmem:[#allocation3 + $0xc8] sm:$0xf] %v3137_v20  ;;  %v7028_v59 = vpack.c.bf16 %v3423_v58, %v3415_v15  ;;  %v7030_v2 = vpack.c.bf16 %v3422_v28, %v3414_v32  ;;  %v4185_v15 = vrot.slane %v8526_v45, %v7795_v24  ;;  %v7349_v58 = vmov 8  }
 0x1f5   : > { %4070 = vrot.lane.b32.xlu1 %v4065_v39, %s7337_s26  ;;  %4332 = vrot.lane.b32.xlu0 %v4328_v7, %s7340_s30  ;;  %v4177_v39 = vrot.slane %v8526_v45, %v9717_v50  ;;  %v4230_v27 = vrot.slane %v8559_v35, %v9715_v53  ;;  %v4234_v20 = vrot.slane %v8559_v35, %v9716_v34 }
 0x1f6   : > { %7029 = vmatprep.subr.bf16.mxu0 %v7028_v59  ;;  %v3125_v62 = vpop.permute.xlu1 %3124  ;;  %v4193_v28 = vcombine.low %v4185_v15, %v4189_v19  ;;  %v4238_v59 = vrot.slane %v8559_v35, %v7459_v12 }
 0x1f7   : > { %v8614_v51 = vpop.permute.xlu0 %2544  ;;  %v3138_v6 = vsel %vm2635_vm4, %v8381_v9, %v3125_v62  ;;  %v3139_v10 = vsel %vm2635_vm4, %v3125_v62, %v8596_v48  ;;  %7031 = vmatpush1.bf16.msra.mxu0 %v7030_v2  ;;  %v4259_v56 = vcombine.low %v4230_v27, %v4234_v20  ;;  %v4242_v2 = vrot.slane %v8559_v35, %v9714_v60  ;;  %v3821_v62 = vld [vmem:[%s9653_s0] ss:$8 sm:$0xf] }
 0x1f8   : > { %3154 = vst [vmem:[#allocation3 + $0xd0] sm:$0xf] %v3138_v6  ;;  %3155 = vst [vmem:[#allocation3 + $0xd8] sm:$0xf] %v3139_v10  ;;  %v4368_v27 = vrot.slane %v8612_v4, %v9715_v53  ;;  %v4372_v20 = vrot.slane %v8612_v4, %v9716_v34 }
 0x1f9   : > { %4074 = vrot.lane.b32.xlu1 %v4067_v40, %s7337_s26  ;;  %4336 = vrot.lane.b32.xlu0 %v4330_v31, %s7340_s30  ;;  %v4260_v13 = vcombine.low %v4238_v59, %v4242_v2 }
 0x1fa   : > { %v2993_v9 = vpop.permute.xlu1 %2992 }
 0x1fb   : > { %v8627_v42 = vpop.permute.xlu0 %2548  ;;  %v3010_v61 = vsel %vm2763_vm5, %v2993_v9, %v8423_v8  ;;  %v3439_v41 = vld [vmem:[#allocation3 + $0xc8] sm:$0xff]  ;;  %v4181_v8 = vrot.slane %v8526_v45, %v9718_v5  ;;  %v4323_v45 = vrot.slane %v8581_v14, %v7795_v24  ;;  %v8681_v9 = vor.u32 %v3822_v46, %v3821_v62 }
 0x1fc   : > { %3026 = vst [vmem:[#allocation3 + $0x80] sm:$0xf0] %v3010_v61  ;;  %v7032_v55 = vpack.c.bf16 %v3439_v41, %v3431_v17  ;;  %v3447_v17 = vld [vmem:[#allocation3 + $0x108] sm:$0xff] }
 0x1fd   : > { %4714 = vperm.xlu1 %7195, %v8421_v44   ;;  %v4192_v22 = vcombine.low %v4177_v39, %v4181_v8  ;;  %4403 = vrot.lane.b32.xlu0 %v4398_v3, %s7341_s20  ;;  %v4331_v7 = vcombine.low %v4323_v45, %v4327_v25  ;;  %v3844_v31 = vrot.slane %v8681_v9, %v9717_v50  ;;  %v3446_v39 = vld [vmem:[#allocation3 + $0x100] sm:$0xff] }
 0x1fe   : > { %7033 = vmatprep.subr.bf16.mxu0 %v7032_v55  ;;  %v3246_v18 = vpop.permute.xlu1 %3245  ;;  %v3848_v23 = vrot.slane %v8681_v9, %v9718_v5  ;;  %v4307_v8 = vrot.slane %v8581_v14, %v7459_v12  ;;  %v4384_v25 = vrot.slane %v8612_v4, %v9717_v50 }
 0x1ff   : > { %v8641_v30 = vpop.permute.xlu0 %2801  ;;  %v3263_v29 = vsel %vm2506_vm2, %v3246_v18, %v8463_v21 }
 0x200   : > { %3279 = vst [vmem:[#allocation3 + $0xc0] sm:$0xf0] %v3263_v29  ;;  %v3859_v3 = vcombine.low %v3844_v31, %v3848_v23 }
 0x201   : > { %4194 = vrot.lane.b32.xlu1 %v4190_v49, %s7338_s14  ;;  %4200 = vrot.lane.b32.xlu0 %v4193_v28, %s7338_s14  ;;  %v8697_v49 = vld [vmem:[%s9657_s4] sm:$0xf] }
 0x202   : > { %v8655_v21 = vpop.permute.xlu1 %2417  ;;  %7197 = vset.pattern.permute.xlu1 %v7349_v58 }
 0x203   : > { %v8657_v32 = vpop.permute.xlu0 %2805  ;;  %v3430_v6 = vld [vmem:[#allocation3 + $0x80] sm:$0xff] }
 0x205   : > { %4198 = vrot.lane.b32.xlu1 %v4192_v22, %s7338_s14  ;;  %4338 = vrot.lane.b32.xlu0 %v4331_v7, %s7340_s30  ;;  %v9720_v22 = vmov 0.0   ;;  %v3416_v7 = vld [vmem:[#allocation3 + $0x10] sm:$0xff]  ;;  %s7355_s14 = smov 94  }
 0x206   : > { %v8669_v40 = vpop.permute.xlu1 %2421 }
 0x207   : > { %v8677_v26 = vpop.permute.xlu0 %3130  ;;  %v3438_v10 = vld [vmem:[#allocation3 + $0xc0] sm:$0xff] }
 0x208   : > { %v7034_v0 = vpack.c.bf16 %v3438_v10, %v3430_v6 }
 0x209   : > { %4263 = vrot.lane.b32.xlu1 %v4259_v56, %s7339_s29  ;;  %4433 = vperm.xlu0 %7198, %v8421_v44   ;;  %v4388_v56 = vrot.slane %v8612_v4, %v9718_v5 }
 0x20a   : > { %7035 = vmatpush1.bf16.msra.mxu0 %v7034_v0  ;;  %v8683_v61 = vpop.permute.xlu1 %2674 }
 0x20b   : > { %v2543_v41 = vpop.permute.xlu0 %2542  ;;  %3472 = vmatprep.subr.mxu0 %v3447_v17  ;;  %v4399_v0 = vcombine.low %v4384_v25, %v4388_v56 }
 0x20c   : > { %v2556_v11 = vsel %vm2552_vm9, %v8365_v43, %v2543_v41  ;;  %v2557_v55 = vsel %vm2552_vm9, %v2543_v41, %v8614_v51  ;;  %v4311_v43 = vrot.slane %v8581_v14, %v9714_v60 }
 0x20d   : > { %2572 = vst [vmem:[#allocation3 + $0x18] sm:$0xf0] %v2556_v11  ;;  %2573 = vst [vmem:[#allocation3 + $0x20] sm:$0xf0] %v2557_v55  ;;  %4265 = vrot.lane.b32.xlu1 %v4260_v13, %s7339_s29  ;;  %3865 = vrot.lane.b32.xlu0 %v3859_v3, %s7334_s12  ;;  %v4258_v13 = vrot.slane %v8559_v35, %v7798_v47  ;;  %v4392_v55 = vrot.slane %v8612_v4, %v7795_v24 }
 0x20e   : > { %3473 = vmatpush1.msra.mxu0 %v3446_v39  ;;  %v8704_v18 = vpop.permute.xlu1 %2678  ;;  %v4329_v14 = vcombine.low %v4307_v8, %v4311_v43  ;;  %v4396_v39 = vrot.slane %v8612_v4, %v7798_v47  ;;  %v3440_v43 = vld [vmem:[#allocation3 + $0xd0] sm:$0xff] }
 0x20f   : > { %v2800_v29 = vpop.permute.xlu0 %2799  ;;  %7006 = vmatmul.mubr.msk.f32.vlgmr.msra.gmra.mrb[4].mxu0 %vm3460_vm10, %v8697_v49  ;;  %v3432_v4 = vld [vmem:[#allocation3 + $0x90] sm:$0xff] }
 0x210   : > { %v2813_v15 = vsel %vm2809_vm8, %v8386_v63, %v2800_v29  ;;  %v2814_v19 = vsel %vm2809_vm8, %v2800_v29, %v8641_v30  ;;  %3670 = vmatprep.mubr.f32.mxu0 %v9720_v22 }
 0x211   : > { %2829 = vst [vmem:[#allocation3 + $0x58] sm:$0xf0] %v2813_v15  ;;  %2830 = vst [vmem:[#allocation3 + $0x60] sm:$0xf0] %v2814_v19  ;;  %4822 = vperm.xlu1 %7197, %v8421_v44   ;;  %v4397_v44 = vcombine.low %v4368_v27, %v4372_v20  ;;  %v4400_v27 = vcombine.low %v4392_v55, %v4396_v39  ;;  %v3828_v20 = vrot.slane %v8681_v9, %v9715_v53 }
 0x212   : > { %v8719_v58 = vpop.permute.xlu1 %3379 }
 0x213   : > { %v3001_v28 = vpop.permute.xlu0 %3000  ;;  %v3392_v63 = vsel %vm2377_vm3, %v8528_v16, %v8719_v58 }
 0x214   : > { %v3013_v45 = vsel %vm2763_vm5, %v8450_v1, %v3001_v28  ;;  %3408 = vst [vmem:[#allocation3 + $0x118] sm:$0xf] %v3392_v63  ;;  %v3424_v1 = vld [vmem:[#allocation3 + $0x50] sm:$0xff]  ;;  %v3417_v46 = vld [vmem:[#allocation3 + $0x18] sm:$0xff]  ;;  %v7042_v63 = vpack.c.bf16 %v3440_v43, %v3432_v4 }
 0x215   : > { %3029 = vst [vmem:[#allocation3 + $0x98] sm:$0xf0] %v3013_v45  ;;  %4334 = vrot.lane.b32.xlu1 %v4329_v14, %s7340_s30  ;;  %v7038_v41 = vpack.c.bf16 %v3424_v1, %v3416_v7  ;;  %s9628_s30 = scalar_lea.vmem %s9663_s10, %s6987_s24 }
 0x216   : > { %v8732_v59 = vpop.permute.xlu1 %3002  ;;  %7199 = vset.pattern.permute.xlu1 %v9719_v36  ;;  %v4254_v36 = vrot.slane %v8559_v35, %v7795_v24 }
 0x217   : > { %v3254_v16 = vpop.permute.xlu0 %3253  ;;  %v3014_v2 = vsel %vm2763_vm5, %v3001_v28, %v8732_v59  ;;  %v3832_v28 = vrot.slane %v8681_v9, %v9716_v34 }
 0x218   : > { %v3266_v62 = vsel %vm2506_vm2, %v8477_v38, %v3254_v16  ;;  %3030 = vst [vmem:[#allocation3 + $0xa0] sm:$0xf0] %v3014_v2  ;;  %v3425_v6 = vld [vmem:[#allocation3 + $0x58] sm:$0xff]  ;;  %v4262_v35 = vcombine.low %v4254_v36, %v4258_v13  ;;  %v3836_v2 = vrot.slane %v8681_v9, %v7459_v12 }
 0x219   : > { %3282 = vst [vmem:[#allocation3 + $0xd8] sm:$0xf0] %v3266_v62  ;;  %v7036_v10 = vpack.c.bf16 %v3425_v6, %v3417_v46  ;;  %4401 = vrot.lane.b32.xlu1 %v4397_v44, %s7341_s20  ;;  %v3448_v6 = vld [vmem:[#allocation3 + $0x110] sm:$0xff] }
 0x21a   : > { %v8744_v17 = vpop.permute.xlu1 %3006 }
 0x21b   : > { %v2416_v31 = vpop.permute.xlu0 %2415  ;;  %7037 = vmatprep.subr.bf16.mxu1 %v7036_v10  ;;  %v3017_v38 = vsel %vm2763_vm5, %v8744_v17, %v8342_v52  ;;  %v3449_v56 = vld [vmem:[#allocation3 + $0x118] sm:$0xff] }
 0x21c   : > { %v2428_v23 = vsel %vm2423_vm7, %v8550_v33, %v2416_v31  ;;  %v2429_v11 = vsel %vm2423_vm7, %v2416_v31, %v8655_v21  ;;  %3033 = vst [vmem:[#allocation3 + $0xb8] sm:$0xf0] %v3017_v38  ;;  %7039 = vmatpush1.bf16.msra.mxu1 %v7038_v41  ;;  %v3433_v15 = vld [vmem:[#allocation3 + $0x98] sm:$0xff] }
 0x21d   : > { %2444 = vst [vmem:[#allocation3 + $0x20] sm:$0xf] %v2428_v23  ;;  %2445 = vst [vmem:[#allocation3 + $0x28] sm:$0xf] %v2429_v11  ;;  %4405 = vrot.lane.b32.xlu1 %v4399_v0, %s7341_s20 }
 0x21e   : > { %v8758_v52 = vpop.permute.xlu1 %3255 }
 0x21f   : > { %v2420_v8 = vpop.permute.xlu0 %2419  ;;  %v3267_v33 = vsel %vm2506_vm2, %v3254_v16, %v8758_v52  ;;  %v3857_v16 = vcombine.low %v3828_v20, %v3832_v28 }
 0x220   : > { %v2430_v29 = vsel %vm2423_vm7, %v8655_v21, %v2420_v8  ;;  %v2431_v3 = vsel %vm2423_vm7, %v2420_v8, %v8669_v40  ;;  %3283 = vst [vmem:[#allocation3 + $0xe0] sm:$0xf0] %v3267_v33  ;;  %v3441_v19 = vld [vmem:[#allocation3 + $0xd8] sm:$0xff] }
 0x221   : > { %2446 = vst [vmem:[#allocation3 + $0x30] sm:$0xf] %v2430_v29  ;;  %2447 = vst [vmem:[#allocation3 + $0x38] sm:$0xf] %v2431_v3  ;;  %v7040_v14 = vpack.c.bf16 %v3441_v19, %v3433_v15  ;;  %4269 = vrot.lane.b32.xlu1 %v4262_v35, %s7339_s29 }
 0x222   : > { %v3260_v21 = vpop.permute.xlu1 %3259 }
 0x223   : > { %v2673_v45 = vpop.permute.xlu0 %2672  ;;  %7041 = vmatprep.subr.bf16.mxu1 %v7040_v14  ;;  %v3270_v40 = vsel %vm2506_vm2, %v3260_v21, %v8351_v37  ;;  %v3840_v37 = vrot.slane %v8681_v9, %v9714_v60 }
 0x224   : > { %v2685_v44 = vsel %vm2680_vm6, %v8576_v54, %v2673_v45  ;;  %v2686_v25 = vsel %vm2680_vm6, %v2673_v45, %v8683_v61  ;;  %3286 = vst [vmem:[#allocation3 + $0xf8] sm:$0xf0] %v3270_v40  ;;  %7043 = vmatpush1.bf16.msra.mxu1 %v7042_v63  ;;  %v3418_v43 = vld [vmem:[#allocation3 + $0x20] sm:$0xff] }
 0x225   : > { %2701 = vst [vmem:[#allocation3 + $0x60] sm:$0xf] %v2685_v44  ;;  %2702 = vst [vmem:[#allocation3 + $0x68] sm:$0xf] %v2686_v25  ;;  %3543 = vmatprep.subr.mxu1 %v3449_v56  ;;  %4407 = vrot.lane.b32.xlu1 %v4400_v27, %s7341_s20  ;;  %v3434_v63 = vld [vmem:[#allocation3 + $0xa0] sm:$0xff] }
 0x226   : > { %v2547_v1 = vpop.permute.xlu1 %2546 }
 0x227   : > { %v2677_v54 = vpop.permute.xlu0 %2676  ;;  %v2558_v62 = vsel %vm2552_vm9, %v8614_v51, %v2547_v1  ;;  %v2559_v46 = vsel %vm2552_vm9, %v2547_v1, %v8627_v42  ;;  %v3858_v51 = vcombine.low %v3836_v2, %v3840_v37  ;;  %v3437_v37 = vld [vmem:[#allocation3 + $0xb8] sm:$0xff] }
 0x228   : > { %v2687_v10 = vsel %vm2680_vm6, %v8683_v61, %v2677_v54  ;;  %v2688_v7 = vsel %vm2680_vm6, %v2677_v54, %v8704_v18  ;;  %2574 = vst [vmem:[#allocation3 + $0x28] sm:$0xf0] %v2558_v62  ;;  %2575 = vst [vmem:[#allocation3 + $0x30] sm:$0xf0] %v2559_v46  ;;  %3544 = vmatpush1.msra.mxu1 %v3448_v6 }
 0x229   : > { %2703 = vst [vmem:[#allocation3 + $0x70] sm:$0xf] %v2687_v10  ;;  %2704 = vst [vmem:[#allocation3 + $0x78] sm:$0xf] %v2688_v7  ;;  %7007 = vmatmul.mubr.msk.f32.vlgmr.msra.gmra.mrb[4].mxu1 %vm3460_vm10, %v8697_v49  ;;  %3861 = vrot.lane.b32.xlu1 %v3857_v16, %s7334_s12 }
 0x22a   : > { %v2551_v0 = vpop.permute.xlu1 %2550  ;;  %3741 = vmatprep.mubr.f32.mxu1 %v9720_v22 }
 0x22b   : > { %v3005_v36 = vpop.permute.xlu0 %3004  ;;  %v2560_v61 = vsel %vm2552_vm9, %v8627_v42, %v2551_v0 }
 0x22c   : > { %v3015_v18 = vsel %vm2763_vm5, %v8732_v59, %v3005_v36  ;;  %v3016_v13 = vsel %vm2763_vm5, %v3005_v36, %v8744_v17  ;;  %2576 = vst [vmem:[#allocation3 + $0x38] sm:$0xf0] %v2560_v61  ;;  %v3426_v55 = vld [vmem:[#allocation3 + $0x60] sm:$0xff] }
 0x22d   : > { %3031 = vst [vmem:[#allocation3 + $0xa8] sm:$0xf0] %v3015_v18  ;;  %3032 = vst [vmem:[#allocation3 + $0xb0] sm:$0xf0] %v3016_v13  ;;  %3863 = vrot.lane.b32.xlu1 %v3858_v51, %s7334_s12  ;;  %v7046_v29 = vpack.c.bf16 %v3426_v55, %v3418_v43 }
 0x22e   : > { %v2804_v41 = vpop.permute.xlu1 %2803 }
 0x22f   : > { %v3258_v31 = vpop.permute.xlu0 %3257  ;;  %v2815_v38 = vsel %vm2809_vm8, %v8641_v30, %v2804_v41  ;;  %v2816_v23 = vsel %vm2809_vm8, %v2804_v41, %v8657_v32  ;;  %v3420_v20 = vld [vmem:[#allocation3 + $0x30] sm:$0xff] }
 0x230   : > { %v3268_v42 = vsel %vm2506_vm2, %v8758_v52, %v3258_v31  ;;  %v3269_v59 = vsel %vm2506_vm2, %v3258_v31, %v3260_v21  ;;  %2831 = vst [vmem:[#allocation3 + $0x68] sm:$0xf0] %v2815_v38  ;;  %2832 = vst [vmem:[#allocation3 + $0x70] sm:$0xf0] %v2816_v23  ;;  %v3419_v52 = vld [vmem:[#allocation3 + $0x28] sm:$0xff] }
 0x231   : > { %3284 = vst [vmem:[#allocation3 + $0xe8] sm:$0xf0] %v3268_v42  ;;  %3285 = vst [vmem:[#allocation3 + $0xf0] sm:$0xf0] %v3269_v59 }
 0x232   : > { %v2808_v17 = vpop.permute.xlu1 %2807 }
 0x233   : > { %v2817_v11 = vsel %vm2809_vm8, %v8657_v32, %v2808_v17  ;;  %v3384_v4 = vpop.permute.xlu0 %3383 }
 0x234   : > { %2833 = vst [vmem:[#allocation3 + $0x78] sm:$0xf0] %v2817_v11  ;;  %v3435_v40 = vld [vmem:[#allocation3 + $0xa8] sm:$0xff]  ;;  %v3436_v62 = vld [vmem:[#allocation3 + $0xb0] sm:$0xff] }
 0x236   : > { %v3129_v35 = vpop.permute.xlu1 %3128 }
 0x237   : > { %v3140_v30 = vsel %vm2635_vm4, %v8596_v48, %v3129_v35  ;;  %v3141_v39 = vsel %vm2635_vm4, %v3129_v35, %v8677_v26  ;;  %v3427_v8 = vld [vmem:[#allocation3 + $0x68] sm:$0xff]  ;;  %v3428_v15 = vld [vmem:[#allocation3 + $0x70] sm:$0xff]  ;;  %v3421_v48 = vld [vmem:[#allocation3 + $0x38] sm:$0xff]  ;;  %v3388_v16 = vpop.permute.xlu0 %3387 }
 0x238   : > { %3156 = vst [vmem:[#allocation3 + $0xe0] sm:$0xf] %v3140_v30  ;;  %3157 = vst [vmem:[#allocation3 + $0xe8] sm:$0xf] %v3141_v39  ;;  %v7044_v33 = vpack.c.bf16 %v3427_v8, %v3419_v52  ;;  %v7054_v28 = vpack.c.bf16 %v3428_v15, %v3420_v20 }
 0x23a   : > { %7045 = vmatprep.subr.bf16.mxu0 %v7044_v33  ;;  %v3133_v3 = vpop.permute.xlu1 %3132 }
 0x23b   : > { %v3142_v32 = vsel %vm2635_vm4, %v8677_v26, %v3133_v3  ;;  %v3143_v19 = vsel %vm2635_vm4, %v3133_v3, %v8335_v57  ;;  %7047 = vmatpush1.bf16.msra.mxu0 %v7046_v29  ;;  %v3429_v14 = vld [vmem:[#allocation3 + $0x78] sm:$0xff] }
 0x23c   : > { %3158 = vst [vmem:[#allocation3 + $0xf0] sm:$0xf] %v3142_v32  ;;  %3159 = vst [vmem:[#allocation3 + $0xf8] sm:$0xf] %v3143_v19  ;;  %v7052_v27 = vpack.c.bf16 %v3429_v14, %v3421_v48  ;;  %v4875_v32 = vld [vmem:[%s9660_s7] sm:$0xf] }
 0x23d   : > { %4878 = vperm.xlu0 %7198, %v4875_v32  }
 0x23e   : > { %7053 = vmatprep.subr.bf16.mxu1 %v7052_v27  ;;  %v3382_v21 = vpop.permute.xlu1 %3381 }
 0x23f   : > { %v3393_v45 = vsel %vm2377_vm3, %v8719_v58, %v3382_v21  ;;  %v3394_v26 = vsel %vm2377_vm3, %v3382_v21, %v3384_v4  ;;  %7055 = vmatpush1.bf16.msra.mxu1 %v7054_v28  ;;  %v3443_v57 = vld [vmem:[#allocation3 + $0xe8] sm:$0xff]  ;;  %v3442_v44 = vld [vmem:[#allocation3 + $0xe0] sm:$0xff] }
 0x240   : > { %3409 = vst [vmem:[#allocation3 + $0x120] sm:$0xf] %v3393_v45  ;;  %3410 = vst [vmem:[#allocation3 + $0x128] sm:$0xf] %v3394_v26  ;;  %v7048_v25 = vpack.c.bf16 %v3443_v57, %v3435_v40  ;;  %v7050_v56 = vpack.c.bf16 %v3442_v44, %v3434_v63 }
 0x242   : > { %7049 = vmatprep.subr.bf16.mxu0 %v7048_v25  ;;  %v3386_v2 = vpop.permute.xlu1 %3385 }
 0x243   : > { %v3395_v1 = vsel %vm2377_vm3, %v3384_v4, %v3386_v2  ;;  %v3396_v54 = vsel %vm2377_vm3, %v3386_v2, %v3388_v16  ;;  %7051 = vmatpush1.bf16.msra.mxu0 %v7050_v56  ;;  %v3445_v58 = vld [vmem:[#allocation3 + $0xf8] sm:$0xff]  ;;  %v3444_v46 = vld [vmem:[#allocation3 + $0xf0] sm:$0xff] }
 0x244   : > { %3411 = vst [vmem:[#allocation3 + $0x130] sm:$0xf] %v3395_v1  ;;  %3412 = vst [vmem:[#allocation3 + $0x138] sm:$0xf] %v3396_v54  ;;  %v7056_v6 = vpack.c.bf16 %v3445_v58, %v3437_v37  ;;  %v7058_v10 = vpack.c.bf16 %v3444_v46, %v3436_v62  ;;  %v7350_v1 = vmov 839922192  }
 0x245   : > { %v7016_v2 = vld [vmem:[%s9653_s0 + $0x4] ss:$8 sm:$0xf]  ;;  %v4436_v54 = vunpack.c.l.s4 %v7350_v1 }
 0x246   : > { %7057 = vmatprep.subr.bf16.mxu1 %v7056_v6  ;;  %v7017_v37 = vld [vmem:[%s9653_s0 + $0x4] ss:$8 sm:$0xf0] }
 0x247   : > { %7059 = vmatpush1.bf16.msra.mxu1 %v7058_v10  ;;  %v3451_v7 = vld [vmem:[#allocation3 + $0x128] sm:$0xff]  ;;  %v3450_v51 = vld [vmem:[#allocation3 + $0x120] sm:$0xff]  ;;  %v8898_v62 = vor.u32 %v7017_v37, %v7016_v2 }
 0x248   : > { %3614 = vmatprep.subr.mxu0 %v3451_v7  ;;  %v8828_v61 = vpop.permute.xlu0 %4449 }
 0x249   : > { %3615 = vmatpush1.msra.mxu0 %v3450_v51  ;;  %v4437_v51 = vunpack.c.0.s8 %v4436_v54 }
 0x24a   : > { %7008 = vmatmul.mubr.msk.f32.vlgmr.msra.gmra.mrb[6].mxu0 %vm3460_vm10, %v8697_v49 }
 0x24b   : > { %v3453_v0 = vld [vmem:[#allocation3 + $0x138] sm:$0xff]  ;;  %v3452_v36 = vld [vmem:[#allocation3 + $0x130] sm:$0xff]  ;;  %5067 = vmatprep.mubr.f32.mxu0 %v9720_v22 }
 0x24c   : > { %3685 = vmatprep.subr.mxu1 %v3453_v0  ;;  %v8833_v13 = vpop.permute.xlu0 %3932 }
 0x24d   : > { %3686 = vmatpush1.msra.mxu1 %v3452_v36  ;;  %v4108_v36 = vrot.slane %v8898_v62, %v9715_v53 }
 0x24e   : > { %7009 = vmatmul.mubr.msk.f32.vlgmr.msra.gmra.mrb[6].mxu1 %vm3460_vm10, %v8697_v49 }
 0x24f   : > { %5532 = vmatprep.mubr.f32.mxu1 %v9720_v22 }
 0x250   : > { %v8837_v31 = vpop.permute.xlu0 %3936 }
 0x251   : > { %v9690_v23 = vrot.slane %v8837_v31, 4 }
 0x253   : > { %v8831_v18 = vpop.permute.xlu1 %3457 }
 0x254   : > { %v8844_v59 = vpop.permute.xlu0 %3999 }
 0x255   : > { %v4007_v1 = vrot.slane %v8844_v59, 4 }
 0x258   : > { %v8835_v41 = vpop.permute.xlu1 %4503  ;;  %v4004_v55 = vpop.permute.xlu0 %4003 }
 0x259   : > { %v4009_v30 = vrot.slane %v4004_v55, 4 }
 0x25c   : > { %v8839_v38 = vpop.permute.xlu1 %3930 }
 0x260   : > { %v8842_v42 = vpop.permute.xlu1 %3934 }
 0x261   : > { %v3940_v49 = vrot.slane %v8842_v42, 4 }
 0x263   : > { %v3947_v17 = vsel %vm2379_vm1, %v3940_v49, %v9690_v23 }
 0x264   : > { %v8852_v11 = vpop.permute.xlu1 %4558  ;;  %v8856_v35 = vsel %vm2506_vm2, %v3947_v17, %v8837_v31  ;;  %v4112_v17 = vrot.slane %v8898_v62, %v9716_v34 }
 0x266   : > { %v4137_v53 = vcombine.low %v4108_v36, %v4112_v17 }
 0x268   : > { %v8858_v39 = vpop.permute.xlu1 %4001 }
 0x269   : > { %v4008_v52 = vrot.slane %v8858_v39, 4 }
 0x26b   : > { %v4014_v8 = vsel %vm2379_vm1, %v4008_v52, %v4009_v30 }
 0x26c   : > { %v8864_v33 = vpop.permute.xlu1 %4005  ;;  %v8867_v43 = vsel %vm2635_vm4, %v4014_v8, %v4004_v55 }
 0x26d   : > { %v4010_v29 = vrot.slane %v8864_v33, 4 }
 0x26f   : > { %v4016_v3 = vsel %vm2379_vm1, %v4009_v30, %v4010_v29 }
 0x270   : > { %v8875_v15 = vsel %vm2635_vm4, %v4016_v3, %v8864_v33  ;;  %v8880_v19 = vpop.permute.xlu1 %4068 }
 0x274   : > { %v8882_v14 = vpop.permute.xlu1 %4070 }
 0x278   : > { %v8886_v26 = vpop.permute.xlu1 %4074 }
 0x27c   : > { %v4715_v40 = vpop.permute.xlu1 %4714 }
 0x280   : > { %v8888_v16 = vpop.permute.xlu1 %4194 }
 0x284   : > { %v8896_v58 = vpop.permute.xlu1 %4198 }
 0x288   : > { %v8912_v32 = vpop.permute.xlu1 %4263 }
 0x2e2   : > { %v3530_v48 = vpop.f32.mrb[4].mxu0 }
 0x2e3   : > { %v3531_v4 = vadd.f32 %v3530_v48, %v8831_v18  ;;  %v3532_v27 = vpop.f32.mrb[5].mxu0 }
 0x2e4   : > { %v3533_v20 = vadd.f32 %v3532_v27, %v8831_v18 }
 0x2e5   : > { %v3748_v28 = vsub.f32 0.0, %v3531_v4 }
 0x2e6   : > { %v3749_v21 = vsub.f32 0.0, %v3533_v20 }
 0x2e7   : > { %v3756_v63 = vmul.f32 1.442695, %v3748_v28  ;;  %v4271_v28 = vrot.slane %v8912_v32, 4 }
 0x2e8   : > { %v3758_v45 = vmul.f32 1.442695, %v3749_v21 }
 0x2e9   : > { %7232 = vpow2.f32 %v3756_v63  ;;  %v9721_v63 = vld [vmem:[#allocation5_spill] sm:$0xff] }
 0x2ea   : > { %7234 = vpow2.f32 %v3758_v45  ;;  %v8916_v45 = vsub.s32 %v4437_v51, %v9721_v63  ;;  %v4076_v51 = vrot.slane %v8880_v19, 4 }
 0x2ec   : > { %v8964_v63 = vrot.slane %v8835_v41, %v8916_v45 }
 0x2f3   : > { %v7233_v57 = vpop.eup %7232 }
 0x2f4   : > { %v7235_v44 = vpop.eup %7234  ;;  %v3772_v25 = vadd.f32 1.0, %v7233_v57  ;;  %v4613_v57 = vpop.permute.xlu0 %4612 }
 0x2f5   : > { %v3773_v56 = vadd.f32 1.0, %v7235_v44 }
 0x2f6   : > { %7236 = vrcp.f32 %v3772_v25  ;;  %v3938_v25 = vrot.slane %v8839_v38, 4 }
 0x2f7   : > { %7238 = vrcp.f32 %v3773_v56  ;;  %v8929_v56 = vrot.slane %v4715_v40, %v8916_v45 }
 0x2f8   : > { %v8934_v54 = vpop.permute.xlu0 %4072  ;;  %v3942_v40 = vsel %vm2506_vm2, %v3938_v25, %v8839_v38 }
 0x2fc   : > { %v3601_v46 = vpop.f32.mrb[4].mxu1 }
 0x2fd   : > { %v8901_v6 = vadd.f32 %v3601_v46, %v8831_v18  ;;  %v3603_v10 = vpop.f32.mrb[5].mxu1  ;;  %v8939_v46 = vrot.slane %v8828_v61, %v8916_v45 }
 0x2fe   : > { %v8904_v7 = vadd.f32 %v3603_v10, %v8831_v18 }
 0x2ff   : > { %v3750_v0 = vsub.f32 0.0, %v8901_v6 }
 0x300   : > { %v7237_v55 = vpop.eup %7236  ;;  %v3751_v30 = vsub.f32 0.0, %v8904_v7 }
 0x301   : > { %v7239_v8 = vpop.eup %7238  ;;  %v3788_v3 = vmul.f32 %v7237_v55, %v3531_v4  ;;  %v3760_v48 = vmul.f32 1.442695, %v3750_v0  ;;  %v8921_v4 = vrot.slane %v4613_v57, %v8916_v45  ;;  %v4011_v0 = vsel %vm2635_vm4, %v4007_v1, %v8844_v59 }
 0x302   : > { %v3789_v27 = vmul.f32 %v7239_v8, %v3533_v20  ;;  %v3762_v21 = vmul.f32 1.442695, %v3751_v30  ;;  %v4275_v20 = vsel %vm2680_vm6, %v4271_v28, %v8912_v32 }
 0x303   : > { %4923 = vst [vmem:[#allocation4] sm:$0xf] %v3788_v3  ;;  %7240 = vpow2.f32 %v3760_v48  ;;  %v4080_v48 = vsel %vm2763_vm5, %v4076_v51, %v8880_v19 }
 0x304   : > { %v8918_v34 = vcombine.low %v3788_v3, %v3789_v27  ;;  %4924 = vst [vmem:[#allocation4 + $0x8] sm:$0xf] %v3789_v27  ;;  %7242 = vpow2.f32 %v3762_v21  ;;  %v4202_v27 = vrot.slane %v8888_v16, 4  ;;  %v4661_v21 = vpop.permute.xlu0 %4660 }
 0x305   : > { %v8981_v41 = vrot.slane %v4661_v21, %v8916_v45 }
 0x306   : > { %3812 = vst [vmem:[#allocation2 + $0x4] sm:$0xff] %v8918_v34  ;;  %v4145_v44 = vmul.f32 %v4137_v53, %v8918_v34  ;;  %v4287_v2 = vmul.f32 %v4275_v20, %v8918_v34  ;;  %v8969_v53 = vrot.slane %v8852_v11, %v8916_v45 }
 0x308   : > { %v4622_v37 = vmul.f32 %v8921_v4, %v4145_v44  ;;  %v4724_v36 = vmul.f32 %v8929_v56, %v4287_v2  ;;  %v4206_v44 = vsel %vm2809_vm8, %v4202_v27, %v8888_v16  ;;  %v8977_v2 = vpop.permute.xlu1 %4265  ;;  %v4136_v16 = vrot.slane %v8898_v62, %v7798_v47 }
 0x309   : > { %v4272_v11 = vrot.slane %v8977_v2, 4 }
 0x30a   : > { %4630 = vrot.lane.b32.xlu1 %v4622_v37, %s7334_s12  ;;  %v8983_v37 = vpop.permute.xlu0 %4196 }
 0x30d   : > { %v7241_v10 = vpop.eup %7240  ;;  %v8951_v17 = vld [vmem:[#allocation2] sm:$0xff] }
 0x30e   : > { %v7243_v55 = vpop.eup %7242  ;;  %v3774_v61 = vadd.f32 1.0, %v7241_v10  ;;  %v3954_v30 = vmul.f32 %v3942_v40, %v8951_v17  ;;  %4734 = vrot.lane.b32.xlu1 %v4724_v36, %s7351_s28  ;;  %v4023_v32 = vmul.f32 %v4011_v0, %v8951_v17  ;;  %v4092_v20 = vmul.f32 %v4080_v48, %v8951_v17  ;;  %v8999_v21 = vpop.permute.xlu0 %4768 }
 0x30f   : > { %v3775_v8 = vadd.f32 1.0, %v7243_v55  ;;  %v4218_v10 = vmul.f32 %v4206_v44, %v8918_v34  ;;  %v4116_v0 = vrot.slane %v8898_v62, %v7459_v12  ;;  %v4120_v36 = vrot.slane %v8898_v62, %v9714_v60 }
 0x310   : > { %7244 = vrcp.f32 %v3774_v61  ;;  %v4459_v3 = vmul.f32 %v8939_v46, %v3954_v30  ;;  %v4513_v57 = vmul.f32 %v8964_v63, %v4023_v32  ;;  %v4568_v40 = vmul.f32 %v8969_v53, %v4092_v20 }
 0x311   : > { %7246 = vrcp.f32 %v3775_v8  ;;  %v4276_v30 = vsel %vm2379_vm1, %v4271_v28, %v4272_v11  ;;  %v4670_v32 = vmul.f32 %v8981_v41, %v4218_v10  ;;  %v4138_v48 = vcombine.low %v4116_v0, %v4120_v36 }
 0x312   : > { %4469 = vrot.lane.b32.xlu0 %v4459_v3, %s7337_s26  ;;  %v4277_v60 = vsel %vm2680_vm6, %v4276_v30, %v8977_v2 }
 0x316   : > { %4523 = vrot.lane.b32.xlu0 %v4513_v57, %s7352_s11 }
 0x31a   : > { %v7245_v55 = vpop.eup %7244  ;;  %4578 = vrot.lane.b32.xlu0 %v4568_v40, %s7335_s19 }
 0x31b   : > { %v7247_v61 = vpop.eup %7246  ;;  %v3790_v8 = vmul.f32 %v7245_v55, %v8901_v6 }
 0x31c   : > { %v3791_v3 = vmul.f32 %v7247_v61, %v8904_v7  ;;  %v3939_v7 = vrot.slane %v8833_v13, 4 }
 0x31d   : > { %4925 = vst [vmem:[#allocation4 + $0x10] sm:$0xf] %v3790_v8  ;;  %v3672_v12 = vpop.f32.mrb[6].mxu0 }
 0x31e   : > { %v9003_v57 = vcombine.low %v3790_v8, %v3791_v3  ;;  %4926 = vst [vmem:[#allocation4 + $0x18] sm:$0xf] %v3791_v3  ;;  %v9006_v20 = vadd.f32 %v3672_v12, %v8831_v18  ;;  %v3674_v28 = vpop.f32.mrb[7].mxu0  ;;  %4680 = vrot.lane.b32.xlu0 %v4670_v32, %s7353_s16  ;;  %v9023_v8 = vpop.permute.xlu0 %4267 }
 0x31f   : > { %v9010_v6 = vadd.f32 %v3674_v28, %v8831_v18 }
 0x320   : > { %3813 = vst [vmem:[#allocation2 + $0xc] sm:$0xff] %v9003_v57  ;;  %v3752_v44 = vsub.f32 0.0, %v9006_v20  ;;  %v4146_v10 = vmul.f32 %v4138_v48, %v9003_v57  ;;  %v9018_v36 = vmul.f32 %v4277_v60, %v9003_v57  ;;  %v3943_v48 = vsel %vm2379_vm1, %v3938_v25, %v3939_v7 }
 0x321   : > { %v3753_v40 = vsub.f32 0.0, %v9010_v6  ;;  %v3743_v0 = vpop.f32.mrb[6].mxu1  ;;  %v3944_v38 = vsel %vm2506_vm2, %v3943_v48, %v8833_v13 }
 0x322   : > { %v3764_v55 = vmul.f32 1.442695, %v3752_v44  ;;  %v9021_v61 = vadd.f32 %v3743_v0, %v8831_v18  ;;  %v3745_v30 = vpop.f32.mrb[7].mxu1  ;;  %v9029_v12 = vmul.f32 %v8921_v4, %v4146_v10  ;;  %v4077_v44 = vrot.slane %v8882_v14, 4 }
 0x323   : > { %v3766_v3 = vmul.f32 1.442695, %v3753_v40  ;;  %v9026_v32 = vadd.f32 %v3745_v30, %v8831_v18  ;;  %v4012_v18 = vsel %vm2379_vm1, %v4007_v1, %v4008_v52  ;;  %v9051_v30 = vpop.permute.xlu0 %4332 }
 0x324   : > { %7248 = vpow2.f32 %v3764_v55  ;;  %v3754_v60 = vsub.f32 0.0, %v9021_v61  ;;  %v4013_v55 = vsel %vm2635_vm4, %v4012_v18, %v8858_v39  ;;  %v4081_v59 = vsel %vm2379_vm1, %v4076_v51, %v4077_v44 }
 0x325   : > { %7250 = vpow2.f32 %v3766_v3  ;;  %v3755_v28 = vsub.f32 0.0, %v9026_v32  ;;  %v4082_v3 = vsel %vm2763_vm5, %v4081_v59, %v8882_v14 }
 0x326   : > { %v3768_v10 = vmul.f32 1.442695, %v3754_v60 }
 0x327   : > { %v3770_v40 = vmul.f32 1.442695, %v3755_v28  ;;  %v9046_v25 = vld [vmem:[#allocation2 + $0x8] sm:$0xff]  ;;  %v9065_v18 = vpop.permute.xlu0 %4336 }
 0x328   : > { %7252 = vpow2.f32 %v3768_v10  ;;  %v3955_v0 = vmul.f32 %v3944_v38, %v9046_v25  ;;  %v4024_v1 = vmul.f32 %v4013_v55, %v9046_v25  ;;  %v4093_v60 = vmul.f32 %v4082_v3, %v9046_v25 }
 0x329   : > { %7254 = vpow2.f32 %v3770_v40  ;;  %v4124_v3 = vrot.slane %v8898_v62, %v9717_v50 }
 0x32a   : > { %v4460_v52 = vmul.f32 %v8939_v46, %v3955_v0  ;;  %v4514_v39 = vmul.f32 %v8964_v63, %v4024_v1  ;;  %v4569_v38 = vmul.f32 %v8969_v53, %v4093_v60  ;;  %v4204_v1 = vrot.slane %v8896_v58, 4 }
 0x32b   : > { %v9070_v59 = vpop.permute.xlu0 %4403 }
 0x32c   : > { %4471 = vrot.lane.b32.xlu1 %v4460_v52, %s7337_s26  ;;  %v4203_v52 = vrot.slane %v8983_v37, 4 }
 0x32e   : > { %v7249_v48 = vpop.eup %7248  ;;  %v4207_v60 = vsel %vm2379_vm1, %v4202_v27, %v4203_v52 }
 0x32f   : > { %v7251_v28 = vpop.eup %7250  ;;  %v3776_v19 = vadd.f32 1.0, %v7249_v48  ;;  %v4128_v48 = vrot.slane %v8898_v62, %v9718_v5  ;;  %v4132_v5 = vrot.slane %v8898_v62, %v7795_v24 }
 0x330   : > { %v3777_v10 = vadd.f32 1.0, %v7251_v28  ;;  %4525 = vrot.lane.b32.xlu1 %v4514_v39, %s7352_s11  ;;  %v9081_v28 = vpop.permute.xlu0 %4200 }
 0x331   : > { %7256 = vrcp.f32 %v3776_v19 }
 0x332   : > { %v7253_v51 = vpop.eup %7252  ;;  %7258 = vrcp.f32 %v3777_v10  ;;  %v4209_v10 = vsel %vm2379_vm1, %v4203_v52, %v4204_v1 }
 0x333   : > { %v7255_v40 = vpop.eup %7254  ;;  %v3778_v0 = vadd.f32 1.0, %v7253_v51  ;;  %v4273_v51 = vrot.slane %v9023_v8, 4 }
 0x334   : > { %v3779_v55 = vadd.f32 1.0, %v7255_v40  ;;  %4580 = vrot.lane.b32.xlu1 %v4569_v38, %s7335_s19  ;;  %v4205_v38 = vrot.slane %v9081_v28, 4 }
 0x335   : > { %7260 = vrcp.f32 %v3778_v0  ;;  %v4139_v0 = vcombine.low %v4124_v3, %v4128_v48 }
 0x336   : > { %7262 = vrcp.f32 %v3779_v55  ;;  %v4208_v55 = vsel %vm2809_vm8, %v4207_v60, %v8983_v37  ;;  %v4211_v62 = vsel %vm2379_vm1, %v4204_v1, %v4205_v38  ;;  %v4079_v60 = vrot.slane %v8886_v26, 4 }
 0x337   : > { %v4219_v1 = vmul.f32 %v4208_v55, %v9003_v57  ;;  %v4823_v55 = vpop.permute.xlu1 %4822 }
 0x33b   : > { %v7257_v39 = vpop.eup %7256 }
 0x33c   : > { %v7259_v19 = vpop.eup %7258  ;;  %v3792_v40 = vmul.f32 %v7257_v39, %v9006_v20  ;;  %v4210_v20 = vsel %vm2809_vm8, %v4209_v10, %v8896_v58  ;;  %v4140_v39 = vcombine.low %v4132_v5, %v4136_v16 }
 0x33d   : > { %v3793_v50 = vmul.f32 %v7259_v19, %v9010_v6  ;;  %v4278_v6 = vsel %vm2379_vm1, %v4272_v11, %v4273_v51  ;;  %v4078_v19 = vrot.slane %v8934_v54, 4 }
 0x33e   : > { %4927 = vst [vmem:[#allocation4 + $0x20] sm:$0xf] %v3792_v40 }
 0x33f   : > { %v7261_v27 = vpop.eup %7260  ;;  %v9094_v52 = vcombine.low %v3792_v40, %v3793_v50  ;;  %4928 = vst [vmem:[#allocation4 + $0x28] sm:$0xf] %v3793_v50  ;;  %v4083_v5 = vsel %vm2379_vm1, %v4077_v44, %v4078_v19  ;;  %v4085_v16 = vsel %vm2379_vm1, %v4078_v19, %v4079_v60 }
 0x340   : > { %v7263_v23 = vpop.eup %7262  ;;  %v3794_v3 = vmul.f32 %v7261_v27, %v9021_v61  ;;  %v4279_v61 = vsel %vm2680_vm6, %v4278_v6, %v9023_v8  ;;  %v4084_v6 = vsel %vm2763_vm5, %v4083_v5, %v8934_v54  ;;  %v4086_v14 = vsel %vm2763_vm5, %v4085_v16, %v8886_v26 }
 0x341   : > { %3814 = vst [vmem:[#allocation2 + $0x14] sm:$0xff] %v9094_v52  ;;  %v3795_v37 = vmul.f32 %v7263_v23, %v9026_v32  ;;  %v4147_v48 = vmul.f32 %v4139_v0, %v9094_v52  ;;  %v9111_v58 = vmul.f32 %v4210_v20, %v9094_v52  ;;  %v3945_v23 = vsel %vm2379_vm1, %v3939_v7, %v3940_v49 }
 0x342   : > { %4929 = vst [vmem:[#allocation4 + $0x30] sm:$0xf] %v3794_v3  ;;  %v4212_v32 = vsel %vm2809_vm8, %v4211_v62, %v9081_v28  ;;  %v4671_v49 = vmul.f32 %v8981_v41, %v4219_v1  ;;  %v4289_v7 = vmul.f32 %v4279_v61, %v9094_v52  ;;  %v3946_v50 = vsel %vm2506_vm2, %v3945_v23, %v8842_v42  ;;  %v4335_v61 = vpop.permute.xlu1 %4334 }
 0x343   : > { %v9113_v2 = vcombine.low %v3794_v3, %v3795_v37  ;;  %4930 = vst [vmem:[#allocation4 + $0x38] sm:$0xf] %v3795_v37  ;;  %v4624_v11 = vmul.f32 %v8921_v4, %v4147_v48  ;;  %v9722_v48 = vrot.slane %v8837_v31, 4  ;;  %v4341_v19 = vrot.slane %v4335_v61, 4 }
 0x344   : > { %v4726_v42 = vmul.f32 %v8929_v56, %v4289_v7 }
 0x345   : > { %3815 = vst [vmem:[#allocation2 + $0x1c] sm:$0xff] %v9113_v2  ;;  %4634 = vrot.lane.b32.xlu1 %v4624_v11, %s7334_s12  ;;  %v4148_v10 = vmul.f32 %v4140_v39, %v9113_v2  ;;  %v9132_v13 = vmul.f32 %v4212_v32, %v9113_v2  ;;  %v4340_v32 = vrot.slane %v9051_v30, 4 }
 0x346   : > { %v4402_v7 = vpop.permute.xlu1 %4401 }
 0x347   : > { %v9137_v40 = vmul.f32 %v8921_v4, %v4148_v10  ;;  %v4409_v5 = vrot.slane %v4402_v7, 4  ;;  %v4345_v16 = vsel %vm2379_vm1, %v4340_v32, %v4341_v19 }
 0x348   : > { %v9141_v0 = vld [vmem:[#allocation2 + $0x10] sm:$0xff] }
 0x349   : > { %v3956_v27 = vmul.f32 %v3946_v50, %v9141_v0  ;;  %4682 = vrot.lane.b32.xlu1 %v4671_v49, %s7353_s16  ;;  %v4025_v4 = vmul.f32 %v8867_v43, %v9141_v0  ;;  %v4094_v54 = vmul.f32 %v4084_v6, %v9141_v0  ;;  %v4344_v49 = vsel %vm2552_vm9, %v4340_v32, %v9051_v30 }
 0x34a   : > { %v9204_v50 = vrot.slane %v8999_v21, %v8916_v45  ;;  %v4672_v21 = vmul.f32 %v8981_v41, %v9111_v58  ;;  %v4406_v6 = vpop.permute.xlu1 %4405 }
 0x34b   : > { %v4461_v20 = vmul.f32 %v8939_v46, %v3956_v27  ;;  %v4515_v1 = vmul.f32 %v8964_v63, %v4025_v4  ;;  %v4570_v10 = vmul.f32 %v8969_v53, %v4094_v54  ;;  %v4830_v54 = vrot.slane %v4823_v55, %v8916_v45 }
 0x34c   : > { %v9157_v44 = vld [vmem:[#allocation2 + $0x18] sm:$0xff]  ;;  %v9159_v62 = vld [vmem:[#allocation2 + $0x20] sm:$0xf] }
 0x34d   : > { %4473 = vrot.lane.b32.xlu0 %v4461_v20, %s7337_s26  ;;  %4738 = vrot.lane.b32.xlu1 %v4726_v42, %s7351_s28  ;;  %v3957_v3 = vmul.f32 %v8856_v35, %v9157_v44  ;;  %v4026_v43 = vmul.f32 %v8875_v15, %v9157_v44  ;;  %v4095_v37 = vmul.f32 %v4086_v14, %v9157_v44 }
 0x34e   : > { %v4027_v26 = vmul.f32 %v4010_v29, %v9159_v62  ;;  %v3958_v39 = vmul.f32 %v9722_v48, %v9159_v62  ;;  %v4096_v11 = vmul.f32 %v4079_v60, %v9159_v62  ;;  %v4342_v60 = vrot.slane %v9065_v18, 4 }
 0x34f   : > { %v4462_v35 = vmul.f32 %v8939_v46, %v3957_v3  ;;  %v4516_v15 = vmul.f32 %v8964_v63, %v4026_v43  ;;  %v4571_v23 = vmul.f32 %v8969_v53, %v4095_v37  ;;  %v4346_v42 = vsel %vm2552_vm9, %v4345_v16, %v4335_v61  ;;  %v4339_v61 = vpop.permute.xlu0 %4338 }
 0x350   : > { %v9182_v33 = vmul.f32 %v8964_v63, %v4027_v26  ;;  %v9185_v29 = vmul.f32 %v8939_v46, %v3958_v39  ;;  %v9188_v31 = vmul.f32 %v8969_v53, %v4096_v11  ;;  %v4347_v46 = vsel %vm2379_vm1, %v4341_v19, %v4342_v60 }
 0x351   : > { %4527 = vrot.lane.b32.xlu0 %v4515_v1, %s7352_s11  ;;  %4475 = vrot.lane.b32.xlu1 %v4462_v35, %s7337_s26  ;;  %v4410_v63 = vrot.slane %v9070_v59, 4  ;;  %v4356_v53 = vmul.f32 %v4344_v49, %v8918_v34  ;;  %v4348_v30 = vsel %vm2552_vm9, %v4347_v46, %v9065_v18  ;;  %v4411_v3 = vrot.slane %v4406_v6, 4  ;;  %v4270_v35 = vpop.permute.xlu1 %4269 }
 0x352   : > { %v4358_v4 = vmul.f32 %v4348_v30, %v9094_v52  ;;  %v4725_v43 = vmul.f32 %v8929_v56, %v9018_v36  ;;  %v4357_v58 = vmul.f32 %v4346_v42, %v9003_v57  ;;  %v4413_v26 = vsel %vm2423_vm7, %v4409_v5, %v4402_v7 }
 0x353   : > { %v4414_v27 = vsel %vm2379_vm1, %v4409_v5, %v4410_v63  ;;  %v4778_v20 = vmul.f32 %v9204_v50, %v4356_v53  ;;  %v3852_v48 = vrot.slane %v8681_v9, %v7795_v24  ;;  %v3856_v36 = vrot.slane %v8681_v9, %v7798_v47 }
 0x354   : > { %v4415_v14 = vsel %vm2423_vm7, %v4414_v27, %v9070_v59  ;;  %v4780_v37 = vmul.f32 %v9204_v50, %v4358_v4  ;;  %v4416_v59 = vsel %vm2379_vm1, %v4410_v63, %v4411_v3  ;;  %v4779_v11 = vmul.f32 %v9204_v50, %v4357_v58 }
 0x355   : > { %4582 = vrot.lane.b32.xlu0 %v4570_v10, %s7335_s19  ;;  %4529 = vrot.lane.b32.xlu1 %v4516_v15, %s7352_s11  ;;  %v4417_v55 = vsel %vm2423_vm7, %v4416_v59, %v4406_v6  ;;  %v3860_v1 = vcombine.low %v3852_v48, %v3856_v36  ;;  %v4343_v9 = vrot.slane %v4339_v61, 4  ;;  %v4408_v49 = vpop.permute.xlu1 %4407  ;;  %v4673_v5 = vmul.f32 %v8981_v41, %v9132_v13 }
 0x356   : > { %v4427_v24 = vmul.f32 %v4417_v55, %v9094_v52  ;;  %v4412_v46 = vrot.slane %v4408_v49, 4 }
 0x357   : > { %v4349_v8 = vsel %vm2379_vm1, %v4342_v60, %v4343_v9 }
 0x358   : > { %v4834_v19 = vmul.f32 %v4830_v54, %v4427_v24  ;;  %v4350_v28 = vsel %vm2552_vm9, %v4349_v8, %v4339_v61 }
 0x359   : > { %4632 = vrot.lane.b32.xlu0 %v9029_v12, %s7334_s12  ;;  %4584 = vrot.lane.b32.xlu1 %v4571_v23, %s7335_s19  ;;  %v4426_v12 = vmul.f32 %v4415_v14, %v9003_v57  ;;  %v4425_v57 = vmul.f32 %v4413_v26, %v8918_v34  ;;  %v4274_v23 = vrot.slane %v4270_v35, 4  ;;  %v4153_v34 = vld [vmem:[#allocation2 + $0x24] sm:$0xf]  ;;  %v4359_v60 = vmul.f32 %v4350_v28, %v9113_v2 }
 0x35a   : > { %v4222_v32 = vmul.f32 %v4205_v38, %v4153_v34  ;;  %v4418_v38 = vsel %vm2379_vm1, %v4411_v3, %v4412_v46  ;;  %v4429_v53 = vmul.f32 %v4412_v46, %v4153_v34  ;;  %v4360_v27 = vmul.f32 %v4343_v9, %v4153_v34 }
 0x35b   : > { %v4833_v39 = vmul.f32 %v4830_v54, %v4426_v12  ;;  %v4832_v15 = vmul.f32 %v4830_v54, %v4425_v57  ;;  %v4280_v47 = vsel %vm2379_vm1, %v4273_v51, %v4274_v23  ;;  %v4419_v63 = vsel %vm2423_vm7, %v4418_v38, %v4408_v49 }
 0x35c   : > { %v4281_v10 = vsel %vm2680_vm6, %v4280_v47, %v4270_v35  ;;  %v4674_v51 = vmul.f32 %v8981_v41, %v4222_v32  ;;  %v4428_v7 = vmul.f32 %v4419_v63, %v9113_v2  ;;  %v4836_v16 = vmul.f32 %v4830_v54, %v4429_v53  ;;  %v4434_v41 = vpop.permute.xlu0 %4433 }
 0x35d   : > { %4684 = vrot.lane.b32.xlu0 %v4672_v21, %s7353_s16  ;;  %4788 = vrot.lane.b32.xlu1 %v4778_v20, %s7354_s17  ;;  %v4290_v52 = vmul.f32 %v4281_v10, %v9113_v2  ;;  %v4782_v2 = vmul.f32 %v9204_v50, %v4360_v27 }
 0x35e   : > { %v4835_v30 = vmul.f32 %v4830_v54, %v4428_v7 }
 0x35f   : > { %v4727_v18 = vmul.f32 %v8929_v56, %v4290_v52 }
 0x360   : > { %v9286_v21 = vpop.permute.xlu0 %3865 }
 0x361   : > { %4736 = vrot.lane.b32.xlu0 %v4725_v43, %s7351_s28  ;;  %4792 = vrot.lane.b32.xlu1 %v4780_v37, %s7354_s17 }
 0x364   : > { %v9288_v4 = vpop.permute.xlu0 %4878 }
 0x365   : > { %4790 = vrot.lane.b32.xlu0 %v4779_v11, %s7354_s17  ;;  %4844 = vrot.lane.b32.xlu1 %v4833_v39, %s7355_s14  ;;  %v3871_v39 = vrot.slane %v9286_v21, 4 }
 0x369   : > { %4842 = vrot.lane.b32.xlu0 %v4832_v15, %s7355_s14  ;;  %3867 = vrot.lane.b32.xlu1 %v3860_v1, %s7334_s12  ;;  %v9305_v1 = vrot.slane %v4434_v41, %v8916_v45 }
 0x36d   : > { %4846 = vrot.lane.b32.xlu0 %v4834_v19, %s7355_s14  ;;  %4531 = vrot.lane.b32.xlu1 %v9182_v33, %s7352_s11  ;;  %v4781_v33 = vmul.f32 %v9204_v50, %v4359_v60 }
 0x371   : > { %4688 = vrot.lane.b32.xlu0 %v4674_v51, %s7353_s16  ;;  %4636 = vrot.lane.b32.xlu1 %v9137_v40, %s7334_s12  ;;  %v4291_v40 = vmul.f32 %v4274_v23, %v4153_v34 }
 0x375   : > { %4477 = vrot.lane.b32.xlu0 %v9185_v29, %s7337_s26  ;;  %4740 = vrot.lane.b32.xlu1 %v4727_v18, %s7351_s28  ;;  %v4728_v29 = vmul.f32 %v8929_v56, %v4291_v40 }
 0x379   : > { %4586 = vrot.lane.b32.xlu0 %v9188_v31, %s7335_s19  ;;  %4794 = vrot.lane.b32.xlu1 %v4781_v33, %s7354_s17  ;;  %v3862_v31 = vpop.permute.xlu1 %3861 }
 0x37a   : > { %v3869_v54 = vrot.slane %v3862_v31, 4 }
 0x37c   : > { %v3873_v57 = vsel %vm2377_vm3, %v3869_v54, %v3862_v31 }
 0x37d   : > { %4686 = vrot.lane.b32.xlu0 %v4673_v5, %s7353_s16  ;;  %4848 = vrot.lane.b32.xlu1 %v4835_v30, %s7355_s14  ;;  %v3864_v20 = vpop.permute.xlu1 %3863  ;;  %v3885_v24 = vmul.f32 %v3873_v57, %v8951_v17 }
 0x37e   : > { %v3870_v26 = vrot.slane %v3864_v20, 4 }
 0x37f   : > { %v4443_v28 = vmul.f32 %v9305_v1, %v3885_v24 }
 0x380   : > { %v3874_v35 = vsel %vm2379_vm1, %v3869_v54, %v3870_v26  ;;  %v3876_v34 = vsel %vm2379_vm1, %v3870_v26, %v3871_v39 }
 0x381   : > { %4742 = vrot.lane.b32.xlu0 %v4728_v29, %s7351_s28  ;;  %4850 = vrot.lane.b32.xlu1 %v4836_v16, %s7355_s14  ;;  %v9284_v13 = vpop.permute.xlu1 %4630  ;;  %v3875_v49 = vsel %vm2377_vm3, %v3874_v35, %v3864_v20  ;;  %v3877_v52 = vsel %vm2377_vm3, %v3876_v34, %v9286_v21 }
 0x382   : > { %v3886_v33 = vmul.f32 %v3875_v49, %v9046_v25  ;;  %v3887_v5 = vmul.f32 %v3877_v52, %v9141_v0  ;;  %v4638_v30 = vrot.slane %v9284_v13, 4 }
 0x384   : > { %v4470_v6 = vpop.permute.xlu0 %4469  ;;  %v4642_v35 = vsel %vm2377_vm3, %v4638_v30, %v9284_v13 }
 0x385   : > { %4796 = vrot.lane.b32.xlu0 %v4782_v2, %s7354_s17  ;;  %v9290_v56 = vpop.permute.xlu1 %4734  ;;  %v4479_v11 = vrot.slane %v4470_v6, 4 }
 0x388   : > { %v4524_v3 = vpop.permute.xlu0 %4523 }
 0x389   : > { %v4533_v61 = vrot.slane %v4524_v3, 4 }
 0x38c   : > { %v4579_v50 = vpop.permute.xlu0 %4578 }
 0x38d   : > { %v4588_v32 = vrot.slane %v4579_v50, 4 }
 0x390   : > { %v9296_v58 = vpop.permute.xlu0 %4680 }
 0x39e   : > { %v4472_v42 = vpop.permute.xlu1 %4471 }
 0x39f   : > { %v4480_v36 = vrot.slane %v4472_v42, 4 }
 0x3a1   : > { %v4484_v47 = vsel %vm2379_vm1, %v4479_v11, %v4480_v36 }
 0x3a2   : > { %v4526_v14 = vpop.permute.xlu1 %4525  ;;  %v4485_v46 = vsel %vm2763_vm5, %v4470_v6, %v4484_v47 }
 0x3a3   : > { %v4534_v55 = vrot.slane %v4526_v14, 4  ;;  %v4497_v7 = vadd.f32 %v4485_v46, %v4443_v28 }
 0x3a5   : > { %v4538_v19 = vsel %vm2379_vm1, %v4533_v61, %v4534_v55 }
 0x3a6   : > { %v9292_v12 = vpop.permute.xlu1 %4580  ;;  %v4540_v60 = vsel %vm4539_vm11, %v4524_v3, %v4538_v19  ;;  %v4444_v3 = vmul.f32 %v9305_v1, %v3886_v33 }
 0x3a7   : > { %v4589_v9 = vrot.slane %v9292_v12, 4  ;;  %v4552_v31 = vadd.f32 %v4540_v60, %v4497_v7 }
 0x3a9   : > { %v4593_v38 = vsel %vm2379_vm1, %v4588_v32, %v4589_v9 }
 0x3aa   : > { %v4594_v29 = vsel %vm2506_vm2, %v4579_v50, %v4593_v38  ;;  %v4744_v38 = vrot.slane %v9290_v56, 4 }
 0x3ab   : > { %v4606_v50 = vadd.f32 %v4594_v29, %v4552_v31 }
 0x3ac   : > { %v4749_v31 = vsel %vm4748_vm13, %v4744_v38, %v9290_v56 }
 0x3b7   : > { %v9294_v43 = vpop.permute.xlu1 %4634 }
 0x3b8   : > { %v4640_v13 = vrot.slane %v9294_v43, 4 }
 0x3bb   : > { %v9298_v37 = vpop.permute.xlu1 %4682 }
 0x3bf   : > { %v4474_v59 = vpop.permute.xlu0 %4473  ;;  %v9300_v48 = vpop.permute.xlu1 %4738 }
 0x3c0   : > { %v4481_v10 = vrot.slane %v4474_v59, 4 }
 0x3c2   : > { %v4486_v40 = vsel %vm2379_vm1, %v4480_v36, %v4481_v10  ;;  %v4445_v36 = vmul.f32 %v9305_v1, %v3887_v5 }
 0x3c3   : > { %v4528_v15 = vpop.permute.xlu0 %4527  ;;  %v9308_v23 = vpop.permute.xlu1 %4475  ;;  %v4487_v6 = vsel %vm2763_vm5, %v4472_v42, %v4486_v40  ;;  %v4746_v40 = vrot.slane %v9300_v48, 4 }
 0x3c4   : > { %v4482_v17 = vrot.slane %v9308_v23, 4  ;;  %v4535_v18 = vrot.slane %v4528_v15, 4  ;;  %v4498_v24 = vadd.f32 %v4487_v6, %v4444_v3 }
 0x3c6   : > { %v4488_v27 = vsel %vm2379_vm1, %v4481_v10, %v4482_v17  ;;  %v4541_v25 = vsel %vm2379_vm1, %v4534_v55, %v4535_v18  ;;  %v4654_v10 = vadd.f32 %v4642_v35, %v4606_v50 }
 0x3c7   : > { %v4583_v8 = vpop.permute.xlu0 %4582  ;;  %v9320_v51 = vpop.permute.xlu1 %4529  ;;  %v4489_v26 = vsel %vm2763_vm5, %v4474_v59, %v4488_v27  ;;  %v4542_v57 = vsel %vm4539_vm11, %v4526_v14, %v4541_v25  ;;  %v4690_v59 = vrot.slane %v9296_v58, 4 }
 0x3c8   : > { %v4536_v63 = vrot.slane %v9320_v51, 4  ;;  %v4590_v53 = vrot.slane %v4583_v8, 4  ;;  %v4499_v34 = vadd.f32 %v4489_v26, %v4445_v36  ;;  %v4553_v32 = vadd.f32 %v4542_v57, %v4498_v24 }
 0x3c9   : > { %v4695_v60 = vsel %vm4694_vm12, %v4690_v59, %v9296_v58 }
 0x3ca   : > { %v4543_v0 = vsel %vm2379_vm1, %v4535_v18, %v4536_v63  ;;  %v4595_v54 = vsel %vm2379_vm1, %v4589_v9, %v4590_v53  ;;  %v4691_v9 = vrot.slane %v9298_v37, 4  ;;  %v4708_v27 = vadd.f32 %v4695_v60, %v4654_v10 }
 0x3cb   : > { %v4633_v16 = vpop.permute.xlu0 %4632  ;;  %v9336_v2 = vpop.permute.xlu1 %4584  ;;  %v4544_v47 = vsel %vm4539_vm11, %v4528_v15, %v4543_v0  ;;  %v4596_v14 = vsel %vm2506_vm2, %v9292_v12, %v4595_v54 }
 0x3cc   : > { %v4639_v20 = vrot.slane %v4633_v16, 4  ;;  %v4591_v41 = vrot.slane %v9336_v2, 4  ;;  %v4554_v15 = vadd.f32 %v4544_v47, %v4499_v34  ;;  %v4607_v12 = vadd.f32 %v4596_v14, %v4553_v32 }
 0x3ce   : > { %v4597_v42 = vsel %vm2379_vm1, %v4590_v53, %v4591_v41  ;;  %v4643_v61 = vsel %vm2379_vm1, %v4638_v30, %v4639_v20  ;;  %v4645_v33 = vsel %vm2379_vm1, %v4639_v20, %v4640_v13 }
 0x3cf   : > { %v9349_v11 = vpop.permute.xlu0 %4684  ;;  %v4789_v55 = vpop.permute.xlu1 %4788  ;;  %v4598_v19 = vsel %vm2506_vm2, %v4583_v8, %v4597_v42  ;;  %v4644_v49 = vsel %vm2377_vm3, %v4643_v61, %v4633_v16  ;;  %v4696_v8 = vsel %vm2379_vm1, %v4690_v59, %v4691_v9  ;;  %v4646_v25 = vsel %vm2377_vm3, %v4645_v33, %v9294_v43 }
 0x3d0   : > { %v4692_v46 = vrot.slane %v9349_v11, 4  ;;  %v4608_v7 = vadd.f32 %v4598_v19, %v4554_v15  ;;  %v4655_v53 = vadd.f32 %v4644_v49, %v4607_v12  ;;  %v4798_v30 = vrot.slane %v4789_v55, 4 }
 0x3d1   : > { %v4697_v0 = vsel %vm4694_vm12, %v4696_v8, %v9298_v37  ;;  %v4762_v42 = vadd.f32 %v4749_v31, %v4708_v27 }
 0x3d2   : > { %v4698_v29 = vsel %vm2379_vm1, %v4691_v9, %v4692_v46  ;;  %v4656_v50 = vadd.f32 %v4646_v25, %v4608_v7  ;;  %v4709_v56 = vadd.f32 %v4697_v0, %v4655_v53  ;;  %v4803_v36 = vsel %vm4802_vm14, %v4798_v30, %v4789_v55 }
 0x3d3   : > { %v4737_v52 = vpop.permute.xlu0 %4736  ;;  %v9366_v28 = vpop.permute.xlu1 %4792  ;;  %v4699_v26 = vsel %vm4694_vm12, %v4698_v29, %v9349_v11  ;;  %v9403_v55 = vrot.slane %v9288_v4, %v8916_v45  ;;  %v4816_v32 = vadd.f32 %v4803_v36, %v4762_v42 }
 0x3d4   : > { %v4745_v18 = vrot.slane %v4737_v52, 4  ;;  %v4800_v54 = vrot.slane %v9366_v28, 4  ;;  %v4710_v19 = vadd.f32 %v4699_v26, %v4656_v50 }
 0x3d6   : > { %v4750_v5 = vsel %vm2379_vm1, %v4744_v38, %v4745_v18  ;;  %v4752_v20 = vsel %vm2379_vm1, %v4745_v18, %v4746_v40 }
 0x3d7   : > { %v4791_v16 = vpop.permute.xlu0 %4790  ;;  %v4845_v58 = vpop.permute.xlu1 %4844  ;;  %v4751_v3 = vsel %vm4748_vm13, %v4750_v5, %v4737_v52  ;;  %v4753_v24 = vsel %vm4748_vm13, %v4752_v20, %v9300_v48 }
 0x3d8   : > { %v4799_v6 = vrot.slane %v4791_v16, 4  ;;  %v4763_v59 = vadd.f32 %v4751_v3, %v4709_v56  ;;  %v4853_v14 = vrot.slane %v4845_v58, 4  ;;  %v4764_v12 = vadd.f32 %v4753_v24, %v4710_v19 }
 0x3da   : > { %v4804_v57 = vsel %vm2379_vm1, %v4798_v30, %v4799_v6  ;;  %v4806_v37 = vsel %vm2379_vm1, %v4799_v6, %v4800_v54 }
 0x3db   : > { %v4843_v35 = vpop.permute.xlu0 %4842  ;;  %v4805_v61 = vsel %vm4802_vm14, %v4804_v57, %v4791_v16  ;;  %v3868_v47 = vpop.permute.xlu1 %3867  ;;  %v4807_v49 = vsel %vm4802_vm14, %v4806_v37, %v9366_v28 }
 0x3dc   : > { %v4852_v9 = vrot.slane %v4843_v35, 4  ;;  %v3872_v34 = vrot.slane %v3868_v47, 4  ;;  %v4817_v15 = vadd.f32 %v4805_v61, %v4763_v59  ;;  %v4818_v53 = vadd.f32 %v4807_v49, %v4764_v12 }
 0x3de   : > { %v4857_v10 = vsel %vm4856_vm15, %v4852_v9, %v4843_v35  ;;  %v4858_v52 = vsel %vm2379_vm1, %v4852_v9, %v4853_v14  ;;  %v3878_v45 = vsel %vm2379_vm1, %v3871_v39, %v3872_v34  ;;  %v3889_v21 = vmul.f32 %v3872_v34, %v9159_v62 }
 0x3df   : > { %v4870_v38 = vadd.f32 %v4857_v10, %v4816_v32  ;;  %v9409_v18 = vpop.permute.xlu0 %4846  ;;  %v4859_v60 = vsel %vm4856_vm15, %v4858_v52, %v4845_v58  ;;  %v4532_v4 = vpop.permute.xlu1 %4531  ;;  %v3879_v29 = vsel %vm2377_vm3, %v3878_v45, %v3868_v47 }
 0x3e0   : > { %v4854_v8 = vrot.slane %v9409_v18, 4  ;;  %v4871_v33 = vadd.f32 %v4859_v60, %v4817_v15  ;;  %v3888_v6 = vmul.f32 %v3879_v29, %v9157_v44  ;;  %v4447_v3 = vmul.f32 %v9305_v1, %v3889_v21 }
 0x3e1   : > { %v9417_v7 = vadd.f32 %v9403_v55, %v4870_v38  ;;  %v4537_v50 = vrot.slane %v4532_v4, 4 }
 0x3e2   : > { %v4860_v5 = vsel %vm2379_vm1, %v4853_v14, %v4854_v8  ;;  %v9423_v30 = vadd.f32 %v9403_v55, %v4871_v33  ;;  %v4446_v42 = vmul.f32 %v9305_v1, %v3888_v6 }
 0x3e3   : > { %v4893_v39 = vsub.f32 0.0, %v9417_v7  ;;  %v4861_v16 = vsel %vm4856_vm15, %v4860_v5, %v9409_v18  ;;  %v4689_v27 = vpop.permute.xlu0 %4688  ;;  %v4637_v58 = vpop.permute.xlu1 %4636  ;;  %v4545_v24 = vsel %vm2379_vm1, %v4536_v63, %v4537_v50 }
 0x3e4   : > { %v4872_v31 = vadd.f32 %v4861_v16, %v4818_v53  ;;  %v4894_v25 = vsub.f32 0.0, %v9423_v30  ;;  %v4641_v61 = vrot.slane %v4637_v58, 4  ;;  %v4546_v19 = vsel %vm4539_vm11, %v9320_v51, %v4545_v24 }
 0x3e5   : > { %v4898_v20 = vmul.f32 1.442695, %v4893_v39 }
 0x3e6   : > { %v4900_v0 = vmul.f32 1.442695, %v4894_v25  ;;  %v9434_v26 = vadd.f32 %v9403_v55, %v4872_v31 }
 0x3e7   : > { %7264 = vpow2.f32 %v4898_v20  ;;  %v4478_v62 = vpop.permute.xlu0 %4477  ;;  %v4741_v56 = vpop.permute.xlu1 %4740 }
 0x3e8   : > { %7266 = vpow2.f32 %v4900_v0  ;;  %v4483_v36 = vrot.slane %v4478_v62, 4  ;;  %v4501_v57 = vadd.f32 %v4478_v62, %v4447_v3  ;;  %v4895_v35 = vsub.f32 0.0, %v9434_v26 }
 0x3e9   : > { %v4747_v10 = vrot.slane %v4741_v56, 4 }
 0x3ea   : > { %v4490_v44 = vsel %vm2379_vm1, %v4482_v17, %v4483_v36  ;;  %v4556_v37 = vadd.f32 %v4532_v4, %v4501_v57  ;;  %v4902_v14 = vmul.f32 1.442695, %v4895_v35 }
 0x3eb   : > { %v4491_v47 = vsel %vm2763_vm5, %v9308_v23, %v4490_v44  ;;  %v4587_v59 = vpop.permute.xlu0 %4586  ;;  %v4795_v9 = vpop.permute.xlu1 %4794  ;;  %v4647_v23 = vsel %vm2379_vm1, %v4640_v13, %v4641_v61 }
 0x3ec   : > { %v4592_v34 = vrot.slane %v4587_v59, 4  ;;  %v4500_v1 = vadd.f32 %v4491_v47, %v4446_v42  ;;  %v4610_v32 = vadd.f32 %v4587_v59, %v4556_v37  ;;  %7268 = vpow2.f32 %v4902_v14 }
 0x3ed   : > { %v4801_v60 = vrot.slane %v4795_v9, 4  ;;  %v4648_v45 = vsel %vm2377_vm3, %v4647_v23, %v4637_v58 }
 0x3ee   : > { %v4599_v17 = vsel %vm2379_vm1, %v4591_v41, %v4592_v34  ;;  %v4555_v63 = vadd.f32 %v4546_v19, %v4500_v1  ;;  %v4658_v4 = vadd.f32 %v4641_v61, %v4610_v32  ;;  %v4754_v41 = vsel %vm2379_vm1, %v4746_v40, %v4747_v10 }
 0x3ef   : > { %v4600_v49 = vsel %vm2506_vm2, %v9336_v2, %v4599_v17  ;;  %v4687_v15 = vpop.permute.xlu0 %4686  ;;  %v4849_v52 = vpop.permute.xlu1 %4848  ;;  %v4808_v40 = vsel %vm2379_vm1, %v4800_v54, %v4801_v60  ;;  %v4755_v11 = vsel %vm4748_vm13, %v4754_v41, %v4741_v56 }
 0x3f0   : > { %v4609_v38 = vadd.f32 %v4600_v49, %v4555_v63  ;;  %v4693_v12 = vrot.slane %v4687_v15, 4  ;;  %v4855_v33 = vrot.slane %v4849_v52, 4  ;;  %v4809_v20 = vsel %vm4802_vm14, %v4808_v40, %v4795_v9 }
 0x3f1   : > { %v7265_v51 = vpop.eup %7264 }
 0x3f2   : > { %v7267_v43 = vpop.eup %7266  ;;  %v4908_v53 = vadd.f32 1.0, %v7265_v51  ;;  %v4657_v13 = vadd.f32 %v4648_v45, %v4609_v38  ;;  %v4700_v2 = vsel %vm2379_vm1, %v4692_v46, %v4693_v12  ;;  %v4702_v5 = vsel %vm4694_vm12, %v4693_v12, %v4689_v27 }
 0x3f3   : > { %v4909_v29 = vadd.f32 1.0, %v7267_v43  ;;  %v4701_v21 = vsel %vm4694_vm12, %v4700_v2, %v4687_v15  ;;  %v4743_v39 = vpop.permute.xlu0 %4742  ;;  %v4712_v16 = vadd.f32 %v4702_v5, %v4658_v4  ;;  %v4862_v46 = vsel %vm2379_vm1, %v4854_v8, %v4855_v33  ;;  %v4851_v0 = vpop.permute.xlu1 %4850  ;;  %v4992_v15 = vld [vmem:[%s9662_s9] sm:$0xff] }
 0x3f4   : > { %7270 = vrcp.f32 %v4908_v53  ;;  %v4711_v58 = vadd.f32 %v4701_v21, %v4657_v13  ;;  %v4756_v48 = vsel %vm4748_vm13, %v4747_v10, %v4743_v39  ;;  %v4863_v54 = vsel %vm4856_vm15, %v4862_v46, %v4849_v52  ;;  %v4983_v52 = vld [vmem:[%s9661_s8] sm:$0xff] }
 0x3f5   : > { %7272 = vrcp.f32 %v4909_v29  ;;  %v4766_v25 = vadd.f32 %v4756_v48, %v4712_v16  ;;  %v4864_v56 = vsel %vm4856_vm15, %v4855_v33, %v4851_v0  ;;  %v4999_v38 = vsel %vm378_vm0, %v4983_v52, 0 }
 0x3f6   : > { %v4765_v31 = vadd.f32 %v4755_v11, %v4711_v58  ;;  %v7269_v27 = vpop.eup %7268 }
 0x3f7   : > { %v4797_v6 = vpop.permute.xlu0 %4796  ;;  %v4910_v28 = vadd.f32 1.0, %v7269_v27 }
 0x3f8   : > { %v4819_v3 = vadd.f32 %v4809_v20, %v4765_v31  ;;  %v4810_v50 = vsel %vm4802_vm14, %v4801_v60, %v4797_v6  ;;  %v9498_v60 = vand.u32 4294901760, %v4999_v38 }
 0x3f9   : > { %v4820_v62 = vadd.f32 %v4810_v50, %v4766_v25  ;;  %7274 = vrcp.f32 %v4910_v28 }
 0x3fa   : > { %v4873_v36 = vadd.f32 %v4863_v54, %v4819_v3  ;;  %v9503_v33 = vsub.f32 %v4999_v38, %v9498_v60 }
 0x3fb   : > { %v4874_v18 = vadd.f32 %v4864_v56, %v4820_v62 }
 0x3fc   : > { %v4891_v8 = vadd.f32 %v9403_v55, %v4873_v36  ;;  %v9508_v5 = vand.u32 4294901760, %v9503_v33 }
 0x3fd   : > { %v4892_v57 = vadd.f32 %v9403_v55, %v4874_v18 }
 0x3fe   : > { %v7271_v42 = vpop.eup %7270  ;;  %v4896_v35 = vsub.f32 0.0, %v4891_v8  ;;  %v5071_v58 = vsub.f32 %v9503_v33, %v9508_v5 }
 0x3ff   : > { %v7273_v44 = vpop.eup %7272  ;;  %v4918_v24 = vmul.f32 %v7271_v42, %v9417_v7  ;;  %v4897_v37 = vsub.f32 0.0, %v4892_v57 }
 0x400   : > { %v4919_v61 = vmul.f32 %v7273_v44, %v9423_v30  ;;  %v4904_v47 = vmul.f32 1.442695, %v4896_v35  ;;  %v9522_v27 = vand.u32 4294901760, %v5071_v58 }
 0x401   : > { %v4906_v59 = vmul.f32 1.442695, %v4897_v37  ;;  %4943 = vrot.lane.b32.xlu0 %v4918_v24, %s7341_s20  ;;  %v4936_v34 = vcombine.low %v4918_v24, %v4918_v24 }
 0x402   : > { %7276 = vpow2.f32 %v4904_v47  ;;  %v4937_v9 = vcombine.low %v4919_v61, %v4919_v61 }
 0x403   : > { %7278 = vpow2.f32 %v4906_v59  ;;  %v7275_v14 = vpop.eup %7274 }
 0x404   : > { %4945 = vrot.lane.b32.xlu1 %v4937_v9, %s7341_s20  ;;  %v4920_v55 = vmul.f32 %v7275_v14, %v9434_v26 }
 0x405   : > { %4947 = vrot.lane.b32.xlu0 %v4919_v61, %s7341_s20 }
 0x406   : > { %v4938_v1 = vcombine.low %v4920_v55, %v4920_v55 }
 0x408   : > { %4949 = vrot.lane.b32.xlu1 %v4938_v1, %s7341_s20 }
 0x409   : > { %4941 = vrot.lane.b32.xlu0 %v4936_v34, %s7341_s20 }
 0x40c   : > { %v7277_v7 = vpop.eup %7276  ;;  %4951 = vrot.lane.b32.xlu1 %v4920_v55, %s7341_s20 }
 0x40d   : > { %v7279_v30 = vpop.eup %7278  ;;  %v4911_v32 = vadd.f32 1.0, %v7277_v7 }
 0x40e   : > { %v4912_v19 = vadd.f32 1.0, %v7279_v30 }
 0x40f   : > { %7280 = vrcp.f32 %v4911_v32 }
 0x410   : > { %7282 = vrcp.f32 %v4912_v19 }
 0x419   : > { %v7281_v10 = vpop.eup %7280 }
 0x41a   : > { %v7283_v17 = vpop.eup %7282  ;;  %v4921_v63 = vmul.f32 %v7281_v10, %v4891_v8 }
 0x41b   : > { %v4922_v23 = vmul.f32 %v7283_v17, %v4892_v57 }
 0x41c   : > { %4955 = vrot.lane.b32.xlu1 %v4921_v63, %s7341_s20  ;;  %v4939_v26 = vcombine.low %v4921_v63, %v4921_v63 }
 0x41d   : > { %v4940_v49 = vcombine.low %v4922_v23, %v4922_v23 }
 0x41e   : > { %4953 = vrot.lane.b32.xlu0 %v4939_v26, %s7341_s20 }
 0x420   : > { %4995 = vperm.xlu1 %7199, %v4992_v15  }
 0x422   : > { %4957 = vrot.lane.b32.xlu0 %v4940_v49, %s7341_s20 }
 0x473   : > { %v4944_v12 = vpop.permute.xlu0 %4943 }
 0x476   : > { %v4946_v51 = vpop.permute.xlu1 %4945 }
 0x477   : > { %v4948_v45 = vpop.permute.xlu0 %4947  ;;  %v4960_v4 = vsel %vm2423_vm7, %v4944_v12, %v4946_v51 }
 0x478   : > { %v4961_v41 = vsel %vm2423_vm7, %v4946_v51, %v4948_v45  ;;  %4976 = vst [vmem:[#allocation4 + $0x8] sm:$0xf0] %v4960_v4 }
 0x479   : > { %4977 = vst [vmem:[#allocation4 + $0x10] sm:$0xf0] %v4961_v41 }
 0x47a   : > { %v4950_v53 = vpop.permute.xlu1 %4949 }
 0x47b   : > { %v4942_v43 = vpop.permute.xlu0 %4941  ;;  %v4962_v2 = vsel %vm2423_vm7, %v4948_v45, %v4950_v53 }
 0x47c   : > { %v4959_v13 = vsel %vm2423_vm7, %v4942_v43, %v4944_v12  ;;  %4978 = vst [vmem:[#allocation4 + $0x18] sm:$0xf0] %v4962_v2 }
 0x47d   : > { %4975 = vst [vmem:[#allocation4] sm:$0xf0] %v4959_v13 }
 0x47e   : > { %v4952_v29 = vpop.permute.xlu1 %4951 }
 0x47f   : > { %v4985_v21 = vld [vmem:[#allocation4 + $0x8] sm:$0xff]  ;;  %v4963_v39 = vsel %vm2423_vm7, %v4950_v53, %v4952_v29 }
 0x480   : > { %v9511_v16 = vand.u32 4294901760, %v4985_v21  ;;  %v4986_v48 = vld [vmem:[#allocation4 + $0x10] sm:$0xff]  ;;  %4979 = vst [vmem:[#allocation4 + $0x20] sm:$0xf0] %v4963_v39 }
 0x481   : > { %v9515_v40 = vand.u32 4294901760, %v4986_v48 }
 0x482   : > { %5002 = vmatprep.subr.mxu0 %v9511_v16  ;;  %v5080_v11 = vsub.f32 %v4985_v21, %v9511_v16 }
 0x483   : > { %v9520_v31 = vsub.f32 %v4986_v48, %v9515_v40  ;;  %v4987_v25 = vld [vmem:[#allocation4 + $0x18] sm:$0xff] }
 0x484   : > { %v4984_v46 = vld [vmem:[#allocation4] sm:$0xff]  ;;  %v5081_v20 = vand.u32 4294901760, %v5080_v11  ;;  %v9526_v0 = vand.u32 4294901760, %v4987_v25 }
 0x485   : > { %v9524_v6 = vand.u32 4294901760, %v4984_v46  ;;  %v5552_v62 = vand.u32 4294901760, %v9520_v31 }
 0x486   : > { %v5082_v3 = vsub.f32 %v5080_v11, %v5081_v20  ;;  %5467 = vmatprep.subr.mxu1 %v9526_v0  ;;  %v5545_v28 = vsub.f32 %v4987_v25, %v9526_v0 }
 0x487   : > { %5004 = vmatpush1.msra.mxu0 %v9524_v6  ;;  %v5086_v50 = vsub.f32 %v4984_v46, %v9524_v6  ;;  %5469 = vmatpush1.msra.mxu1 %v9515_v40  ;;  %v5553_v57 = vsub.f32 %v9520_v31, %v5552_v62  ;;  %v4988_v1 = vld [vmem:[#allocation4 + $0x20] sm:$0xff] }
 0x488   : > { %5073 = vmatmul.mubr.f32.vlgmr.msra.gmra.mrb[8].mxu0 %v9522_v27  ;;  %v5083_v54 = vand.u32 4294901760, %v5082_v3  ;;  %5538 = vmatmul.mubr.f32.vlgmr.msra.gmra.mrb[8].mxu1 %v9522_v27  ;;  %v5546_v56 = vand.u32 4294901760, %v5545_v28  ;;  %v9564_v32 = vand.u32 4294901760, %v4988_v1 }
 0x489   : > { %v5087_v36 = vand.u32 4294901760, %v5086_v50  ;;  %5153 = vmatprep.mubr.f32.mxu0 %v9720_v22  ;;  %5618 = vmatprep.mubr.f32.mxu1 %v9720_v22  ;;  %v5554_v44 = vand.u32 4294901760, %v5553_v57 }
 0x48a   : > { %5084 = vmatprep.subr.mxu0 %v5083_v54  ;;  %v5547_v8 = vsub.f32 %v5545_v28, %v5546_v56  ;;  %v6016_v63 = vsub.f32 %v4988_v1, %v9564_v32 }
 0x48b   : > { %v5088_v18 = vsub.f32 %v5086_v50, %v5087_v36 }
 0x48c   : > { %v5548_v35 = vand.u32 4294901760, %v5547_v8  ;;  %v6017_v15 = vand.u32 4294901760, %v6016_v63 }
 0x48d   : > { %v5089_v42 = vand.u32 4294901760, %v5088_v18 }
 0x48e   : > { %5549 = vmatprep.subr.mxu1 %v5548_v35  ;;  %v4956_v24 = vpop.permute.xlu1 %4955  ;;  %v6018_v51 = vsub.f32 %v6016_v63, %v6017_v15 }
 0x48f   : > { %5090 = vmatpush1.msra.mxu0 %v5089_v42  ;;  %5555 = vmatpush1.msra.mxu1 %v5554_v44  ;;  %v7316_v42 = vld [vmem:[%s7470_s27] sm:$0xff] }
 0x490   : > { %5155 = vmatmul.mubr.f32.vlgmr.msra.gmra.mrb[8].mxu0 %v9498_v60  ;;  %5163 = vmatprep.subr.mxu0 %v5080_v11  ;;  %v4954_v37 = vpop.permute.xlu0 %4953  ;;  %v6019_v43 = vand.u32 4294901760, %v6018_v51 }
 0x491   : > { %v4964_v61 = vsel %vm2423_vm7, %v4952_v29, %v4954_v37  ;;  %v4965_v47 = vsel %vm2423_vm7, %v4954_v37, %v4956_v24  ;;  %5166 = vmatpush1.msra.mxu0 %v5086_v50  ;;  %5620 = vmatmul.mubr.f32.vlgmr.msra.gmra.mrb[8].mxu1 %v9498_v60 }
 0x492   : > { %4980 = vst [vmem:[#allocation4 + $0x28] sm:$0xf0] %v4964_v61  ;;  %4981 = vst [vmem:[#allocation4 + $0x30] sm:$0xf0] %v4965_v47  ;;  %5239 = vmatprep.subr.mxu0 %v9511_v16  ;;  %5628 = vmatprep.subr.mxu1 %v5545_v28  ;;  %v7318_v47 = vld [vmem:[%s7470_s27 + $0x10] sm:$0xff] }
 0x493   : > { %5229 = vmatprep.mubr.f32.mxu0 %v9720_v22  ;;  %5631 = vmatpush1.msra.mxu1 %v9520_v31 }
 0x494   : > { %v4958_v59 = vpop.permute.xlu0 %4957  ;;  %5694 = vmatprep.mubr.f32.mxu1 %v9720_v22  ;;  %5704 = vmatprep.subr.mxu1 %v9526_v0 }
 0x495   : > { %v4966_v9 = vsel %vm2423_vm7, %v4956_v24, %v4958_v59  ;;  %v7317_v24 = vld [vmem:[%s7470_s27 + $0x8] sm:$0xff] }
 0x496   : > { %4982 = vst [vmem:[#allocation4 + $0x38] sm:$0xf0] %v4966_v9  ;;  %v7319_v9 = vld [vmem:[%s7470_s27 + $0x18] sm:$0xff] }
 0x498   : > { %5232 = vmatmul.mubr.f32.vlgmr.msra.gmra.mrb[8].mxu0 %v9503_v33 }
 0x499   : > { %5241 = vmatpush1.msra.mxu0 %v9524_v6  ;;  %5304 = vmatprep.mubr.f32.mxu0 %v9720_v22  ;;  %v4989_v14 = vld [vmem:[#allocation4 + $0x28] sm:$0xff]  ;;  %v4990_v30 = vld [vmem:[#allocation4 + $0x30] sm:$0xff] }
 0x49a   : > { %5317 = vmatprep.subr.mxu0 %v5081_v20  ;;  %5697 = vmatmul.mubr.f32.vlgmr.msra.gmra.mrb[8].mxu1 %v9503_v33  ;;  %v9556_v34 = vand.u32 4294901760, %v4989_v14  ;;  %v9568_v10 = vand.u32 4294901760, %v4990_v30 }
 0x49b   : > { %5706 = vmatpush1.msra.mxu1 %v9515_v40  ;;  %5769 = vmatprep.mubr.f32.mxu1 %v9720_v22 }
 0x49c   : > { %5782 = vmatprep.subr.mxu1 %v5546_v56  ;;  %v6010_v19 = vsub.f32 %v4989_v14, %v9556_v34  ;;  %v6481_v26 = vsub.f32 %v4990_v30, %v9568_v10 }
 0x49d   : > { %v4991_v55 = vld [vmem:[#allocation4 + $0x38] sm:$0xff] }
 0x49e   : > { %v9561_v7 = vand.u32 4294901760, %v4991_v55  ;;  %v6011_v23 = vand.u32 4294901760, %v6010_v19  ;;  %v6482_v38 = vand.u32 4294901760, %v6481_v26 }
 0x4a0   : > { %5308 = vmatmul.mubr.f32.vlgmr.msra.gmra.mrb[8].mxu0 %v9508_v5  ;;  %v6475_v17 = vsub.f32 %v4991_v55, %v9561_v7  ;;  %v6012_v52 = vsub.f32 %v6010_v19, %v6011_v23  ;;  %v6483_v4 = vsub.f32 %v6481_v26, %v6482_v38 }
 0x4a1   : > { %5321 = vmatpush1.msra.mxu0 %v5087_v36  ;;  %5384 = vmatprep.mubr.f32.mxu0 %v9720_v22 }
 0x4a2   : > { %5393 = vmatprep.subr.mxu0 %v9511_v16  ;;  %5773 = vmatmul.mubr.f32.vlgmr.msra.gmra.mrb[8].mxu1 %v9508_v5  ;;  %v6476_v49 = vand.u32 4294901760, %v6475_v17  ;;  %v6013_v45 = vand.u32 4294901760, %v6012_v52  ;;  %v6484_v53 = vand.u32 4294901760, %v6483_v4 }
 0x4a3   : > { %5786 = vmatpush1.msra.mxu1 %v5552_v62  ;;  %5849 = vmatprep.mubr.f32.mxu1 %v9720_v22 }
 0x4a4   : > { %5858 = vmatprep.subr.mxu1 %v9526_v0  ;;  %v6477_v12 = vsub.f32 %v6475_v17, %v6476_v49 }
 0x4a6   : > { %v6478_v41 = vand.u32 4294901760, %v6477_v12 }
 0x4a8   : > { %5386 = vmatmul.mubr.f32.vlgmr.msra.gmra.mrb[8].mxu0 %v9498_v60 }
 0x4a9   : > { %5395 = vmatpush1.msra.mxu0 %v9524_v6  ;;  %5458 = vmatprep.mubr.f32.mxu0 %v9720_v22 }
 0x4aa   : > { %5932 = vmatprep.subr.mxu0 %v9556_v34  ;;  %5851 = vmatmul.mubr.f32.vlgmr.msra.gmra.mrb[8].mxu1 %v9498_v60 }
 0x4ab   : > { %5860 = vmatpush1.msra.mxu1 %v9515_v40  ;;  %5923 = vmatprep.mubr.f32.mxu1 %v9720_v22 }
 0x4ac   : > { %6397 = vmatprep.subr.mxu1 %v9561_v7 }
 0x4b0   : > { %5460 = vmatmul.mubr.f32.vlgmr.msra.gmra.mrb[8].mxu0 %v9498_v60 }
 0x4b1   : > { %5934 = vmatpush1.msra.mxu0 %v9564_v32  ;;  %5997 = vmatprep.mubr.f32.mxu0 %v9720_v22 }
 0x4b2   : > { %6014 = vmatprep.subr.mxu0 %v6013_v45  ;;  %5925 = vmatmul.mubr.f32.vlgmr.msra.gmra.mrb[8].mxu1 %v9498_v60 }
 0x4b3   : > { %6399 = vmatpush1.msra.mxu1 %v9568_v10  ;;  %6462 = vmatprep.mubr.f32.mxu1 %v9720_v22 }
 0x4b4   : > { %6003 = vmatmul.mubr.f32.vlgmr.msra.gmra.mrb[10].mxu0 %v9522_v27  ;;  %6479 = vmatprep.subr.mxu1 %v6478_v41 }
 0x4b5   : > { %6020 = vmatpush1.msra.mxu0 %v6019_v43  ;;  %6083 = vmatprep.mubr.f32.mxu0 %v9720_v22 }
 0x4b6   : > { %6093 = vmatprep.subr.mxu0 %v6010_v19  ;;  %6468 = vmatmul.mubr.f32.vlgmr.msra.gmra.mrb[10].mxu1 %v9522_v27 }
 0x4b7   : > { %6485 = vmatpush1.msra.mxu1 %v6484_v53  ;;  %6548 = vmatprep.mubr.f32.mxu1 %v9720_v22 }
 0x4b8   : > { %6558 = vmatprep.subr.mxu1 %v6475_v17 }
 0x4bc   : > { %6085 = vmatmul.mubr.f32.vlgmr.msra.gmra.mrb[10].mxu0 %v9498_v60 }
 0x4bd   : > { %6096 = vmatpush1.msra.mxu0 %v6016_v63  ;;  %6159 = vmatprep.mubr.f32.mxu0 %v9720_v22 }
 0x4be   : > { %6169 = vmatprep.subr.mxu0 %v9556_v34  ;;  %6550 = vmatmul.mubr.f32.vlgmr.msra.gmra.mrb[10].mxu1 %v9498_v60 }
 0x4bf   : > { %6561 = vmatpush1.msra.mxu1 %v6481_v26  ;;  %6624 = vmatprep.mubr.f32.mxu1 %v9720_v22 }
 0x4c0   : > { %6634 = vmatprep.subr.mxu1 %v9561_v7 }
 0x4c4   : > { %6162 = vmatmul.mubr.f32.vlgmr.msra.gmra.mrb[10].mxu0 %v9503_v33 }
 0x4c5   : > { %6171 = vmatpush1.msra.mxu0 %v9564_v32  ;;  %6234 = vmatprep.mubr.f32.mxu0 %v9720_v22 }
 0x4c6   : > { %6247 = vmatprep.subr.mxu0 %v6011_v23  ;;  %6627 = vmatmul.mubr.f32.vlgmr.msra.gmra.mrb[10].mxu1 %v9503_v33  ;;  %v9617_v33 = vpop.permute.xlu1 %4995 }
 0x4c7   : > { %6636 = vmatpush1.msra.mxu1 %v9568_v10  ;;  %6699 = vmatprep.mubr.f32.mxu1 %v9720_v22 }
 0x4c8   : > { %6712 = vmatprep.subr.mxu1 %v6476_v49 }
 0x4cc   : > { %6238 = vmatmul.mubr.f32.vlgmr.msra.gmra.mrb[10].mxu0 %v9508_v5 }
 0x4cd   : > { %6251 = vmatpush1.msra.mxu0 %v6017_v15  ;;  %6314 = vmatprep.mubr.f32.mxu0 %v9720_v22 }
 0x4ce   : > { %6323 = vmatprep.subr.mxu0 %v9556_v34  ;;  %6703 = vmatmul.mubr.f32.vlgmr.msra.gmra.mrb[10].mxu1 %v9508_v5 }
 0x4cf   : > { %6716 = vmatpush1.msra.mxu1 %v6482_v38  ;;  %6779 = vmatprep.mubr.f32.mxu1 %v9720_v22 }
 0x4d0   : > { %6788 = vmatprep.subr.mxu1 %v9561_v7 }
 0x4d4   : > { %6316 = vmatmul.mubr.f32.vlgmr.msra.gmra.mrb[10].mxu0 %v9498_v60 }
 0x4d5   : > { %6325 = vmatpush1.msra.mxu0 %v9564_v32  ;;  %6388 = vmatprep.mubr.f32.mxu0 %v9720_v22 }
 0x4d6   : > { %6781 = vmatmul.mubr.f32.vlgmr.msra.gmra.mrb[10].mxu1 %v9498_v60 }
 0x4d7   : > { %6790 = vmatpush1.msra.mxu1 %v9568_v10  ;;  %6853 = vmatprep.mubr.f32.mxu1 %v9720_v22 }
 0x4dc   : > { %6390 = vmatmul.mubr.f32.vlgmr.msra.gmra.mrb[10].mxu0 %v9498_v60 }
 0x4de   : > { %6855 = vmatmul.mubr.f32.vlgmr.msra.gmra.mrb[10].mxu1 %v9498_v60 }
 0x583   : > { %v5461_v13 = vpop.f32.mrb[8].mxu0 }
 0x584   : > { %v7068_v2 = vadd.f32 %v5461_v13, %v9617_v33  ;;  %v5463_v5 = vpop.f32.mrb[9].mxu0 }
 0x585   : > { %v7069_v29 = vadd.f32 %v5463_v5, %v9617_v33  ;;  %v5926_v21 = vpop.f32.mrb[8].mxu1 }
 0x586   : > { %v6861_v39 = vsub.f32 0.0, %v7068_v2  ;;  %v7070_v16 = vadd.f32 %v5926_v21, %v9617_v33  ;;  %v5928_v58 = vpop.f32.mrb[9].mxu1 }
 0x587   : > { %v6862_v48 = vsub.f32 0.0, %v7069_v29  ;;  %v7071_v22 = vadd.f32 %v5928_v58, %v9617_v33 }
 0x588   : > { %v6869_v40 = vmul.f32 1.442695, %v6861_v39  ;;  %v6863_v11 = vsub.f32 0.0, %v7070_v16 }
 0x589   : > { %v6871_v31 = vmul.f32 1.442695, %v6862_v48  ;;  %v6864_v60 = vsub.f32 0.0, %v7071_v22 }
 0x58a   : > { %7284 = vpow2.f32 %v6869_v40  ;;  %v6873_v46 = vmul.f32 1.442695, %v6863_v11 }
 0x58b   : > { %7286 = vpow2.f32 %v6871_v31  ;;  %v6875_v27 = vmul.f32 1.442695, %v6864_v60  ;;  %v7322_v31 = vld [vmem:[%s7470_s27 + $0x30] sm:$0xff] }
 0x58c   : > { %7288 = vpow2.f32 %v6873_v46  ;;  %v7323_v46 = vld [vmem:[%s7470_s27 + $0x38] sm:$0xff] }
 0x58d   : > { %7290 = vpow2.f32 %v6875_v27 }
 0x594   : > { %v7285_v25 = vpop.eup %7284 }
 0x595   : > { %v7287_v20 = vpop.eup %7286  ;;  %v6885_v6 = vadd.f32 1.0, %v7285_v25 }
 0x596   : > { %v7289_v0 = vpop.eup %7288  ;;  %v6886_v3 = vadd.f32 1.0, %v7287_v20 }
 0x597   : > { %v7291_v50 = vpop.eup %7290  ;;  %7292 = vrcp.f32 %v6885_v6  ;;  %v6887_v28 = vadd.f32 1.0, %v7289_v0 }
 0x598   : > { %7294 = vrcp.f32 %v6886_v3  ;;  %v6888_v62 = vadd.f32 1.0, %v7291_v50 }
 0x599   : > { %7296 = vrcp.f32 %v6887_v28 }
 0x59a   : > { %7298 = vrcp.f32 %v6888_v62 }
 0x5a1   : > { %v7293_v54 = vpop.eup %7292 }
 0x5a2   : > { %v7295_v36 = vpop.eup %7294  ;;  %v6901_v56 = vmul.f32 %v7293_v54, %v7068_v2 }
 0x5a3   : > { %v7297_v18 = vpop.eup %7296  ;;  %v6902_v8 = vmul.f32 %v7295_v36, %v7069_v29 }
 0x5a4   : > { %v7299_v57 = vpop.eup %7298  ;;  %v6909_v35 = vadd.f32 %v7316_v42, %v6901_v56  ;;  %v6903_v44 = vmul.f32 %v7297_v18, %v7070_v16  ;;  %v7320_v16 = vld [vmem:[%s7470_s27 + $0x20] sm:$0xff] }
 0x5a5   : > { %v6910_v37 = vadd.f32 %v7317_v24, %v6902_v8  ;;  %v6904_v61 = vmul.f32 %v7299_v57, %v7071_v22  ;;  %v7321_v22 = vld [vmem:[%s7470_s27 + $0x28] sm:$0xff] }
 0x5a6   : > { %6917 = vst [vmem:[%s9628_s30] sm:$0xff] %v6909_v35  ;;  %v6911_v59 = vadd.f32 %v7318_v47, %v6903_v44 }
 0x5a7   : > { %6918 = vst [vmem:[%s9628_s30 + $0x8] sm:$0xff] %v6910_v37  ;;  %v6912_v14 = vadd.f32 %v7319_v9, %v6904_v61 }
 0x5a8   : > { %6919 = vst [vmem:[%s9628_s30 + $0x10] sm:$0xff] %v6911_v59 }
 0x5a9   : > { %6920 = vst [vmem:[%s9628_s30 + $0x18] sm:$0xff] %v6912_v14 }
 0x5af   : > { %v6391_v55 = vpop.f32.mrb[10].mxu0 }
 0x5b0   : > { %v7072_v34 = vadd.f32 %v6391_v55, %v9617_v33  ;;  %v6393_v1 = vpop.f32.mrb[11].mxu0 }
 0x5b1   : > { %v7073_v7 = vadd.f32 %v6393_v1, %v9617_v33  ;;  %v6856_v30 = vpop.f32.mrb[10].mxu1 }
 0x5b2   : > { %v6865_v32 = vsub.f32 0.0, %v7072_v34  ;;  %v7074_v19 = vadd.f32 %v6856_v30, %v9617_v33  ;;  %v6858_v10 = vpop.f32.mrb[11].mxu1 }
 0x5b3   : > { %v6866_v17 = vsub.f32 0.0, %v7073_v7  ;;  %v7075_v63 = vadd.f32 %v6858_v10, %v9617_v33 }
 0x5b4   : > { %v6877_v23 = vmul.f32 1.442695, %v6865_v32  ;;  %v6867_v26 = vsub.f32 0.0, %v7074_v19 }
 0x5b5   : > { %v6879_v49 = vmul.f32 1.442695, %v6866_v17  ;;  %v6868_v15 = vsub.f32 0.0, %v7075_v63 }
 0x5b6   : > { %7300 = vpow2.f32 %v6877_v23  ;;  %v6881_v52 = vmul.f32 1.442695, %v6867_v26 }
 0x5b7   : > { %7302 = vpow2.f32 %v6879_v49  ;;  %v6883_v38 = vmul.f32 1.442695, %v6868_v15 }
 0x5b8   : > { %7304 = vpow2.f32 %v6881_v52 }
 0x5b9   : > { %7306 = vpow2.f32 %v6883_v38 }
 0x5c0   : > { %v7301_v12 = vpop.eup %7300 }
 0x5c1   : > { %v7303_v51 = vpop.eup %7302  ;;  %v6889_v45 = vadd.f32 1.0, %v7301_v12 }
 0x5c2   : > { %v7305_v4 = vpop.eup %7304  ;;  %v6890_v41 = vadd.f32 1.0, %v7303_v51 }
 0x5c3   : > { %v7307_v43 = vpop.eup %7306  ;;  %7308 = vrcp.f32 %v6889_v45  ;;  %v6891_v53 = vadd.f32 1.0, %v7305_v4 }
 0x5c4   : > { %7310 = vrcp.f32 %v6890_v41  ;;  %v6892_v33 = vadd.f32 1.0, %v7307_v43 }
 0x5c5   : > { %7312 = vrcp.f32 %v6891_v53 }
 0x5c6   : > { %7314 = vrcp.f32 %v6892_v33 }
 0x5cd   : > { %v7309_v13 = vpop.eup %7308 }
 0x5ce   : > { %v7311_v2 = vpop.eup %7310  ;;  %v6905_v5 = vmul.f32 %v7309_v13, %v7072_v34 }
 0x5cf   : > { %v7313_v29 = vpop.eup %7312  ;;  %v6906_v21 = vmul.f32 %v7311_v2, %v7073_v7 }
 0x5d0   : > { %v7315_v39 = vpop.eup %7314  ;;  %v6913_v58 = vadd.f32 %v7320_v16, %v6905_v5  ;;  %v6907_v48 = vmul.f32 %v7313_v29, %v7074_v19 }
 0x5d1   : > { %v6914_v40 = vadd.f32 %v7321_v22, %v6906_v21  ;;  %v6908_v11 = vmul.f32 %v7315_v39, %v7075_v63 }
 0x5d2   : > { %6921 = vst [vmem:[%s9628_s30 + $0x20] sm:$0xff] %v6913_v58  ;;  %v6915_v60 = vadd.f32 %v7322_v31, %v6907_v48 }
 0x5d3   : > { %6922 = vst [vmem:[%s9628_s30 + $0x28] sm:$0xff] %v6914_v40  ;;  %v6916_v27 = vadd.f32 %v7323_v46, %v6908_v11 }
 0x5d4   : > { %6923 = vst [vmem:[%s9628_s30 + $0x30] sm:$0xff] %v6915_v60 }
 0x5d5   : > { %6924 = vst [vmem:[%s9628_s30 + $0x38] sm:$0xff] %v6916_v27 }
 0x5d6 PF: > { %s20_s13 = sadd.s32 1, %s7330_s13  }
 0x5d7   : > { %p17_p4 = scmp.ge.s32.totalorder %s20_s13, 4  }
 0x5d9   :  { %19 = sbr.rel (!%p17_p4) target bundleno = 1 (0x1), region = 98 }

</bundles_post_ra>
